<compile_context>
chip_gen: v7x
topology: tpu7x:2x2x1
jax: 0.10.0
libtpu: 0.0.40
codegen_flags: <defaults>
</compile_context>

<pallas_src>
import jax
import jax.numpy as jnp
from jax.experimental import pallas as pl
from jax.experimental.pallas import tpu as pltpu

BN_EPS = 1e-5

# Canonical generator config (structural constants, static at trace time).
NZ = 16
NGF = (32, 16)
IMG_CHANNELS = 3
KSIZE = 4
H_IN = W_IN = 1  # DCGAN generator input is (N, nz, 1, 1)

LAYER_SPECS = (
    dict(c_in=NZ,     c_out=NGF[0],       k=KSIZE, stride=1, padding=0, bn=True),
    dict(c_in=NGF[0], c_out=NGF[1],       k=KSIZE, stride=2, padding=1, bn=True),
    dict(c_in=NGF[1], c_out=IMG_CHANNELS, k=KSIZE, stride=2, padding=1, bn=False),
)


def _convt_out_hw(h_in, k, stride, padding):
    return (h_in - 1) * stride - 2 * padding + k


def _stack_out_hw():
    h = H_IN
    for spec in LAYER_SPECS:
        h = _convt_out_hw(h, spec["k"], spec["stride"], spec["padding"])
    return h


OUT_HW = _stack_out_hw()                       # 16
D_OUT = OUT_HW * OUT_HW * IMG_CHANNELS         # 768 lane-dense output columns

# Packed small-parameter layout: each segment starts at a 128-lane boundary.
G1_OFF, B1_OFF, G2_OFF, B2_OFF, BIAS3_OFF = 0, 128, 256, 384, 512
SMALL_WIDTH = BIAS3_OFF + D_OUT                # 1280


# --------------------------------------------------------------------------
# Fused Pallas kernel: 3 x (matmul [+ BN + ReLU | + bias + Tanh]) in VMEM
# --------------------------------------------------------------------------
def _dcgan_fused_kernel(z_ref, small_ref, m1_ref, m2_hbm_ref, m3_hbm_ref,
                        out_ref, m2_vmem, m3_vmem, dma_sem):
    f32 = jnp.float32
    bf16 = jnp.bfloat16
    n_rows = z_ref.shape[0]

    # Kick off the big weight copies immediately; layer-1 (and layer-2 BN)
    # compute hides under them.
    cp2 = pltpu.make_async_copy(m2_hbm_ref, m2_vmem, dma_sem.at[0])
    cp3 = pltpu.make_async_copy(m3_hbm_ref, m3_vmem, dma_sem.at[1])
    cp2.start()
    cp3.start()

    def bn_relu(y, c, gamma, beta):
        # y: [N, HW*C] f32, columns ordered (h, w, c) with c minor.
        # Training-mode batch statistics (biased var, matching PyTorch BN fwd),
        # computed with group-sum matmuls whose 0/1 selectors are generated
        # in-kernel (no HBM traffic for them).
        hw_c = y.shape[1]
        cnt = float(n_rows * (hw_c // c))
        stats = jnp.concatenate(
            [jnp.sum(y, axis=0, keepdims=True),
             jnp.sum(y * y, axis=0, keepdims=True)], axis=0)      # [2, HW*C]
        row = jax.lax.broadcasted_iota(jnp.int32, (hw_c, c), 0)
        col = jax.lax.broadcasted_iota(jnp.int32, (hw_c, c), 1)
        sel = (row % c == col).astype(f32)                        # [HW*C, C]
        grp = jnp.dot(stats, sel, preferred_element_type=f32)     # [2, C]
        mean = grp[0:1, :] / cnt
        var = grp[1:2, :] / cnt - mean * mean
        scale_c = gamma * jax.lax.rsqrt(var + BN_EPS)             # gamma folded w/ rsqrt
        shift_c = beta - mean * scale_c
        ss = jnp.concatenate([scale_c, shift_c], axis=0)          # [2, C]
        chan = jax.lax.broadcasted_iota(jnp.int32, (c, hw_c), 0)
        lane = jax.lax.broadcasted_iota(jnp.int32, (c, hw_c), 1)
        sel_t = (lane % c == chan).astype(f32)                    # [C, HW*C]
        bc = jnp.dot(ss, sel_t, preferred_element_type=f32)       # [2, HW*C]
        return jnp.maximum(y * bc[0:1, :] + bc[1:2, :], 0.0)      # affine + ReLU

    # Slice coalesced small parameters (all offsets 128-lane aligned).
    g1 = small_ref[:, G1_OFF:G1_OFF + NGF[0]]
    b1 = small_ref[:, B1_OFF:B1_OFF + NGF[0]]
    g2 = small_ref[:, G2_OFF:G2_OFF + NGF[1]]
    b2 = small_ref[:, B2_OFF:B2_OFF + NGF[1]]
    bias3 = small_ref[:, BIAS3_OFF:BIAS3_OFF + D_OUT]

    # Layer 1: 1x1 -> 4x4, nz -> 32 channels (exactly z @ W[16, 512]), BN + ReLU
    z = z_ref[...].astype(bf16)
    y1 = jnp.dot(z, m1_ref[...], preferred_element_type=f32)       # [N, 512]
    a1 = bn_relu(y1, NGF[0], g1, b1)

    # Layer 2: 4x4 -> 8x8, 32 -> 16 channels, BN + ReLU
    cp2.wait()
    y2 = jnp.dot(a1.astype(bf16), m2_vmem[...], preferred_element_type=f32)  # [N, 1024]
    a2 = bn_relu(y2, NGF[1], g2, b2)

    # Layer 3: 8x8 -> 16x16, 16 -> 3 channels, bias + Tanh (lane-dense 768 cols)
    cp3.wait()
    y3 = jnp.dot(a2.astype(bf16), m3_vmem[...], preferred_element_type=f32)  # [N, 768]
    out_ref[...] = jnp.tanh(y3 + bias3)


def _vmem_spec():
    return pl.BlockSpec(memory_space=pltpu.MemorySpace.VMEM)


def dcgan_generator_fused(z2d, params):
    n = z2d.shape[0]
    m2 = params["m2"]
    m3 = params["m3"]
    return pl.pallas_call(
        _dcgan_fused_kernel,
        out_shape=jax.ShapeDtypeStruct((n, m3.shape[1]), jnp.float32),
        in_specs=[
            _vmem_spec(),                        # z       (tiny)
            _vmem_spec(),                        # packed small params (1 DMA)
            _vmem_spec(),                        # m1      (16 KB, auto-DMA)
            pl.BlockSpec(memory_space=pl.ANY),   # m2 stays in HBM; manual copy
            pl.BlockSpec(memory_space=pl.ANY),   # m3 stays in HBM; manual copy
        ],
        out_specs=_vmem_spec(),
        scratch_shapes=[
            pltpu.VMEM(m2.shape, jnp.bfloat16),
            pltpu.VMEM(m3.shape, jnp.bfloat16),
            pltpu.SemaphoreType.DMA((2,)),
        ],
    )(z2d, params["small"], params["m1"], m2, m3)


@jax.jit
def dcgan_generator_forward(z_nchw, params):
    """Equivalent of DcganGenerator.forward: (N, nz, 1, 1) -> (N, 3, 16, 16)."""
    n = z_nchw.shape[0]
    z2d = z_nchw.reshape(n, -1).astype(jnp.float32)          # (N, nz)
    flat = dcgan_generator_fused(z2d, params)                # (N, H*W*C) NHWC-flat
    img = flat.reshape(n, OUT_HW, OUT_HW, IMG_CHANNELS)      # NHWC
    return jnp.transpose(img, (0, 3, 1, 2))                  # NCHW


# --------------------------------------------------------------------------
# One-time weight preprocessing: ConvTranspose2d -> dense NHWC-flat matrix
# --------------------------------------------------------------------------
def _convt_dense_matrix(w_t, h_in, w_in, stride, padding):
    """Dense M with flat_out = flat_in @ M (row-major NHWC flattening)."""
    c_in, c_out, k, _ = w_t.shape
    h_out = _convt_out_hw(h_in, k, stride, padding)
    w_out = _convt_out_hw(w_in, k, stride, padding)
    d_in = h_in * w_in * c_in
    basis = jnp.eye(d_in, dtype=jnp.float32).reshape(d_in, h_in, w_in, c_in)
    # Transposed conv == lhs-dilated stride-1 correlation with flipped kernel.
    w_hwio = jnp.transpose(w_t[:, :, ::-1, ::-1], (2, 3, 0, 1))  # (kh, kw, ci, co)
    pad = k - 1 - padding
    y = jax.lax.conv_general_dilated(
        basis, w_hwio, window_strides=(1, 1),
        padding=[(pad, pad), (pad, pad)],
        lhs_dilation=(stride, stride),
        dimension_numbers=("NHWC", "HWIO", "NHWC"))
    return y.reshape(d_in, h_out * w_out * c_out), h_out, w_out


def make_params(key):
    """Returns (raw per-layer params for the reference, packed kernel operands, (H,W))."""
    raw = []
    for spec in LAYER_SPECS:
        key, kw_key, ka_key, kb_key = jax.random.split(key, 4)
        w_t = 0.02 * jax.random.normal(
            kw_key, (spec["c_in"], spec["c_out"], spec["k"], spec["k"]), jnp.float32)
        layer = dict(spec, w_t=w_t)
        if spec["bn"]:
            layer["gamma"] = 1.0 + 0.02 * jax.random.normal(ka_key, (spec["c_out"],), jnp.float32)
            layer["beta"] = 0.02 * jax.random.normal(kb_key, (spec["c_out"],), jnp.float32)
        else:
            layer["bias"] = 0.02 * jax.random.normal(ka_key, (spec["c_out"],), jnp.float32)
        raw.append(layer)

    packed = {}
    small = jnp.zeros((1, SMALL_WIDTH), jnp.float32)
    offsets = {"g1": G1_OFF, "b1": B1_OFF, "g2": G2_OFF, "b2": B2_OFF}
    h = w = H_IN
    for idx, layer in enumerate(raw, start=1):
        m, h, w = _convt_dense_matrix(layer["w_t"], h, w, layer["stride"], layer["padding"])
        packed[f"m{idx}"] = m.astype(jnp.bfloat16)            # bf16 MXU operand
        hw = h * w
        c_out = layer["c_out"]
        if layer["bn"]:
            g_off, b_off = offsets[f"g{idx}"], offsets[f"b{idx}"]
            small = small.at[0, g_off:g_off + c_out].set(layer["gamma"])
            small = small.at[0, b_off:b_off + c_out].set(layer["beta"])
        else:
            bias_flat = jnp.tile(layer["bias"], (hw,))        # (h,w,c) c-minor ordering
            small = small.at[0, BIAS3_OFF:BIAS3_OFF + hw * c_out].set(bias_flat)
    packed["small"] = small
    return raw, packed, (h, w)


# --------------------------------------------------------------------------
# Pure-JAX reference (f32, conv-based) for self-validation
# --------------------------------------------------------------------------
def reference_forward(z_nchw, raw_layers):
    x = jnp.transpose(z_nchw, (0, 2, 3, 1)).astype(jnp.float32)   # NHWC
    for layer in raw_layers:
        k, stride, padding = layer["k"], layer["stride"], layer["padding"]
        pad = k - 1 - padding
        w_hwio = jnp.transpose(layer["w_t"][:, :, ::-1, ::-1], (2, 3, 0, 1))
        x = jax.lax.conv_general_dilated(
            x, w_hwio, window_strides=(1, 1), padding=[(pad, pad), (pad, pad)],
            lhs_dilation=(stride, stride),
            dimension_numbers=("NHWC", "HWIO", "NHWC"))
        if layer["bn"]:
            mean = jnp.mean(x, axis=(0, 1, 2), keepdims=True)
            var = jnp.mean((x - mean) ** 2, axis=(0, 1, 2), keepdims=True)
            x = (x - mean) * jax.lax.rsqrt(var + BN_EPS)
            x = jnp.maximum(x * layer["gamma"] + layer["beta"], 0.0)
        else:
            x = jnp.tanh(x + layer["bias"])
    return jnp.transpose(x, (0, 3, 1, 2))                         # NCHW


if __name__ == "__main__":
    key = jax.random.PRNGKey(0)
    key_z, key_p = jax.random.split(key)

    batch = 2
    z = jax.random.normal(key_z, (batch, NZ, 1, 1), jnp.float32)  # (N, nz, 1, 1)
    raw_layers, params, (h_out, w_out) = make_params(key_p)

    out = dcgan_generator_forward(z, params)
    out = jax.block_until_ready(out)

    assert out.shape == (batch, IMG_CHANNELS, h_out, w_out), out.shape
    assert bool(jnp.all(jnp.isfinite(out)))
    assert bool(jnp.all(jnp.abs(out) <= 1.0 + 1e-6))              # tanh output range

    ref = reference_forward(z, raw_layers)
    err = float(jnp.max(jnp.abs(out - ref)))
    assert err < 7.5e-2, f"max abs error vs f32 reference: {err}"
    print("KERNEL_OK")
</pallas_src>

<mosaic_0001>
module attributes {stable_mosaic.version = 11 : i64} {
  func.func @_dcgan_fused_kernel(%arg0: memref<2x16xf32, #tpu.memory_space<vmem>>, %arg1: memref<1x1280xf32, #tpu.memory_space<vmem>>, %arg2: memref<16x512xbf16, #tpu.memory_space<vmem>>, %arg3: memref<512x1024xbf16, #tpu.memory_space<any>>, %arg4: memref<1024x768xbf16, #tpu.memory_space<any>>, %arg5: memref<2x768xf32, #tpu.memory_space<vmem>>, %arg6: memref<512x1024xbf16, #tpu.memory_space<vmem>>, %arg7: memref<1024x768xbf16, #tpu.memory_space<vmem>>, %arg8: memref<2x!tpu.dma_semaphore, #tpu.memory_space<semaphore_mem>>) attributes {dimension_semantics = [], scalar_prefetch = 0 : i64, scratch_operands = 3 : i64, tpu.core_type = #tpu.core_type<tc>} {
    %c0_i32 = arith.constant 0 : i32
    %0 = tpu.memref_slice %arg8[%c0_i32] : memref<2x!tpu.dma_semaphore, #tpu.memory_space<semaphore_mem>> -> memref<1x!tpu.dma_semaphore, #tpu.memory_space<semaphore_mem>>
    %1 = tpu.memref_squeeze %0 : memref<1x!tpu.dma_semaphore, #tpu.memory_space<semaphore_mem>> -> memref<!tpu.dma_semaphore, #tpu.memory_space<semaphore_mem>>
    tpu.enqueue_dma source(%arg3 : memref<512x1024xbf16, #tpu.memory_space<any>>) target(%arg6 : memref<512x1024xbf16, #tpu.memory_space<vmem>>) target_semaphore(%1 : memref<!tpu.dma_semaphore, #tpu.memory_space<semaphore_mem>>)
    %c1_i32 = arith.constant 1 : i32
    %2 = tpu.memref_slice %arg8[%c1_i32] : memref<2x!tpu.dma_semaphore, #tpu.memory_space<semaphore_mem>> -> memref<1x!tpu.dma_semaphore, #tpu.memory_space<semaphore_mem>>
    %3 = tpu.memref_squeeze %2 : memref<1x!tpu.dma_semaphore, #tpu.memory_space<semaphore_mem>> -> memref<!tpu.dma_semaphore, #tpu.memory_space<semaphore_mem>>
    tpu.enqueue_dma source(%arg4 : memref<1024x768xbf16, #tpu.memory_space<any>>) target(%arg7 : memref<1024x768xbf16, #tpu.memory_space<vmem>>) target_semaphore(%3 : memref<!tpu.dma_semaphore, #tpu.memory_space<semaphore_mem>>)
    %c0 = arith.constant 0 : index
    %c0_0 = arith.constant 0 : index
    %4 = vector.load %arg1[%c0, %c0_0] : memref<1x1280xf32, #tpu.memory_space<vmem>>, vector<1x32xf32>
    %c0_1 = arith.constant 0 : index
    %c128 = arith.constant 128 : index
    %5 = vector.load %arg1[%c0_1, %c128] : memref<1x1280xf32, #tpu.memory_space<vmem>>, vector<1x32xf32>
    %c0_2 = arith.constant 0 : index
    %c256 = arith.constant 256 : index
    %6 = vector.load %arg1[%c0_2, %c256] : memref<1x1280xf32, #tpu.memory_space<vmem>>, vector<1x16xf32>
    %c0_3 = arith.constant 0 : index
    %c384 = arith.constant 384 : index
    %7 = vector.load %arg1[%c0_3, %c384] : memref<1x1280xf32, #tpu.memory_space<vmem>>, vector<1x16xf32>
    %c0_4 = arith.constant 0 : index
    %c512 = arith.constant 512 : index
    %8 = vector.load %arg1[%c0_4, %c512] : memref<1x1280xf32, #tpu.memory_space<vmem>>, vector<1x768xf32>
    %c0_5 = arith.constant 0 : index
    %c0_6 = arith.constant 0 : index
    %9 = vector.load %arg0[%c0_5, %c0_6] : memref<2x16xf32, #tpu.memory_space<vmem>>, vector<2x16xf32>
    %10 = arith.truncf %9 : vector<2x16xf32> to vector<2x16xbf16>
    %c0_7 = arith.constant 0 : index
    %c0_8 = arith.constant 0 : index
    %11 = vector.load %arg2[%c0_7, %c0_8] : memref<16x512xbf16, #tpu.memory_space<vmem>>, vector<16x512xbf16>
    %cst = arith.constant dense<0.000000e+00> : vector<2x512xf32>
    %12 = tpu.matmul %10, %11, %cst {dimension_numbers = #tpu.dot_dimension_numbers<[1], [0], [0], [1], [0, 0, 1, 1], [], []>} : vector<2x16xbf16>, vector<16x512xbf16>, vector<2x512xf32> -> vector<2x512xf32>
    %cst_9 = arith.constant dense<0.000000e+00> : vector<512xf32>
    %13 = vector.multi_reduction <add>, %12, %cst_9 [0] : vector<2x512xf32> to vector<512xf32>
    %14 = vector.shape_cast %13 : vector<512xf32> to vector<1x512xf32>
    %15 = arith.mulf %12, %12 : vector<2x512xf32>
    %cst_10 = arith.constant dense<0.000000e+00> : vector<512xf32>
    %16 = vector.multi_reduction <add>, %15, %cst_10 [0] : vector<2x512xf32> to vector<512xf32>
    %17 = vector.shape_cast %16 : vector<512xf32> to vector<1x512xf32>
    %18 = tpu.concatenate %14, %17 in 0 : vector<1x512xf32>, vector<1x512xf32> -> vector<2x512xf32>
    %19 = tpu.iota {dimensions = array<i32: 0>} : vector<512x32xi32>
    %20 = tpu.iota {dimensions = array<i32: 1>} : vector<512x32xi32>
    %c32_i32 = arith.constant 32 : i32
    %c0_i32_11 = arith.constant 0 : i32
    %21 = arith.cmpi eq, %c32_i32, %c0_i32_11 : i32
    %c1_i32_12 = arith.constant 1 : i32
    %22 = arith.select %21, %c1_i32_12, %c32_i32 : i32
    %23 = vector.broadcast %22 : i32 to vector<512x32xi32>
    %24 = arith.remsi %19, %23 : vector<512x32xi32>
    %c0_i32_13 = arith.constant 0 : i32
    %25 = vector.broadcast %c0_i32_13 : i32 to vector<512x32xi32>
    %26 = arith.cmpi ne, %24, %25 : vector<512x32xi32>
    %c0_i32_14 = arith.constant 0 : i32
    %27 = vector.broadcast %c0_i32_14 : i32 to vector<512x32xi32>
    %28 = arith.cmpi slt, %24, %27 : vector<512x32xi32>
    %c0_i32_15 = arith.constant 0 : i32
    %29 = arith.cmpi slt, %22, %c0_i32_15 : i32
    %30 = vector.broadcast %29 : i1 to vector<512x32xi1>
    %31 = vector.broadcast %30 : vector<512x32xi1> to vector<512x32xi1>
    %32 = arith.xori %28, %31 : vector<512x32xi1>
    %33 = arith.andi %32, %26 : vector<512x32xi1>
    %34 = vector.broadcast %22 : i32 to vector<512x32xi32>
    %35 = arith.addi %24, %34 : vector<512x32xi32>
    %36 = arith.select %33, %35, %24 : vector<512x32xi1>, vector<512x32xi32>
    %37 = arith.cmpi eq, %36, %20 : vector<512x32xi32>
    %38 = arith.extui %37 : vector<512x32xi1> to vector<512x32xi32>
    %39 = arith.sitofp %38 : vector<512x32xi32> to vector<512x32xf32>
    %cst_16 = arith.constant dense<0.000000e+00> : vector<2x32xf32>
    %40 = tpu.matmul %18, %39, %cst_16 {dimension_numbers = #tpu.dot_dimension_numbers<[1], [0], [0], [1], [0, 0, 1, 1], [], []>} : vector<2x512xf32>, vector<512x32xf32>, vector<2x32xf32> -> vector<2x32xf32>
    %41 = vector.extract_strided_slice %40 {offsets = [0, 0], sizes = [1, 32], strides = [1, 1]} : vector<2x32xf32> to vector<1x32xf32>
    %cst_17 = arith.constant 3.200000e+01 : f32
    %42 = vector.broadcast %cst_17 : f32 to vector<1x32xf32>
    %43 = arith.divf %41, %42 : vector<1x32xf32>
    %44 = vector.extract_strided_slice %40 {offsets = [1, 0], sizes = [1, 32], strides = [1, 1]} : vector<2x32xf32> to vector<1x32xf32>
    %cst_18 = arith.constant 3.200000e+01 : f32
    %45 = vector.broadcast %cst_18 : f32 to vector<1x32xf32>
    %46 = arith.divf %44, %45 : vector<1x32xf32>
    %47 = arith.mulf %43, %43 : vector<1x32xf32>
    %48 = arith.subf %46, %47 : vector<1x32xf32>
    %cst_19 = arith.constant 9.99999974E-6 : f32
    %49 = vector.broadcast %cst_19 : f32 to vector<1x32xf32>
    %50 = arith.addf %48, %49 : vector<1x32xf32>
    %51 = math.rsqrt %50 : vector<1x32xf32>
    %52 = arith.mulf %4, %51 : vector<1x32xf32>
    %53 = arith.mulf %43, %52 : vector<1x32xf32>
    %54 = arith.subf %5, %53 : vector<1x32xf32>
    %55 = tpu.concatenate %52, %54 in 0 : vector<1x32xf32>, vector<1x32xf32> -> vector<2x32xf32>
    %56 = tpu.iota {dimensions = array<i32: 0>} : vector<32x512xi32>
    %57 = tpu.iota {dimensions = array<i32: 1>} : vector<32x512xi32>
    %c32_i32_20 = arith.constant 32 : i32
    %c0_i32_21 = arith.constant 0 : i32
    %58 = arith.cmpi eq, %c32_i32_20, %c0_i32_21 : i32
    %c1_i32_22 = arith.constant 1 : i32
    %59 = arith.select %58, %c1_i32_22, %c32_i32_20 : i32
    %60 = vector.broadcast %59 : i32 to vector<32x512xi32>
    %61 = arith.remsi %57, %60 : vector<32x512xi32>
    %c0_i32_23 = arith.constant 0 : i32
    %62 = vector.broadcast %c0_i32_23 : i32 to vector<32x512xi32>
    %63 = arith.cmpi ne, %61, %62 : vector<32x512xi32>
    %c0_i32_24 = arith.constant 0 : i32
    %64 = vector.broadcast %c0_i32_24 : i32 to vector<32x512xi32>
    %65 = arith.cmpi slt, %61, %64 : vector<32x512xi32>
    %c0_i32_25 = arith.constant 0 : i32
    %66 = arith.cmpi slt, %59, %c0_i32_25 : i32
    %67 = vector.broadcast %66 : i1 to vector<32x512xi1>
    %68 = vector.broadcast %67 : vector<32x512xi1> to vector<32x512xi1>
    %69 = arith.xori %65, %68 : vector<32x512xi1>
    %70 = arith.andi %69, %63 : vector<32x512xi1>
    %71 = vector.broadcast %59 : i32 to vector<32x512xi32>
    %72 = arith.addi %61, %71 : vector<32x512xi32>
    %73 = arith.select %70, %72, %61 : vector<32x512xi1>, vector<32x512xi32>
    %74 = arith.cmpi eq, %73, %56 : vector<32x512xi32>
    %75 = arith.extui %74 : vector<32x512xi1> to vector<32x512xi32>
    %76 = arith.sitofp %75 : vector<32x512xi32> to vector<32x512xf32>
    %cst_26 = arith.constant dense<0.000000e+00> : vector<2x512xf32>
    %77 = tpu.matmul %55, %76, %cst_26 {dimension_numbers = #tpu.dot_dimension_numbers<[1], [0], [0], [1], [0, 0, 1, 1], [], []>} : vector<2x32xf32>, vector<32x512xf32>, vector<2x512xf32> -> vector<2x512xf32>
    %78 = vector.extract_strided_slice %77 {offsets = [0, 0], sizes = [1, 512], strides = [1, 1]} : vector<2x512xf32> to vector<1x512xf32>
    %79 = vector.broadcast %78 : vector<1x512xf32> to vector<2x512xf32>
    %80 = arith.mulf %12, %79 : vector<2x512xf32>
    %81 = vector.extract_strided_slice %77 {offsets = [1, 0], sizes = [1, 512], strides = [1, 1]} : vector<2x512xf32> to vector<1x512xf32>
    %82 = vector.broadcast %81 : vector<1x512xf32> to vector<2x512xf32>
    %83 = arith.addf %80, %82 : vector<2x512xf32>
    %cst_27 = arith.constant 0.000000e+00 : f32
    %84 = vector.broadcast %cst_27 : f32 to vector<2x512xf32>
    %85 = arith.maximumf %83, %84 : vector<2x512xf32>
    %c0_i32_28 = arith.constant 0 : i32
    %86 = tpu.memref_slice %arg8[%c0_i32_28] : memref<2x!tpu.dma_semaphore, #tpu.memory_space<semaphore_mem>> -> memref<1x!tpu.dma_semaphore, #tpu.memory_space<semaphore_mem>>
    %87 = tpu.memref_squeeze %86 : memref<1x!tpu.dma_semaphore, #tpu.memory_space<semaphore_mem>> -> memref<!tpu.dma_semaphore, #tpu.memory_space<semaphore_mem>>
    tpu.wait_dma2 semaphore(%87 : memref<!tpu.dma_semaphore, #tpu.memory_space<semaphore_mem>>) src(%arg3 : memref<512x1024xbf16, #tpu.memory_space<any>>) dst(%arg6 : memref<512x1024xbf16, #tpu.memory_space<vmem>>)
    %88 = arith.truncf %85 : vector<2x512xf32> to vector<2x512xbf16>
    %c0_29 = arith.constant 0 : index
    %c0_30 = arith.constant 0 : index
    %89 = vector.load %arg6[%c0_29, %c0_30] : memref<512x1024xbf16, #tpu.memory_space<vmem>>, vector<512x1024xbf16>
    %cst_31 = arith.constant dense<0.000000e+00> : vector<2x1024xf32>
    %90 = tpu.matmul %88, %89, %cst_31 {dimension_numbers = #tpu.dot_dimension_numbers<[1], [0], [0], [1], [0, 0, 1, 1], [], []>} : vector<2x512xbf16>, vector<512x1024xbf16>, vector<2x1024xf32> -> vector<2x1024xf32>
    %cst_32 = arith.constant dense<0.000000e+00> : vector<1024xf32>
    %91 = vector.multi_reduction <add>, %90, %cst_32 [0] : vector<2x1024xf32> to vector<1024xf32>
    %92 = vector.shape_cast %91 : vector<1024xf32> to vector<1x1024xf32>
    %93 = arith.mulf %90, %90 : vector<2x1024xf32>
    %cst_33 = arith.constant dense<0.000000e+00> : vector<1024xf32>
    %94 = vector.multi_reduction <add>, %93, %cst_33 [0] : vector<2x1024xf32> to vector<1024xf32>
    %95 = vector.shape_cast %94 : vector<1024xf32> to vector<1x1024xf32>
    %96 = tpu.concatenate %92, %95 in 0 : vector<1x1024xf32>, vector<1x1024xf32> -> vector<2x1024xf32>
    %97 = tpu.iota {dimensions = array<i32: 0>} : vector<1024x16xi32>
    %98 = tpu.iota {dimensions = array<i32: 1>} : vector<1024x16xi32>
    %c16_i32 = arith.constant 16 : i32
    %c0_i32_34 = arith.constant 0 : i32
    %99 = arith.cmpi eq, %c16_i32, %c0_i32_34 : i32
    %c1_i32_35 = arith.constant 1 : i32
    %100 = arith.select %99, %c1_i32_35, %c16_i32 : i32
    %101 = vector.broadcast %100 : i32 to vector<1024x16xi32>
    %102 = arith.remsi %97, %101 : vector<1024x16xi32>
    %c0_i32_36 = arith.constant 0 : i32
    %103 = vector.broadcast %c0_i32_36 : i32 to vector<1024x16xi32>
    %104 = arith.cmpi ne, %102, %103 : vector<1024x16xi32>
    %c0_i32_37 = arith.constant 0 : i32
    %105 = vector.broadcast %c0_i32_37 : i32 to vector<1024x16xi32>
    %106 = arith.cmpi slt, %102, %105 : vector<1024x16xi32>
    %c0_i32_38 = arith.constant 0 : i32
    %107 = arith.cmpi slt, %100, %c0_i32_38 : i32
    %108 = vector.broadcast %107 : i1 to vector<1024x16xi1>
    %109 = vector.broadcast %108 : vector<1024x16xi1> to vector<1024x16xi1>
    %110 = arith.xori %106, %109 : vector<1024x16xi1>
    %111 = arith.andi %110, %104 : vector<1024x16xi1>
    %112 = vector.broadcast %100 : i32 to vector<1024x16xi32>
    %113 = arith.addi %102, %112 : vector<1024x16xi32>
    %114 = arith.select %111, %113, %102 : vector<1024x16xi1>, vector<1024x16xi32>
    %115 = arith.cmpi eq, %114, %98 : vector<1024x16xi32>
    %116 = arith.extui %115 : vector<1024x16xi1> to vector<1024x16xi32>
    %117 = arith.sitofp %116 : vector<1024x16xi32> to vector<1024x16xf32>
    %cst_39 = arith.constant dense<0.000000e+00> : vector<2x16xf32>
    %118 = tpu.matmul %96, %117, %cst_39 {dimension_numbers = #tpu.dot_dimension_numbers<[1], [0], [0], [1], [0, 0, 1, 1], [], []>} : vector<2x1024xf32>, vector<1024x16xf32>, vector<2x16xf32> -> vector<2x16xf32>
    %119 = vector.extract_strided_slice %118 {offsets = [0, 0], sizes = [1, 16], strides = [1, 1]} : vector<2x16xf32> to vector<1x16xf32>
    %cst_40 = arith.constant 1.280000e+02 : f32
    %120 = vector.broadcast %cst_40 : f32 to vector<1x16xf32>
    %121 = arith.divf %119, %120 : vector<1x16xf32>
    %122 = vector.extract_strided_slice %118 {offsets = [1, 0], sizes = [1, 16], strides = [1, 1]} : vector<2x16xf32> to vector<1x16xf32>
    %cst_41 = arith.constant 1.280000e+02 : f32
    %123 = vector.broadcast %cst_41 : f32 to vector<1x16xf32>
    %124 = arith.divf %122, %123 : vector<1x16xf32>
    %125 = arith.mulf %121, %121 : vector<1x16xf32>
    %126 = arith.subf %124, %125 : vector<1x16xf32>
    %cst_42 = arith.constant 9.99999974E-6 : f32
    %127 = vector.broadcast %cst_42 : f32 to vector<1x16xf32>
    %128 = arith.addf %126, %127 : vector<1x16xf32>
    %129 = math.rsqrt %128 : vector<1x16xf32>
    %130 = arith.mulf %6, %129 : vector<1x16xf32>
    %131 = arith.mulf %121, %130 : vector<1x16xf32>
    %132 = arith.subf %7, %131 : vector<1x16xf32>
    %133 = tpu.concatenate %130, %132 in 0 : vector<1x16xf32>, vector<1x16xf32> -> vector<2x16xf32>
    %134 = tpu.iota {dimensions = array<i32: 0>} : vector<16x1024xi32>
    %135 = tpu.iota {dimensions = array<i32: 1>} : vector<16x1024xi32>
    %c16_i32_43 = arith.constant 16 : i32
    %c0_i32_44 = arith.constant 0 : i32
    %136 = arith.cmpi eq, %c16_i32_43, %c0_i32_44 : i32
    %c1_i32_45 = arith.constant 1 : i32
    %137 = arith.select %136, %c1_i32_45, %c16_i32_43 : i32
    %138 = vector.broadcast %137 : i32 to vector<16x1024xi32>
    %139 = arith.remsi %135, %138 : vector<16x1024xi32>
    %c0_i32_46 = arith.constant 0 : i32
    %140 = vector.broadcast %c0_i32_46 : i32 to vector<16x1024xi32>
    %141 = arith.cmpi ne, %139, %140 : vector<16x1024xi32>
    %c0_i32_47 = arith.constant 0 : i32
    %142 = vector.broadcast %c0_i32_47 : i32 to vector<16x1024xi32>
    %143 = arith.cmpi slt, %139, %142 : vector<16x1024xi32>
    %c0_i32_48 = arith.constant 0 : i32
    %144 = arith.cmpi slt, %137, %c0_i32_48 : i32
    %145 = vector.broadcast %144 : i1 to vector<16x1024xi1>
    %146 = vector.broadcast %145 : vector<16x1024xi1> to vector<16x1024xi1>
    %147 = arith.xori %143, %146 : vector<16x1024xi1>
    %148 = arith.andi %147, %141 : vector<16x1024xi1>
    %149 = vector.broadcast %137 : i32 to vector<16x1024xi32>
    %150 = arith.addi %139, %149 : vector<16x1024xi32>
    %151 = arith.select %148, %150, %139 : vector<16x1024xi1>, vector<16x1024xi32>
    %152 = arith.cmpi eq, %151, %134 : vector<16x1024xi32>
    %153 = arith.extui %152 : vector<16x1024xi1> to vector<16x1024xi32>
    %154 = arith.sitofp %153 : vector<16x1024xi32> to vector<16x1024xf32>
    %cst_49 = arith.constant dense<0.000000e+00> : vector<2x1024xf32>
    %155 = tpu.matmul %133, %154, %cst_49 {dimension_numbers = #tpu.dot_dimension_numbers<[1], [0], [0], [1], [0, 0, 1, 1], [], []>} : vector<2x16xf32>, vector<16x1024xf32>, vector<2x1024xf32> -> vector<2x1024xf32>
    %156 = vector.extract_strided_slice %155 {offsets = [0, 0], sizes = [1, 1024], strides = [1, 1]} : vector<2x1024xf32> to vector<1x1024xf32>
    %157 = vector.broadcast %156 : vector<1x1024xf32> to vector<2x1024xf32>
    %158 = arith.mulf %90, %157 : vector<2x1024xf32>
    %159 = vector.extract_strided_slice %155 {offsets = [1, 0], sizes = [1, 1024], strides = [1, 1]} : vector<2x1024xf32> to vector<1x1024xf32>
    %160 = vector.broadcast %159 : vector<1x1024xf32> to vector<2x1024xf32>
    %161 = arith.addf %158, %160 : vector<2x1024xf32>
    %cst_50 = arith.constant 0.000000e+00 : f32
    %162 = vector.broadcast %cst_50 : f32 to vector<2x1024xf32>
    %163 = arith.maximumf %161, %162 : vector<2x1024xf32>
    %c1_i32_51 = arith.constant 1 : i32
    %164 = tpu.memref_slice %arg8[%c1_i32_51] : memref<2x!tpu.dma_semaphore, #tpu.memory_space<semaphore_mem>> -> memref<1x!tpu.dma_semaphore, #tpu.memory_space<semaphore_mem>>
    %165 = tpu.memref_squeeze %164 : memref<1x!tpu.dma_semaphore, #tpu.memory_space<semaphore_mem>> -> memref<!tpu.dma_semaphore, #tpu.memory_space<semaphore_mem>>
    tpu.wait_dma2 semaphore(%165 : memref<!tpu.dma_semaphore, #tpu.memory_space<semaphore_mem>>) src(%arg4 : memref<1024x768xbf16, #tpu.memory_space<any>>) dst(%arg7 : memref<1024x768xbf16, #tpu.memory_space<vmem>>)
    %166 = arith.truncf %163 : vector<2x1024xf32> to vector<2x1024xbf16>
    %c0_52 = arith.constant 0 : index
    %c0_53 = arith.constant 0 : index
    %167 = vector.load %arg7[%c0_52, %c0_53] : memref<1024x768xbf16, #tpu.memory_space<vmem>>, vector<1024x768xbf16>
    %cst_54 = arith.constant dense<0.000000e+00> : vector<2x768xf32>
    %168 = tpu.matmul %166, %167, %cst_54 {dimension_numbers = #tpu.dot_dimension_numbers<[1], [0], [0], [1], [0, 0, 1, 1], [], []>} : vector<2x1024xbf16>, vector<1024x768xbf16>, vector<2x768xf32> -> vector<2x768xf32>
    %169 = vector.broadcast %8 : vector<1x768xf32> to vector<2x768xf32>
    %170 = arith.addf %168, %169 : vector<2x768xf32>
    %171 = math.tanh %170 : vector<2x768xf32>
    %c0_55 = arith.constant 0 : index
    %c0_56 = arith.constant 0 : index
    %172 = vector.load %arg5[%c0_55, %c0_56] : memref<2x768xf32, #tpu.memory_space<vmem>>, vector<2x768xf32>
    tpu.vector_store %arg5[%c0_55, %c0_56], %171 {strides = array<i32>} : memref<2x768xf32, #tpu.memory_space<vmem>>, vector<2x768xf32>,
    return
  }
}

</mosaic_0001>

<bundles_post_ra>
// kernel: dcgan_generator_forward.1
= control target key start
LH: loop header
LB: loop body
LE: loop exit
PB: predicated region body
PF: predicated region fallthrough
CT: control target
= control target key end

     0   :  { %10 = vsyncpa [#allocation6], 0  ;;  %s9369_s0 = inlined_call_operand.hbm [shape: f32[2,16], index: 0, kind: input, shape index: {}]   ;;  %s9370_s1 = inlined_call_operand.hbm [shape: f32[1,1280], index: 1, kind: input, shape index: {}]   ;;  %s9371_s2 = inlined_call_operand.hbm [shape: bf16[16,512], index: 2, kind: input, shape index: {}]   ;;  %s9372_s3 = inlined_call_operand.hbm [shape: bf16[512,1024], index: 3, kind: input, shape index: {}]   ;;  %s9373_s4 = inlined_call_operand.hbm [shape: bf16[1024,768], index: 4, kind: input, shape index: {}]   ;;  %s9374_s5 = inlined_call_operand.vmem [shape: f32[2,768], index: 5, kind: output, shape index: {}]  }
   0x1   :  { %11 = vsyncpa [#allocation8], 0  ;;  %s7402_s18 = smov [#allocation7]   ;;  %s7403_s20 = smov [#allocation5]  }
   0x2   :  { %s28_s19 = sshll.u32 %s7402_s18, 4  ;;  %s18_s21 = sshll.u32 %s7403_s20, 4  ;;  %s29_s19 = int_to_ptr.vmem [resolvable:$true] %s28_s19  ;;  %s19_s21 = int_to_ptr.vmem [resolvable:$true] %s18_s21 }
   0x3   :  { %s7328_s24 = scalar_lea.hbm %s9370_s1, 160 }
   0x4   :  { %p7329_p0 = scmp.ne.s32.totalorder %s9370_s1, %s7328_s24  ;;  %p7332_p1 = scmp.lt.u32.totalorder %s7328_s24, %s9370_s1 }
   0x6   :  { %p7334_p2 = pnand %p7332_p1, %p7329_p0 }
   0x8   :  { %7337 = shalt.err (!%p7334_p2)
}
   0x9   :  { %s7338_s29 = scalar_lea.vmem %s29_s19, 160  ;;  %p7343_p4 = scmp.lt.s32.totalorder %s29_s19, %s29_s19 }
   0xa   :  { %p7339_p3 = scmp.ne.s32.totalorder %s29_s19, %s7338_s29  ;;  %p7344_p5 = scmp.lt.s32.totalorder %s7338_s29, %s7338_s29 }
   0xc   :  { %p7345_p6 = por %p7344_p5, %p7343_p4 }
   0xe   :  { %p7346_p7 = pnand %p7345_p6, %p7339_p3 }
  0x10   :  { %7349 = shalt.err (!%p7346_p7)
}
  0x11   :  { %31 = dma.hbm_to_vmem [thread:$0]  %s9370_s1, 160, %s29_s19, [#allocation8]  }
  0x12   :  { %s7350_s9 = scalar_lea.hbm %s9369_s0, 32 }
  0x13   :  { %p7351_p8 = scmp.ne.s32.totalorder %s9369_s0, %s7350_s9  ;;  %p7354_p9 = scmp.lt.u32.totalorder %s7350_s9, %s9369_s0 }
  0x15   :  { %p7356_p10 = pnand %p7354_p9, %p7351_p8 }
  0x17   :  { %7359 = shalt.err (!%p7356_p10)
}
  0x18   :  { %s7360_s14 = scalar_lea.vmem %s19_s21, 32  ;;  %p7365_p12 = scmp.lt.s32.totalorder %s19_s21, %s19_s21 }
  0x19   :  { %p7361_p11 = scmp.ne.s32.totalorder %s19_s21, %s7360_s14  ;;  %p7366_p13 = scmp.lt.s32.totalorder %s7360_s14, %s7360_s14 }
  0x1b   :  { %p7367_p0 = por %p7366_p13, %p7365_p12 }
  0x1d   :  { %p7368_p1 = pnand %p7367_p0, %p7361_p11 }
  0x1f   :  { %7371 = shalt.err (!%p7368_p1)
}
  0x20   :  { %21 = dma.hbm_to_vmem [thread:$0]  %s9369_s0, 32, %s19_s21, [#allocation6]  }
  0x21   :  { %s7404_s16 = smov [#allocation9]   ;;  %s7372_s20 = scalar_lea.hbm %s9371_s2, 512 }
  0x22   :  { %s37_s17 = sshll.u32 %s7404_s16, 4  ;;  %p7373_p2 = scmp.ne.s32.totalorder %s9371_s2, %s7372_s20  ;;  %s38_s17 = int_to_ptr.vmem [resolvable:$true] %s37_s17 }
  0x23   :  { %p7376_p3 = scmp.lt.u32.totalorder %s7372_s20, %s9371_s2 }
  0x25   :  { %p7378_p4 = pnand %p7376_p3, %p7373_p2 }
  0x27   :  { %7381 = shalt.err (!%p7378_p4)
}
  0x28   :  { %s7382_s26 = scalar_lea.vmem %s38_s17, 512  ;;  %p7387_p6 = scmp.lt.s32.totalorder %s38_s17, %s38_s17 }
  0x29   :  { %p7383_p5 = scmp.ne.s32.totalorder %s38_s17, %s7382_s26  ;;  %p7388_p7 = scmp.lt.s32.totalorder %s7382_s26, %s7382_s26 }
  0x2b   :  { %p7389_p8 = por %p7388_p7, %p7387_p6 }
  0x2d   :  { %p7390_p9 = pnand %p7389_p8, %p7383_p5 }
  0x2f   :  { %7393 = shalt.err (!%p7390_p9)
}
  0x30   :  { %s7405_s0 = smov 256   ;;  %s7406_s21 = smov 16  }
  0x31   :  { %43 = dma.hbm_to_vmem [thread:$0]  %s9371_s2, 512, %s38_s17, [#allocation8], %s7405_s0, %s7405_s0, %s7406_s21  }
  0x32   :  { %7394 = dma.done.wait [#allocation6], 32  }
  0x33   :  { %7395 = vsyncadd [#allocation6], 4294967264 }
  0x34   :  { %7396 = dma.done.wait [#allocation8], 672  }
  0x35   :  { %7397 = vsyncadd [#allocation8], 4294966624  ;;  %s58_s29 = sld [smem:[#allocation0]]   ;;  %s7407_s30 = smov 1024   ;;  %v7408_v0 = vmov 0   ;;  %v307_v1 = vlaneseq  ;;  %v9455_v57 = vmov 0 }
  0x36   :  { %70 = sst [smem:[#allocation11]] %s7407_s30  ;;  %191 = vmatprep.mubr.bf16.mxu0 %v7408_v0  ;;  %232 = vmatprep.mubr.bf16.mxu1 %v7408_v0  ;;  %s7409_s6 = smov 8   ;;  %v9457_v58 = vmov 0 }
  0x37   :  { %72 = sst [smem:[#allocation11 + $0x1]] %s7407_s30  ;;  %s7410_s7 = smov 512   ;;  %v7503_v2 = vshrl.u32 %v307_v1, 7  ;;  %v7527_v9 = vand.u32 127, %v307_v1 }
  0x38   :  { %74 = sst [smem:[#allocation11 + $0x2]] %s7409_s6  ;;  %s7411_s8 = smov [#allocation2]  }
  0x39   :  { %82 = sst [smem:[#allocation11 + $0x6]] %s7410_s7  ;;  %s66_s9 = sshll.u32 %s7411_s8, 4  ;;  %v7508_v3 = vadd.s32 128, %v7503_v2  ;;  %v7512_v4 = vadd.s32 136, %v7503_v2  ;;  %v7515_v5 = vadd.s32 384, %v7503_v2  ;;  %v7518_v6 = vadd.s32 392, %v7503_v2  ;;  %s67_s9 = int_to_ptr.vmem [resolvable:$true] %s66_s9 }
  0x3a   :  { %s7412_s10 = smov 64   ;;  %s7413_s11 = smov 128   ;;  %v7522_v7 = vadd.s32 8, %v7503_v2  ;;  %v7525_v8 = vadd.s32 256, %v7503_v2  ;;  %v7531_v11 = vadd.s32 264, %v7503_v2  ;;  %v378_v15 = vand.u32 31, %v7503_v2 }
  0x3b   :  { %76 = sst [smem:[#allocation11 + $0x3]] %s7412_s10  ;;  %s6321_s2 = sshll.u32 %s58_s29, 26  ;;  %v490_v10 = vand.u32 31, %v7508_v3  ;;  %v497_v12 = vand.u32 31, %v7512_v4  ;;  %v714_v13 = vand.u32 31, %v7515_v5  ;;  %v721_v14 = vand.u32 31, %v7518_v6 }
  0x3c   :  { %78 = sst [smem:[#allocation11 + $0x4]] %s7413_s11  ;;  %s7495_s12 = sadd.s32 134217728, %s6321_s2  ;;  %v7540_v16 = vadd.s32 144, %v7503_v2  ;;  %v7543_v17 = vadd.s32 152, %v7503_v2  ;;  %v7546_v18 = vadd.s32 400, %v7503_v2  ;;  %v7549_v19 = vadd.s32 408, %v7503_v2 }
  0x3d   :  { %s7414_s13 = smov 2   ;;  %84 = sst [smem:[#allocation11 + $0x7]] %s7412_s10  ;;  %v385_v20 = vand.u32 31, %v7522_v7  ;;  %v602_v21 = vand.u32 31, %v7525_v8  ;;  %v7558_v22 = vadd.s32 16, %v7503_v2  ;;  %v7561_v23 = vadd.s32 24, %v7503_v2 }
  0x3e   :  { %80 = sst [smem:[#allocation11 + $0x5]] %s7414_s13  ;;  %s7415_s14 = smov 4   ;;  %vm7564_vm0 = vcmp.eq.s32.totalorder %v490_v10, %v7527_v9  ;;  %v609_v25 = vand.u32 31, %v7531_v11  ;;  %v7570_v26 = vadd.s32 272, %v7503_v2  ;;  %v7573_v27 = vadd.s32 280, %v7503_v2 }
  0x3f   :  { %86 = sst [smem:[#allocation11 + $0x8]] %s7415_s14  ;;  %s7416_s1 = smov [#allocation4]   ;;  %vm7576_vm1 = vcmp.eq.s32.totalorder %v497_v12, %v7527_v9  ;;  %vm7581_vm2 = vcmp.eq.s32.totalorder %v714_v13, %v7527_v9  ;;  %vm7586_vm3 = vcmp.eq.s32.totalorder %v721_v14, %v7527_v9  ;;  %v7591_v31 = vadd.s32 160, %v7503_v2 }
  0x40   :  { %s7417_s15 = smov [#allocation10]   ;;  %s7418_s18 = smov 768   ;;  %v504_v32 = vand.u32 31, %v7540_v16  ;;  %v511_v33 = vand.u32 31, %v7543_v17  ;;  %v728_v34 = vand.u32 31, %v7546_v18  ;;  %v735_v35 = vand.u32 31, %v7549_v19  ;;  %vm6998_vm5 = vmpackc.low %vm7576_vm1, %vm7564_vm0 }
  0x41   :  { %88 = dma.general %s9372_s3, 32768, %s67_s9, %s7416_s1, %s7417_s15, [#allocation11], %s7495_s12, 0   ;;  %v392_v36 = vand.u32 31, %v7558_v22  ;;  %v399_v37 = vand.u32 31, %v7561_v23  ;;  %v7600_v38 = vadd.s32 168, %v7503_v2  ;;  %v7603_v39 = vadd.s32 416, %v7503_v2  ;;  %vm9473_vm4 = vmpackc.low %vm7586_vm3, %vm7581_vm2 }
  0x42   :  { %105 = sst [smem:[#allocation13]] %s7418_s18  ;;  %s7419_s19 = smov 6   ;;  %9428 = vst [vmem:[#allocation18_spill] sm:$0xff] %v7515_v5  ;;  %9429 = vst [vmem:[#allocation19_spill] sm:$0xff] %v7518_v6  ;;  %v616_v40 = vand.u32 31, %v7570_v26  ;;  %v623_v41 = vand.u32 31, %v7573_v27  ;;  %vm7638_vm7 = vcmp.eq.s32.totalorder %v378_v15, %v7527_v9  ;;  %vm7643_vm8 = vcmp.eq.s32.totalorder %v385_v20, %v7527_v9 }
  0x43   :  { %107 = sst [smem:[#allocation13 + $0x1]] %s7418_s18  ;;  %s7420_s20 = smov [#allocation3]   ;;  %9430 = vst [vmem:[#allocation20_spill] sm:$0xff] %v7525_v8  ;;  %9431 = vst [vmem:[#allocation21_spill] sm:$0xff] %v7531_v11  ;;  %v7612_v42 = vadd.s32 424, %v7503_v2  ;;  %v7615_v43 = vadd.s32 32, %v7503_v2  ;;  %vm7650_vm9 = vcmp.eq.s32.totalorder %v602_v21, %v7527_v9  ;;  %vm7655_vm10 = vcmp.eq.s32.totalorder %v609_v25, %v7527_v9 }
  0x44   :  { %109 = sst [smem:[#allocation13 + $0x2]] %s7419_s19  ;;  %s7505_s22 = sshll.u32 %s7420_s20, 4  ;;  %9432 = vst [vmem:[#allocation22_spill] sm:$0xff] %v7546_v18  ;;  %9433 = vst [vmem:[#allocation23_spill] sm:$0xff] %v7549_v19  ;;  %v518_v44 = vand.u32 31, %v7591_v31  ;;  %v7623_v45 = vadd.s32 40, %v7503_v2  ;;  %vm7666_vm11 = vcmp.eq.s32.totalorder %v504_v32, %v7527_v9  ;;  %vm7671_vm12 = vcmp.eq.s32.totalorder %v511_v33, %v7527_v9  ;;  %s102_s22 = int_to_ptr.vmem [resolvable:$true] %s7505_s22 }
  0x45   :  { %111 = sst [smem:[#allocation13 + $0x3]] %s7412_s10  ;;  %s7421_s3 = smov 384   ;;  %v7626_v46 = vadd.s32 288, %v7503_v2  ;;  %v7629_v47 = vadd.s32 296, %v7503_v2  ;;  %v525_v54 = vand.u32 31, %v7600_v38  ;;  %v742_v55 = vand.u32 31, %v7603_v39 }
  0x46   :  { %113 = sst [smem:[#allocation13 + $0x4]] %s7413_s11  ;;  %s7422_s23 = smov [#allocation4 + $0x1]   ;;  %v9456_v57 = vsel %vm7650_vm9, 4294967295, %v9455_v57  ;;  %v9458_v58 = vsel %vm7655_vm10, 4294967295, %v9457_v58  ;;  %v7660_v59 = vadd.s32 176, %v7503_v2  ;;  %v7663_v60 = vadd.s32 184, %v7503_v2 }
  0x47   :  { %115 = sst [smem:[#allocation13 + $0x5]] %s7414_s13  ;;  %s7423_s24 = smov [#allocation12]   ;;  %vm7676_vm13 = vcmp.eq.s32.totalorder %v728_v34, %v7527_v9  ;;  %vm7681_vm14 = vcmp.eq.s32.totalorder %v735_v35, %v7527_v9  ;;  %v749_v14 = vand.u32 31, %v7612_v42  ;;  %v7691_v15 = vadd.s32 432, %v7503_v2 }
  0x48   :  { %117 = sst [smem:[#allocation13 + $0x6]] %s7421_s3  ;;  %v7694_v20 = vadd.s32 440, %v7503_v2  ;;  %vm7701_vm6 = vcmp.eq.s32.totalorder %v392_v36, %v7527_v9  ;;  %v9469_v21 = vmov 0  ;;  %vm7706_vm15 = vcmp.eq.s32.totalorder %v399_v37, %v7527_v9 }
  0x49   :  { %119 = sst [smem:[#allocation13 + $0x7]] %s7412_s10  ;;  %v9470_v21 = vsel %vm7701_vm6, 4294967295, %v9469_v21  ;;  %v9471_v25 = vmov 0  ;;  %v406_v32 = vand.u32 31, %v7615_v43  ;;  %v413_v33 = vand.u32 31, %v7623_v45 }
  0x4a   :  { %121 = sst [smem:[#allocation13 + $0x8]] %s7415_s14  ;;  %v9472_v25 = vsel %vm7706_vm15, 4294967295, %v9471_v25  ;;  %v9383_v34 = vmov 1.0|1.0   ;;  %vm7729_vm10 = vcmp.eq.s32.totalorder %v616_v40, %v7527_v9  ;;  %vm7734_vm0 = vcmp.eq.s32.totalorder %v623_v41, %v7527_v9 }
  0x4b   :  { %123 = dma.general %s9373_s4, 49152, %s102_s22, %s7422_s23, %s7423_s24, [#allocation13], %s7495_s12, 0   ;;  %v630_v28 = vand.u32 31, %v7626_v46  ;;  %v637_v29 = vand.u32 31, %v7629_v47  ;;  %vm7745_vm2 = vcmp.eq.s32.totalorder %v518_v44, %v7527_v9  ;;  %vm7750_vm3 = vcmp.eq.s32.totalorder %v525_v54, %v7527_v9  ;;  %vm7036_vm15 = vmpackc.low %vm7734_vm0, %vm7729_vm10 }
  0x4c   :  { %9436 = vst [vmem:[#allocation24_spill] sm:$0xff] %v7570_v26  ;;  %9437 = vst [vmem:[#allocation25_spill] sm:$0xff] %v7573_v27  ;;  %v7631_v48 = vld [vmem:[#allocation7 + $0x2] sm:$0x1]  ;;  %v7633_v49 = vld [vmem:[#allocation7 + $0x3] sm:$0x1]  ;;  %vm7763_vm9 = vcmp.eq.s32.totalorder %v742_v55, %v7527_v9  ;;  %vm9490_vm1 = vnez %v9456_v57 }
  0x4d   :  { %9444 = vst [vmem:[#allocation26_spill] sm:$0xff] %v7603_v39  ;;  %9445 = vst [vmem:[#allocation27_spill] sm:$0xff] %v7612_v42  ;;  %v7635_v50 = vld [vmem:[#allocation7 + $0x4] sm:$0x3f]  ;;  %v7306_v51 = vld [vmem:[#allocation9 + $0x4] ss:$16 sps:$4 sm:$0xff]  }
  0x4e   :  { %9446 = vst [vmem:[#allocation28_spill] sm:$0xff] %v7626_v46  ;;  %9447 = vst [vmem:[#allocation29_spill] sm:$0xff] %v7629_v47  ;;  %v7308_v56 = vld [vmem:[#allocation9 + $0xc] ss:$16 sps:$4 sm:$0xff]   ;;  %159 = vmatprep.subr.bf16.mxu0 %v7306_v51  ;;  %v7310_v61 = vld [vmem:[#allocation9] ss:$16 sps:$4 sm:$0xff]  }
  0x4f   :  { %9448 = vst [vmem:[#allocation30_spill] sm:$0xff] %v7631_v48  ;;  %9449 = vst [vmem:[#allocation31_spill] sm:$0xff] %v7633_v49  ;;  %v7311_v62 = vld [vmem:[#allocation9 + $0x8] ss:$16 sps:$4 sm:$0xff]   ;;  %v129_v63 = vld [vmem:[#allocation5] sm:$0x3]  ;;  %200 = vmatprep.subr.bf16.mxu1 %v7308_v56  ;;  %160 = vmatpush1.bf16.msra.mxu0 %v7310_v61 }
  0x50   :  { %9450 = vst [vmem:[#allocation32_spill] sm:$0xff] %v7635_v50  ;;  %v130_v13 = vpack.c.bf16 %v129_v63, %v129_v63  ;;  %9467 = vst [vmem:[#allocation33_spill] sm:$0xff] %v7691_v15  ;;  %201 = vmatpush1.bf16.msra.mxu1 %v7311_v62  ;;  %6999 = vmatprep.subr.msk.bf16.mxu0 %vm6998_vm5, %v9383_v34  ;;  %v9480_v36 = vmov 0  ;;  %v532_v37 = vand.u32 31, %v7660_v59  ;;  %v539_v40 = vand.u32 31, %v7663_v60 }
  0x51   :  { %9468 = vst [vmem:[#allocation34_spill] sm:$0xff] %v7694_v20  ;;  %7031 = vmatprep.subr.msk.bf16.mxu1 %vm9473_vm4, %v9383_v34  ;;  %v9481_v36 = vsel %vm7750_vm3, 4294967295, %v9480_v36  ;;  %vm9482_vm4 = vcmask 130048   ;;  %vm7768_vm3 = vcmp.eq.s32.totalorder %v749_v14, %v7527_v9  ;;  %v9486_v44 = vmov 0 }
  0x52   :  { %6329 = vmatmul.mubr.msk.bf16.vlgmr.msra.gmra.mrb[0].mxu0 %vm9482_vm4, %v130_v13  ;;  %vm9483_vm5 = vmmov %vm9482_vm4  ;;  %v9487_v44 = vsel %vm7768_vm3, 4294967295, %v9486_v44  ;;  %v756_v51 = vand.u32 31, %v7691_v15  ;;  %v763_v54 = vand.u32 31, %v7694_v20  ;;  %vm7791_vm3 = vcmp.eq.s32.totalorder %v406_v32, %v7527_v9 }
  0x53   :  { %6330 = vmatmul.mubr.msk.bf16.vlgmr.msra.gmra.mrb[0].mxu1 %vm9483_vm5, %v130_v13  ;;  %vm9488_vm4 = vmpackc.low %vm7643_vm8, %vm7638_vm7  ;;  %vm9489_vm5 = vnez %v9458_v58  ;;  %vm7796_vm7 = vcmp.eq.s32.totalorder %v413_v33, %v7527_v9  ;;  %vm9498_vm10 = vnez %v9481_v36  ;;  %v9501_v56 = vmov 0 }
  0x54   :  { %7001 = vmatpush3.bf16.msk.msra.mxu0 %vm9488_vm4, %v9383_v34  ;;  %vm9491_vm6 = vmpackc.low %vm9489_vm5, %vm9490_vm1  ;;  %vm7817_vm1 = vcmp.eq.s32.totalorder %v630_v28, %v7527_v9  ;;  %vm1165_vm4 = vcmp.eq.s32.totalorder %v539_v40, %v7527_v9  ;;  %vm1196_vm5 = vcmp.eq.s32.totalorder %v756_v51, %v7527_v9  ;;  %v7856_v57 = vadd.s32 48, %v7503_v2 }
  0x55   :  { %7033 = vmatpush3.bf16.msk.msra.mxu1 %vm9491_vm6, %v9383_v34  ;;  %vm9496_vm6 = vmpackc.low %vm7671_vm12, %vm7666_vm11  ;;  %vm7822_vm11 = vcmp.eq.s32.totalorder %v637_v29, %v7527_v9  ;;  %vm9503_vm12 = vnez %v9487_v44  ;;  %v7859_v58 = vadd.s32 56, %v7503_v2  ;;  %v7862_v61 = vadd.s32 304, %v7503_v2 }
  0x56   :  { %7003 = vmatprep.subr.msk.bf16.mxu0 %vm9496_vm6, %v9383_v34  ;;  %vm9497_vm8 = vmpackc.low %vm7681_vm14, %vm7676_vm13  ;;  %v9502_v56 = vsel %vm7822_vm11, 4294967295, %v9501_v56  ;;  %vm1164_vm14 = vcmp.eq.s32.totalorder %v532_v37, %v7527_v9  ;;  %vm1197_vm6 = vcmp.eq.s32.totalorder %v763_v54, %v7527_v9  ;;  %v7865_v62 = vadd.s32 312, %v7503_v2 }
  0x57   :  { %7035 = vmatprep.subr.msk.bf16.mxu1 %vm9497_vm8, %v9383_v34  ;;  %vm7006_vm0 = vmpackc.low %vm9498_vm10, %vm7745_vm2  ;;  %vm9504_vm8 = vnez %v9472_v25  ;;  %vm9505_vm10 = vnez %v9470_v21  ;;  %9508 = vst [vmem:[#allocation35_spill] sm:$0xff] %v7862_v61  ;;  %v420_v63 = vand.u32 31, %v7856_v57  ;;  %v427_v0 = vand.u32 31, %v7859_v58 }
  0x58   :  { %vm7038_vm13 = vmpackc.low %vm9503_vm12, %vm7763_vm9  ;;  %vm9507_vm9 = vnez %v9502_v56  ;;  %9509 = vst [vmem:[#allocation36_spill] sm:$0xff] %v7865_v62  ;;  %v644_v1 = vand.u32 31, %v7862_v61  ;;  %v651_v10 = vand.u32 31, %v7865_v62  ;;  %v7878_v12 = vadd.s32 192, %v7503_v2 }
  0x59   :  { %vm7008_vm2 = vmpackc.low %vm7796_vm7, %vm7791_vm3  ;;  %7037 = vmatpush3.bf16.msk.msra.mxu1 %vm7036_vm15, %v9383_v34  ;;  %vm1148_vm15 = vcmp.eq.s32.totalorder %v420_v63, %v7527_v9  ;;  %v7881_v13 = vadd.s32 200, %v7503_v2  ;;  %v7884_v14 = vadd.s32 448, %v7503_v2  ;;  %v7887_v21 = vadd.s32 456, %v7503_v2 }
  0x5a   :  { %vm9506_vm11 = vmpackc.low %vm9504_vm8, %vm9505_vm10  ;;  %7039 = vmatprep.subr.msk.bf16.mxu1 %vm7038_vm13, %v9383_v34  ;;  %v7890_v25 = vadd.s32 64, %v7503_v2  ;;  %v7893_v32 = vadd.s32 72, %v7503_v2  ;;  %v7896_v33 = vadd.s32 320, %v7503_v2  ;;  %v7899_v35 = vadd.s32 328, %v7503_v2 }
  0x5b   :  { %7005 = vmatpush3.bf16.msk.msra.mxu0 %vm9506_vm11, %v9383_v34  ;;  %vm7040_vm12 = vmpackc.low %vm9507_vm9, %vm7817_vm1  ;;  %vm1180_vm1 = vcmp.eq.s32.totalorder %v644_v1, %v7527_v9  ;;  %vm1181_vm11 = vcmp.eq.s32.totalorder %v651_v10, %v7527_v9  ;;  %9510 = vst [vmem:[#allocation37_spill] sm:$0xff] %v7884_v14  ;;  %v546_v24 = vand.u32 31, %v7878_v12  ;;  %v553_v28 = vand.u32 31, %v7881_v13 }
  0x5c   :  { %7007 = vmatprep.subr.msk.bf16.mxu0 %vm7006_vm0, %v9383_v34  ;;  %vm7010_vm3 = vmpackc.low %vm1165_vm4, %vm1164_vm14  ;;  %vm1149_vm0 = vcmp.eq.s32.totalorder %v427_v0, %v7527_v9  ;;  %9511 = vst [vmem:[#allocation38_spill] sm:$0xff] %v7887_v21  ;;  %v770_v29 = vand.u32 31, %v7884_v14  ;;  %v777_v30 = vand.u32 31, %v7887_v21  ;;  %v434_v36 = vand.u32 31, %v7890_v25 }
  0x5d   :  { %vm7042_vm7 = vmpackc.low %vm1197_vm6, %vm1196_vm5  ;;  %7041 = vmatpush3.bf16.msk.msra.mxu1 %vm7040_vm12, %v9383_v34  ;;  %9512 = vst [vmem:[#allocation39_spill] sm:$0xff] %v7896_v33  ;;  %v441_v37 = vand.u32 31, %v7893_v32  ;;  %v658_v40 = vand.u32 31, %v7896_v33  ;;  %v665_v41 = vand.u32 31, %v7899_v35  ;;  %vm1166_vm4 = vcmp.eq.s32.totalorder %v546_v24, %v7527_v9 }
  0x5e   :  { %7043 = vmatprep.subr.msk.bf16.mxu1 %vm7042_vm7, %v9383_v34  ;;  %vm7012_vm13 = vmpackc.low %vm1149_vm0, %vm1148_vm15  ;;  %9513 = vst [vmem:[#allocation40_spill] sm:$0xff] %v7899_v35  ;;  %vm1198_vm5 = vcmp.eq.s32.totalorder %v770_v29, %v7527_v9  ;;  %vm1199_vm6 = vcmp.eq.s32.totalorder %v777_v30, %v7527_v9  ;;  %vm7914_vm10 = vcmp.eq.s32.totalorder %v434_v36, %v7527_v9  ;;  %v7935_v52 = vadd.s32 208, %v7503_v2 }
  0x5f   :  { %7009 = vmatpush3.bf16.msk.msra.mxu0 %vm7008_vm2, %v9383_v34  ;;  %vm7044_vm14 = vmpackc.low %vm1181_vm11, %vm1180_vm1  ;;  %vm1167_vm2 = vcmp.eq.s32.totalorder %v553_v28, %v7527_v9  ;;  %vm7919_vm9 = vcmp.eq.s32.totalorder %v441_v37, %v7527_v9  ;;  %vm7924_vm12 = vcmp.eq.s32.totalorder %v658_v40, %v7527_v9  ;;  %v7938_v53 = vadd.s32 216, %v7503_v2 }
  0x60   :  { %7011 = vmatprep.subr.msk.bf16.mxu0 %vm7010_vm3, %v9383_v34  ;;  %vm7014_vm8 = vmpackc.low %vm1167_vm2, %vm1166_vm4  ;;  %vm7929_vm3 = vcmp.eq.s32.totalorder %v665_v41, %v7527_v9  ;;  %v7941_v56 = vadd.s32 464, %v7503_v2  ;;  %v7944_v63 = vadd.s32 472, %v7503_v2  ;;  %v7952_v0 = vadd.s32 80, %v7503_v2 }
  0x61   :  { %7045 = vmatpush3.bf16.msk.msra.mxu1 %vm7044_vm14, %v9383_v34  ;;  %vm7046_vm7 = vmpackc.low %vm1199_vm6, %vm1198_vm5  ;;  %v7955_v1 = vadd.s32 88, %v7503_v2  ;;  %v7958_v10 = vadd.s32 336, %v7503_v2  ;;  %v7961_v24 = vadd.s32 344, %v7503_v2  ;;  %v560_v28 = vand.u32 31, %v7935_v52 }
  0x62   :  { %9522 = vst [vmem:[#allocation41_spill] sm:$0xff] %v7941_v56  ;;  %9523 = vst [vmem:[#allocation42_spill] sm:$0xff] %v7944_v63  ;;  %7047 = vmatprep.subr.msk.bf16.mxu1 %vm7046_vm7, %v9383_v34  ;;  %v567_v29 = vand.u32 31, %v7938_v53  ;;  %v784_v30 = vand.u32 31, %v7941_v56  ;;  %v791_v36 = vand.u32 31, %v7944_v63  ;;  %v448_v37 = vand.u32 31, %v7952_v0 }
  0x63   :  { %7013 = vmatpush3.bf16.msk.msra.mxu0 %vm7012_vm13, %v9383_v34  ;;  %vm7016_vm15 = vmpackc.low %vm7919_vm9, %vm7914_vm10  ;;  %9524 = vst [vmem:[#allocation43_spill] sm:$0xff] %v7958_v10  ;;  %v455_v40 = vand.u32 31, %v7955_v1  ;;  %v672_v41 = vand.u32 31, %v7958_v10  ;;  %v679_v44 = vand.u32 31, %v7961_v24  ;;  %vm1168_vm1 = vcmp.eq.s32.totalorder %v560_v28, %v7527_v9 }
  0x64   :  { %7015 = vmatprep.subr.msk.bf16.mxu0 %vm7014_vm8, %v9383_v34  ;;  %9525 = vst [vmem:[#allocation44_spill] sm:$0xff] %v7961_v24  ;;  %vm7048_vm0 = vmpackc.low %vm7929_vm3, %vm7924_vm12  ;;  %vm1169_vm11 = vcmp.eq.s32.totalorder %v567_v29, %v7527_v9  ;;  %vm1200_vm13 = vcmp.eq.s32.totalorder %v784_v30, %v7527_v9  ;;  %vm1201_vm14 = vcmp.eq.s32.totalorder %v791_v36, %v7527_v9  ;;  %v8003_v29 = vadd.s32 224, %v7503_v2 }
  0x65   :  { %7049 = vmatpush3.bf16.msk.msra.mxu1 %vm7048_vm0, %v9383_v34  ;;  %vm7018_vm4 = vmpackc.low %vm1169_vm11, %vm1168_vm1  ;;  %vm7982_vm2 = vcmp.eq.s32.totalorder %v448_v37, %v7527_v9  ;;  %vm7987_vm5 = vcmp.eq.s32.totalorder %v455_v40, %v7527_v9  ;;  %vm7992_vm6 = vcmp.eq.s32.totalorder %v672_v41, %v7527_v9  ;;  %vm7997_vm8 = vcmp.eq.s32.totalorder %v679_v44, %v7527_v9 }
  0x66   :  { %vm7050_vm10 = vmpackc.low %vm1201_vm14, %vm1200_vm13  ;;  %9534 = vst [vmem:[#allocation45_spill] sm:$0xff] %v8003_v29  ;;  %v8006_v30 = vadd.s32 232, %v7503_v2  ;;  %v8009_v36 = vadd.s32 480, %v7503_v2  ;;  %v8012_v37 = vadd.s32 488, %v7503_v2  ;;  %v8020_v40 = vadd.s32 96, %v7503_v2 }
  0x67   :  { %7017 = vmatpush3.bf16.msk.msra.mxu0 %vm7016_vm15, %v9383_v34  ;;  %7051 = vmatprep.subr.msk.bf16.mxu1 %vm7050_vm10, %v9383_v34  ;;  %vm7020_vm9 = vmpackc.low %vm7987_vm5, %vm7982_vm2  ;;  %v8023_v41 = vadd.s32 104, %v7503_v2  ;;  %v8026_v44 = vadd.s32 352, %v7503_v2  ;;  %v8029_v50 = vadd.s32 360, %v7503_v2  ;;  %v574_v51 = vand.u32 31, %v8003_v29 }
  0x68   :  { %7019 = vmatprep.subr.msk.bf16.mxu0 %vm7018_vm4, %v9383_v34  ;;  %9535 = vst [vmem:[#allocation46_spill] sm:$0xff] %v8006_v30  ;;  %9536 = vst [vmem:[#allocation47_spill] sm:$0xff] %v8009_v36  ;;  %v581_v54 = vand.u32 31, %v8006_v30  ;;  %v798_v49 = vand.u32 31, %v8009_v36  ;;  %v805_v48 = vand.u32 31, %v8012_v37  ;;  %v462_v24 = vand.u32 31, %v8020_v40 }
  0x69   :  { %9537 = vst [vmem:[#allocation48_spill] sm:$0xff] %v8012_v37  ;;  %9538 = vst [vmem:[#allocation49_spill] sm:$0xff] %v8020_v40  ;;  %v469_v10 = vand.u32 31, %v8023_v41  ;;  %v686_v63 = vand.u32 31, %v8026_v44  ;;  %v693_v55 = vand.u32 31, %v8029_v50  ;;  %vm1170_vm3 = vcmp.eq.s32.totalorder %v574_v51, %v7527_v9 }
  0x6a   :  { %9539 = vst [vmem:[#allocation50_spill] sm:$0xff] %v8023_v41  ;;  %9540 = vst [vmem:[#allocation51_spill] sm:$0xff] %v8026_v44  ;;  %vm1171_vm7 = vcmp.eq.s32.totalorder %v581_v54, %v7527_v9  ;;  %vm1202_vm15 = vcmp.eq.s32.totalorder %v798_v49, %v7527_v9  ;;  %vm1203_vm0 = vcmp.eq.s32.totalorder %v805_v48, %v7527_v9  ;;  %v9550_v48 = vmov 1.0|1.0  }
  0x6b   :  { %9541 = vst [vmem:[#allocation52_spill] sm:$0xff] %v8029_v50  ;;  %7021 = vmatpush3.bf16.msk.msra.mxu0 %vm7020_vm9, %v9383_v34  ;;  %vm7052_vm12 = vmpackc.low %vm7997_vm8, %vm7992_vm6  ;;  %vm8050_vm11 = vcmp.eq.s32.totalorder %v462_v24, %v7527_v9  ;;  %vm8055_vm13 = vcmp.eq.s32.totalorder %v469_v10, %v7527_v9  ;;  %vm8060_vm14 = vcmp.eq.s32.totalorder %v686_v63, %v7527_v9  ;;  %v8071_v24 = vadd.s32 240, %v7503_v2 }
  0x6c   :  { %7053 = vmatpush3.bf16.msk.msra.mxu1 %vm7052_vm12, %v9383_v34  ;;  %vm7022_vm1 = vmpackc.low %vm1171_vm7, %vm1170_vm3  ;;  %vm8065_vm4 = vcmp.eq.s32.totalorder %v693_v55, %v7527_v9  ;;  %v8074_v10 = vadd.s32 248, %v7503_v2  ;;  %v8077_v54 = vadd.s32 496, %v7503_v2  ;;  %v8080_v63 = vadd.s32 504, %v7503_v2 }
  0x6d   :  { %7023 = vmatprep.subr.msk.bf16.mxu0 %vm7022_vm1, %v9550_v48  ;;  %vm7054_vm2 = vmpackc.low %vm1203_vm0, %vm1202_vm15  ;;  %9551 = vst [vmem:[#allocation53_spill] sm:$0xff] %v8071_v24  ;;  %v8088_v55 = vadd.s32 112, %v7503_v2  ;;  %v8091_v50 = vadd.s32 120, %v7503_v2  ;;  %v8094_v44 = vadd.s32 368, %v7503_v2  ;;  %v8097_v37 = vadd.s32 376, %v7503_v2 }
  0x6e   :  { %9552 = vst [vmem:[#allocation54_spill] sm:$0xff] %v8074_v10  ;;  %9553 = vst [vmem:[#allocation55_spill] sm:$0xff] %v8077_v54  ;;  %7055 = vmatprep.subr.msk.bf16.mxu1 %vm7054_vm2, %v9550_v48  ;;  %v588_v34 = vand.u32 31, %v8071_v24  ;;  %v595_v28 = vand.u32 31, %v8074_v10  ;;  %v812_v36 = vand.u32 31, %v8077_v54  ;;  %v819_v56 = vand.u32 31, %v8080_v63 }
  0x6f   :  { %9554 = vst [vmem:[#allocation56_spill] sm:$0xff] %v8080_v63  ;;  %vm7024_vm5 = vmpackc.low %vm8055_vm13, %vm8050_vm11  ;;  %v476_v35 = vand.u32 31, %v8088_v55  ;;  %v483_v33 = vand.u32 31, %v8091_v50  ;;  %v700_v21 = vand.u32 31, %v8094_v44  ;;  %v707_v51 = vand.u32 31, %v8097_v37 }
  0x70   :  { %9555 = vst [vmem:[#allocation57_spill] sm:$0xff] %v8088_v55  ;;  %9556 = vst [vmem:[#allocation58_spill] sm:$0xff] %v8091_v50  ;;  %7025 = vmatpush3.bf16.msk.msra.mxu0 %vm7024_vm5, %v9550_v48  ;;  %vm1172_vm8 = vcmp.eq.s32.totalorder %v588_v34, %v7527_v9  ;;  %vm1173_vm10 = vcmp.eq.s32.totalorder %v595_v28, %v7527_v9  ;;  %vm1204_vm9 = vcmp.eq.s32.totalorder %v812_v36, %v7527_v9  ;;  %vm9427_vm2 = vcmask 1040384  }
  0x71   :  { %9557 = vst [vmem:[#allocation59_spill] sm:$0xff] %v8094_v44  ;;  %9558 = vst [vmem:[#allocation60_spill] sm:$0xff] %v8097_v37  ;;  %vm1205_vm12 = vcmp.eq.s32.totalorder %v819_v56, %v7527_v9  ;;  %vm1156_vm7 = vcmp.eq.s32.totalorder %v476_v35, %v7527_v9  ;;  %vm1157_vm15 = vcmp.eq.s32.totalorder %v483_v33, %v7527_v9 }
  0x72   :  { %vm7056_vm6 = vmpackc.low %vm8065_vm4, %vm8060_vm14  ;;  %vm1188_vm0 = vcmp.eq.s32.totalorder %v700_v21, %v7527_v9  ;;  %vm1189_vm1 = vcmp.eq.s32.totalorder %v707_v51, %v7527_v9  ;;  %vm9426_vm4 = vcmask 1041408  }
  0x73   :  { %7057 = vmatpush3.bf16.msk.msra.mxu1 %vm7056_vm6, %v9550_v48  ;;  %vm7026_vm3 = vmpackc.low %vm1173_vm10, %vm1172_vm8 }
  0x74   :  { %7027 = vmatprep.subr.msk.bf16.mxu0 %vm7026_vm3, %v9550_v48  ;;  %vm7058_vm11 = vmpackc.low %vm1205_vm12, %vm1204_vm9 }
  0x75   :  { %7059 = vmatprep.subr.msk.bf16.mxu1 %vm7058_vm11, %v9550_v48  ;;  %vm7028_vm13 = vmpackc.low %vm1157_vm15, %vm1156_vm7 }
  0x76   :  { %7029 = vmatpush3.bf16.msk.msra.mxu0 %vm7028_vm13, %v9550_v48  ;;  %vm7060_vm14 = vmpackc.low %vm1189_vm1, %vm1188_vm0 }
  0x77   :  { %7061 = vmatpush3.bf16.msk.msra.mxu1 %vm7060_vm14, %v9550_v48 }
 0x125   :  { %v8125_v56 = vpop.f32.mrb[0].mxu0 }
 0x126   :  { %v8127_v35 = vpop.f32.mrb[0].mxu1  ;;  %v242_v21 = vsel %vm9426_vm4, %v8125_v56, 0.0  ;;  %v270_v33 = vmul.f32 %v8125_v56, %v8125_v56  ;;  %v8137_v34 = vpop.f32.mrb[1].mxu0 }
 0x127   :  { %v256_v36 = vsel %vm9426_vm4, %v8127_v35, 0.0  ;;  %v272_v49 = vmul.f32 %v8127_v35, %v8127_v35  ;;  %v8139_v28 = vpop.f32.mrb[1].mxu1  ;;  %v243_v51 = vrot.slane %v242_v21, 4  ;;  %v249_v44 = vsel %vm9426_vm4, %v8137_v34, 0.0  ;;  %v197_v54 = vpop.f32.mrb[2].mxu0 }
 0x128   :  { %v257_v37 = vrot.slane %v256_v36, 4  ;;  %v271_v63 = vmul.f32 %v8137_v34, %v8137_v34  ;;  %v238_v14 = vpop.f32.mrb[2].mxu1  ;;  %v274_v62 = vsel %vm9426_vm4, %v270_v33, 0.0  ;;  %v250_v20 = vrot.slane %v249_v44, 4  ;;  %v198_v47 = vpop.f32.mrb[3].mxu0 }
 0x129   :  { %v288_v61 = vsel %vm9426_vm4, %v272_v49, 0.0  ;;  %v263_v15 = vsel %vm9426_vm4, %v8139_v28, 0.0  ;;  %v239_v46 = vpop.f32.mrb[3].mxu1  ;;  %v244_v42 = vadd.f32 %v243_v51, %v242_v21  ;;  %v275_v39 = vrot.slane %v274_v62, 4 }
 0x12a   :  { %v258_v27 = vadd.f32 %v257_v37, %v256_v36  ;;  %v289_v26 = vrot.slane %v288_v61, 4  ;;  %v251_v19 = vadd.f32 %v250_v20, %v249_v44  ;;  %v281_v18 = vsel %vm9426_vm4, %v271_v63, 0.0 }
 0x12b   :  { %v264_v11 = vrot.slane %v263_v15, 4  ;;  %v273_v14 = vmul.f32 %v8139_v28, %v8139_v28  ;;  %v245_v54 = vrot.slane %v244_v42, 2  ;;  %v276_v33 = vadd.f32 %v275_v39, %v274_v62 }
 0x12c   :  { %v290_v49 = vadd.f32 %v289_v26, %v288_v61  ;;  %v252_v8 = vrot.slane %v251_v19, 2  ;;  %v282_v6 = vrot.slane %v281_v18, 4  ;;  %v259_v21 = vrot.slane %v258_v27, 2 }
 0x12d   :  { %v265_v5 = vadd.f32 %v264_v11, %v263_v15  ;;  %v295_v47 = vsel %vm9426_vm4, %v273_v14, 0.0  ;;  %v277_v46 = vrot.slane %v276_v33, 2  ;;  %v246_v63 = vadd.f32 %v245_v54, %v244_v42 }
 0x12e   :  { %v291_v51 = vrot.slane %v290_v49, 2  ;;  %v253_v37 = vadd.f32 %v252_v8, %v251_v19  ;;  %v283_v36 = vadd.f32 %v282_v6, %v281_v18  ;;  %v296_v44 = vrot.slane %v295_v47, 4 }
 0x12f   :  { %v266_v20 = vrot.slane %v265_v5, 2  ;;  %v278_v50 = vadd.f32 %v277_v46, %v276_v33  ;;  %v260_v39 = vadd.f32 %v259_v21, %v258_v27  ;;  %v247_v15 = vrot.slane %v246_v63, 1 }
 0x130   :  { %v292_v55 = vadd.f32 %v291_v51, %v290_v49  ;;  %v284_v10 = vrot.slane %v283_v36, 2  ;;  %v297_v41 = vadd.f32 %v296_v44, %v295_v47  ;;  %v254_v62 = vrot.slane %v253_v37, 1 }
 0x131   :  { %v267_v24 = vadd.f32 %v266_v20, %v265_v5  ;;  %v279_v26 = vrot.slane %v278_v50, 1  ;;  %v261_v8 = vrot.slane %v260_v39, 1  ;;  %v248_v54 = vadd.f32 %v247_v15, %v246_v63 }
 0x132   :  { %v298_v61 = vrot.slane %v297_v41, 2  ;;  %v285_v11 = vadd.f32 %v284_v10, %v283_v36  ;;  %v293_v14 = vrot.slane %v292_v55, 1  ;;  %v255_v18 = vadd.f32 %v254_v62, %v253_v37 }
 0x133   :  { %v268_v30 = vrot.slane %v267_v24, 1  ;;  %v280_v6 = vadd.f32 %v279_v26, %v278_v50  ;;  %v262_v47 = vadd.f32 %v261_v8, %v260_v39  ;;  %v8158_v50 = vadd.s32 128, %v7527_v9 }
 0x134   :  { %v286_v40 = vrot.slane %v285_v11, 1  ;;  %v299_v29 = vadd.f32 %v298_v61, %v297_v41  ;;  %v294_v33 = vadd.f32 %v293_v14, %v292_v55  ;;  %v1517_v55 = vand.u32 31, %v7527_v9 }
 0x135   :  { %v269_v27 = vadd.f32 %v268_v30, %v267_v24  ;;  %v303_v10 = vsel %vm9427_vm2, %v248_v54, %v280_v6  ;;  %v8164_v30 = vadd.s32 256, %v7527_v9  ;;  %v7425_v51 = vmov 0.0  }
 0x136   :  { %v287_v19 = vadd.f32 %v286_v40, %v285_v11  ;;  %v300_v42 = vrot.slane %v299_v29, 1  ;;  %v305_v41 = vsel %vm9427_vm2, %v262_v47, %v294_v33  ;;  %v8161_v40 = vadd.s32 384, %v7527_v9 }
 0x137   :  { %v1531_v21 = vand.u32 31, %v8164_v30  ;;  %vm1561_vm12 = vcmp.eq.s32.totalorder %v1517_v55, %v7503_v2  ;;  %vm1565_vm3 = vcmp.eq.s32.totalorder %v1517_v55, %v7522_v7  ;;  %v7426_v8 = vmov 1966171168  }
 0x138   :  { %v304_v5 = vsel %vm9427_vm2, %v255_v18, %v287_v19  ;;  %v301_v49 = vadd.f32 %v300_v42, %v299_v29  ;;  %v1524_v29 = vand.u32 31, %v8158_v50  ;;  %v1538_v24 = vand.u32 31, %v8161_v40  ;;  %vm7064_vm1 = vmpackc.low %vm1565_vm3, %vm1561_vm12 }
 0x139   :  { %1398 = vmatprep.mubr.f32.mxu0 %v304_v5  ;;  %vm1563_vm7 = vcmp.eq.s32.totalorder %v1531_v21, %v7503_v2  ;;  %vm1567_vm15 = vcmp.eq.s32.totalorder %v1531_v21, %v7522_v7  ;;  %vm1575_vm12 = vcmp.eq.s32.totalorder %v1531_v21, %v7561_v23  ;;  %v1485_v6 = vunpack.c.l.s4 %v7426_v8  ;;  %v124_v5 = vld [vmem:[#allocation7] sm:$0x1] }
 0x13a   :  { %v306_v46 = vsel %vm9427_vm2, %v269_v27, %v301_v49  ;;  %1399 = vmatmul.mubr.f32.vlgmr.msra.gmra.mrb[4].mxu0 %v303_v10  ;;  %vm1562_vm5 = vcmp.eq.s32.totalorder %v1524_v29, %v7503_v2  ;;  %vm1566_vm6 = vcmp.eq.s32.totalorder %v1524_v29, %v7522_v7  ;;  %vm1564_vm8 = vcmp.eq.s32.totalorder %v1538_v24, %v7503_v2  ;;  %vm7072_vm11 = vmpackc.low %vm1567_vm15, %vm1563_vm7  ;;  %v125_v10 = vld [vmem:[#allocation7 + $0x1] sm:$0x1] }
 0x13b   :  { %1468 = vmatprep.mubr.f32.mxu1 %v306_v46  ;;  %vm1568_vm10 = vcmp.eq.s32.totalorder %v1538_v24, %v7522_v7  ;;  %vm7062_vm9 = vmpackc.low %vm1566_vm6, %vm1562_vm5  ;;  %vm1570_vm13 = vcmp.eq.s32.totalorder %v1524_v29, %v7558_v22  ;;  %vm1574_vm14 = vcmp.eq.s32.totalorder %v1524_v29, %v7561_v23  ;;  %vm1572_vm5 = vcmp.eq.s32.totalorder %v1538_v24, %v7558_v22 }
 0x13c   :  { %1469 = vmatmul.mubr.f32.vlgmr.msra.gmra.mrb[4].mxu1 %v305_v41  ;;  %7063 = vmatprep.subr.msk.bf16.mxu0 %vm7062_vm9, %v9550_v48  ;;  %vm7070_vm0 = vmpackc.low %vm1568_vm10, %vm1564_vm8  ;;  %vm1576_vm6 = vcmp.eq.s32.totalorder %v1538_v24, %v7561_v23  ;;  %vm1569_vm9 = vcmp.eq.s32.totalorder %v1517_v55, %v7558_v22  ;;  %vm1573_vm8 = vcmp.eq.s32.totalorder %v1517_v55, %v7561_v23  ;;  %v1486_v18 = vunpack.c.0.s8 %v1485_v6 }
 0x13d   :  { %7071 = vmatprep.subr.msk.bf16.mxu1 %vm7070_vm0, %v9550_v48  ;;  %7065 = vmatpush1.bf16.msk.msra.mxu0 %vm7064_vm1, %v9550_v48  ;;  %vm7066_vm4 = vmpackc.low %vm1574_vm14, %vm1570_vm13  ;;  %vm1571_vm10 = vcmp.eq.s32.totalorder %v1531_v21, %v7558_v22  ;;  %v8202_v46 = vsub.s32 0, %v7503_v2  ;;  %v8207_v55 = vsub.s32 1, %v7503_v2 }
 0x13e   :  { %7073 = vmatpush1.bf16.msk.msra.mxu1 %vm7072_vm11, %v9550_v48  ;;  %7067 = vmatprep.subr.msk.bf16.mxu0 %vm7066_vm4, %v9550_v48  ;;  %vm7074_vm3 = vmpackc.low %vm1576_vm6, %vm1572_vm5  ;;  %v8197_v19 = vsub.s32 %v1486_v18, %v7503_v2  ;;  %vm1609_vm4 = vcmask 261120  }
 0x13f   :  { %7075 = vmatprep.subr.msk.bf16.mxu1 %vm7074_vm3, %v9550_v48  ;;  %vm7068_vm7 = vmpackc.low %vm1573_vm8, %vm1569_vm9  ;;  %1677 = vmatprep.mubr.f32.mxu0 %v7425_v51 }
 0x140   :  { %vm7076_vm15 = vmpackc.low %vm1575_vm12, %vm1571_vm10  ;;  %1748 = vmatprep.mubr.f32.mxu1 %v7425_v51 }
 0x141   :  { %7069 = vmatpush1.bf16.msk.msra.mxu0 %vm7068_vm7, %v9550_v48 }
 0x142   :  { %7077 = vmatpush1.bf16.msk.msra.mxu1 %vm7076_vm15, %v9550_v48 }
 0x20d   :  { %v6820_v37 = vpop.f32.mrb[4].mxu0 }
 0x20e   :  { %v6821_v36 = vpop.f32.mrb[5].mxu0 }
 0x20f   :  { %v6855_v20 = vpop.f32.mrb[4].mxu1  ;;  %v6822_v44 = vadd.f32 %v6821_v36, %v6820_v37 }
 0x210   :  { %v6856_v63 = vpop.f32.mrb[5].mxu1 }
 0x211   :  { %v6857_v39 = vadd.f32 %v6856_v63, %v6855_v20 }
 0x213   :  { %v1471_v26 = vadd.f32 %v6857_v39, %v6822_v44 }
 0x215   :  { %v1475_v61 = vmul.f32 0.03125, %v1471_v26 }
 0x217   :  { %v1476_v62 = vmul.f32 %v1475_v61, %v1475_v61 }
 0x219   :  { %v1478_v11 = vrot.slane %v1476_v62, 7 }
 0x21b   :  { %v1480_v15 = vsub.f32 %v1475_v61, %v1478_v11 }
 0x21d   :  { %v1481_v14 = vadd.f32 1e-05, %v1480_v15 }
 0x21f   :  { %7312 = vrsqrt.f32 %v1481_v14 }
 0x229   :  { %v7313_v42 = vpop.eup %7312 }
 0x22a   :  { %v1490_v54 = vrot.slane %v7313_v42, %v8197_v19 }
 0x22c   :  { %v1491_v33 = vcombine.high %v1490_v54, %v1490_v54 }
 0x22e   :  { %v1498_v27 = vrot.slane %v1491_v33, %v8197_v19 }
 0x230   :  { %v1500_v49 = vmul.f32 %v1498_v27, %v124_v5 }
 0x232   :  { %v1501_v47 = vmul.f32 %v1500_v49, %v1475_v61 }
 0x234   :  { %v1502_v41 = vsub.f32 %v125_v10, %v1501_v47 }
 0x236   :  { %v1507_v29 = vrot.slane %v1502_v41, %v8202_v46 }
 0x238   :  { %v1509_v24 = vsel %vm9427_vm2, %v1500_v49, %v1507_v29 }
 0x239   :  { %6483 = vmatmul.mubr.msk.f32.vlgmr.msra.gmra.mrb[6].mxu0 %vm1609_vm4, %v1509_v24  ;;  %6492 = vmatmul.mubr.msk.f32.vlgmr.msra.gmra.mrb[6].mxu1 %vm1609_vm4, %v1509_v24 }
 0x30c   :  { %v1679_v21 = vpop.f32.mrb[6].mxu0  ;;  %v1750_v37 = vpop.f32.mrb[6].mxu1 }
 0x30d   :  { %v1758_v36 = vrot.slane %v1679_v21, %v8202_v46  ;;  %v1766_v20 = vrot.slane %v1750_v37, %v8202_v46  ;;  %v1681_v44 = vpop.f32.mrb[7].mxu0  ;;  %v1752_v63 = vpop.f32.mrb[7].mxu1  ;;  %v1778_v62 = vrot.slane %v1679_v21, %v8207_v55  ;;  %v1786_v15 = vrot.slane %v1750_v37, %v8207_v55 }
 0x30e   :  { %v1762_v39 = vrot.slane %v1681_v44, %v8202_v46  ;;  %v1770_v26 = vrot.slane %v1752_v63, %v8202_v46  ;;  %v1782_v8 = vrot.slane %v1681_v44, %v8207_v55  ;;  %v1790_v18 = vrot.slane %v1752_v63, %v8207_v55 }
 0x30f   :  { %v1771_v61 = vmul.f32 %v1758_v36, %v8125_v56  ;;  %v1773_v11 = vmul.f32 %v1766_v20, %v8127_v35 }
 0x310   :  { %v1772_v14 = vmul.f32 %v1762_v39, %v8137_v34  ;;  %v1774_v6 = vmul.f32 %v1770_v26, %v8139_v28 }
 0x311   :  { %v8221_v42 = vadd.f32 %v1778_v62, %v1771_v61  ;;  %v8223_v54 = vadd.f32 %v1786_v15, %v1773_v11 }
 0x312   :  { %v1792_v33 = vadd.f32 %v1782_v8, %v1772_v14  ;;  %v8225_v56 = vadd.f32 %v1790_v18, %v1774_v6 }
 0x313   :  { %v1795_v5 = vmax.f32 %v8221_v42, 0.0  ;;  %v1797_v35 = vmax.f32 %v8223_v54, 0.0 }
 0x314   :  { %v1796_v27 = vmax.f32 %v1792_v33, 0.0  ;;  %v1798_v34 = vmax.f32 %v8225_v56, 0.0 }
 0x315   :  { %7398 = dma.done.wait [#allocation4], 32768 }
 0x316   :  { %7399 = vsyncadd [#allocation4], 4294934528  ;;  %v8230_v49 = vpack.c.bf16 %v1796_v27, %v1796_v27  ;;  %v1808_v28 = vld [vmem:[#allocation2 + $0x8] sm:$0xff]  ;;  %v1807_v10 = vld [vmem:[#allocation2] sm:$0xff] }
 0x317   :  { %v1816_v47 = vld [vmem:[#allocation2 + $0x48] sm:$0xff]  ;;  %2063 = vmatprep.subr.bf16.mxu1 %v1808_v28  ;;  %v1815_v41 = vld [vmem:[#allocation2 + $0x40] sm:$0xff]  ;;  %v1817_v54 = vld [vmem:[#allocation2 + $0x50] sm:$0xff] }
 0x318   :  { %2095 = vmatprep.mubr.bf16.mxu1 %v8230_v49  ;;  %2259 = vmatprep.mubr.bf16.mxu0 %v8230_v49  ;;  %v1824_v29 = vld [vmem:[#allocation2 + $0x88] sm:$0xff]  ;;  %v1823_v24 = vld [vmem:[#allocation2 + $0x80] sm:$0xff] }
 0x319   :  { %2064 = vmatpush1.bf16.msra.mxu1 %v1807_v10  ;;  %v1832_v21 = vld [vmem:[#allocation2 + $0xc8] sm:$0xff]  ;;  %v1831_v37 = vld [vmem:[#allocation2 + $0xc0] sm:$0xff] }
 0x31a   :  { %2065 = vmatprep.subr.bf16.mxu1 %v1816_v47  ;;  %v1840_v36 = vld [vmem:[#allocation2 + $0x108] sm:$0xff]  ;;  %v1839_v20 = vld [vmem:[#allocation2 + $0x100] sm:$0xff] }
 0x31b   :  { %v1848_v44 = vld [vmem:[#allocation2 + $0x148] sm:$0xff]  ;;  %v1847_v63 = vld [vmem:[#allocation2 + $0x140] sm:$0xff] }
 0x31c   :  { %v1856_v39 = vld [vmem:[#allocation2 + $0x188] sm:$0xff]  ;;  %v1811_v61 = vld [vmem:[#allocation2 + $0x20] sm:$0xff] }
 0x31d   :  { %2066 = vmatpush1.bf16.msra.mxu1 %v1815_v41  ;;  %v1812_v26 = vld [vmem:[#allocation2 + $0x28] sm:$0xff]  ;;  %v1855_v62 = vld [vmem:[#allocation2 + $0x180] sm:$0xff] }
 0x31e   :  { %2067 = vmatprep.subr.bf16.mxu1 %v1824_v29  ;;  %2227 = vmatprep.subr.bf16.mxu0 %v1812_v26  ;;  %v1820_v11 = vld [vmem:[#allocation2 + $0x68] sm:$0xff]  ;;  %v1819_v14 = vld [vmem:[#allocation2 + $0x60] sm:$0xff] }
 0x31f   :  { %v1864_v15 = vld [vmem:[#allocation2 + $0x1c8] sm:$0xff]  ;;  %2228 = vmatpush1.bf16.msra.mxu0 %v1811_v61  ;;  %v1863_v6 = vld [vmem:[#allocation2 + $0x1c0] sm:$0xff] }
 0x320   :  { %2229 = vmatprep.subr.bf16.mxu0 %v1820_v11  ;;  %v1828_v8 = vld [vmem:[#allocation2 + $0xa8] sm:$0xff]  ;;  %v1827_v33 = vld [vmem:[#allocation2 + $0xa0] sm:$0xff] }
 0x321   :  { %2068 = vmatpush1.bf16.msra.mxu1 %v1823_v24  ;;  %v1872_v18 = vld [vmem:[#allocation2 + $0x208] sm:$0xff]  ;;  %v1871_v28 = vld [vmem:[#allocation2 + $0x200] sm:$0xff] }
 0x322   :  { %2069 = vmatprep.subr.bf16.mxu1 %v1832_v21  ;;  %v1836_v27 = vld [vmem:[#allocation2 + $0xe8] sm:$0xff]  ;;  %v1835_v47 = vld [vmem:[#allocation2 + $0xe0] sm:$0xff] }
 0x323   :  { %2230 = vmatpush1.bf16.msra.mxu0 %v1819_v14  ;;  %v1880_v10 = vld [vmem:[#allocation2 + $0x248] sm:$0xff]  ;;  %v1879_v29 = vld [vmem:[#allocation2 + $0x240] sm:$0xff] }
 0x324   :  { %2231 = vmatprep.subr.bf16.mxu0 %v1828_v8  ;;  %v1844_v41 = vld [vmem:[#allocation2 + $0x128] sm:$0xff]  ;;  %v1843_v21 = vld [vmem:[#allocation2 + $0x120] sm:$0xff] }
 0x325   :  { %2070 = vmatpush1.bf16.msra.mxu1 %v1831_v37  ;;  %v1888_v24 = vld [vmem:[#allocation2 + $0x288] sm:$0xff]  ;;  %v1859_v61 = vld [vmem:[#allocation2 + $0x1a0] sm:$0xff] }
 0x326   :  { %2071 = vmatprep.subr.bf16.mxu1 %v1840_v36  ;;  %v1852_v37 = vld [vmem:[#allocation2 + $0x168] sm:$0xff]  ;;  %v1887_v36 = vld [vmem:[#allocation2 + $0x280] sm:$0xff] }
 0x327   :  { %2232 = vmatpush1.bf16.msra.mxu0 %v1827_v33  ;;  %v1904_v26 = vld [vmem:[#allocation2 + $0x308] sm:$0xff]  ;;  %v1903_v11 = vld [vmem:[#allocation2 + $0x300] sm:$0xff] }
 0x328   :  { %2233 = vmatprep.subr.bf16.mxu0 %v1836_v27  ;;  %v1867_v14 = vld [vmem:[#allocation2 + $0x1e0] sm:$0xff]  ;;  %v1876_v8 = vld [vmem:[#allocation2 + $0x228] sm:$0xff] }
 0x329   :  { %2072 = vmatpush1.bf16.msra.mxu1 %v1839_v20  ;;  %v1896_v20 = vld [vmem:[#allocation2 + $0x2c8] sm:$0xff]  ;;  %v1875_v33 = vld [vmem:[#allocation2 + $0x220] sm:$0xff] }
 0x32a   :  { %2073 = vmatprep.subr.bf16.mxu1 %v1848_v44  ;;  %v1851_v44 = vld [vmem:[#allocation2 + $0x160] sm:$0xff]  ;;  %v1884_v27 = vld [vmem:[#allocation2 + $0x268] sm:$0xff] }
 0x32b   :  { %2234 = vmatpush1.bf16.msra.mxu0 %v1835_v47  ;;  %v1883_v47 = vld [vmem:[#allocation2 + $0x260] sm:$0xff] }
 0x32c   :  { %2235 = vmatprep.subr.bf16.mxu0 %v1844_v41  ;;  %v1892_v41 = vld [vmem:[#allocation2 + $0x2a8] sm:$0xff]  ;;  %v1899_v42 = vld [vmem:[#allocation2 + $0x2e0] sm:$0xff] }
 0x32d   :  { %2074 = vmatpush1.bf16.msra.mxu1 %v1847_v63  ;;  %v1860_v63 = vld [vmem:[#allocation2 + $0x1a8] sm:$0xff]  ;;  %v1907_v56 = vld [vmem:[#allocation2 + $0x320] sm:$0xff] }
 0x32e   :  { %2075 = vmatprep.subr.bf16.mxu1 %v1856_v39  ;;  %v1895_v39 = vld [vmem:[#allocation2 + $0x2c0] sm:$0xff] }
 0x32f   :  { %2236 = vmatpush1.bf16.msra.mxu0 %v1843_v21  ;;  %v8237_v21 = vpack.c.bf16 %v1795_v5, %v1795_v5  ;;  %v1908_v5 = vld [vmem:[#allocation2 + $0x328] sm:$0xff] }
 0x330   :  { %2237 = vmatprep.subr.bf16.mxu0 %v1852_v37  ;;  %v1891_v37 = vld [vmem:[#allocation2 + $0x2a0] sm:$0xff] }
 0x331   :  { %2076 = vmatpush1.bf16.msra.mxu1 %v1855_v62  ;;  %v1868_v62 = vld [vmem:[#allocation2 + $0x1e8] sm:$0xff] }
 0x332   :  { %2077 = vmatprep.subr.bf16.mxu1 %v1864_v15  ;;  %v1912_v15 = vld [vmem:[#allocation2 + $0x348] sm:$0xff] }
 0x333   :  { %2238 = vmatpush1.bf16.msra.mxu0 %v1851_v44  ;;  %v1935_v44 = vld [vmem:[#allocation2 + $0x400] sm:$0xff] }
 0x334   :  { %2239 = vmatprep.subr.bf16.mxu0 %v1860_v63  ;;  %v1944_v63 = vld [vmem:[#allocation2 + $0x448] sm:$0xff] }
 0x335   :  { %2078 = vmatpush1.bf16.msra.mxu1 %v1863_v6  ;;  %v1911_v6 = vld [vmem:[#allocation2 + $0x340] sm:$0xff] }
 0x336   :  { %2079 = vmatprep.subr.bf16.mxu1 %v1872_v18  ;;  %v1920_v18 = vld [vmem:[#allocation2 + $0x388] sm:$0xff] }
 0x337   :  { %2240 = vmatpush1.bf16.msra.mxu0 %v1859_v61  ;;  %v1951_v61 = vld [vmem:[#allocation2 + $0x480] sm:$0xff] }
 0x338   :  { %2241 = vmatprep.subr.bf16.mxu0 %v1868_v62  ;;  %v1960_v62 = vld [vmem:[#allocation2 + $0x4c8] sm:$0xff] }
 0x339   :  { %2080 = vmatpush1.bf16.msra.mxu1 %v1871_v28  ;;  %v1919_v28 = vld [vmem:[#allocation2 + $0x380] sm:$0xff] }
 0x33a   :  { %2081 = vmatprep.subr.bf16.mxu1 %v1880_v10  ;;  %v1928_v10 = vld [vmem:[#allocation2 + $0x3c8] sm:$0xff] }
 0x33b   :  { %2242 = vmatpush1.bf16.msra.mxu0 %v1867_v14  ;;  %v1959_v14 = vld [vmem:[#allocation2 + $0x4c0] sm:$0xff] }
 0x33c   :  { %2243 = vmatprep.subr.bf16.mxu0 %v1876_v8  ;;  %v1968_v8 = vld [vmem:[#allocation2 + $0x508] sm:$0xff] }
 0x33d   :  { %2082 = vmatpush1.bf16.msra.mxu1 %v1879_v29  ;;  %v1927_v29 = vld [vmem:[#allocation2 + $0x3c0] sm:$0xff] }
 0x33e   :  { %2083 = vmatprep.subr.bf16.mxu1 %v1888_v24  ;;  %v1936_v24 = vld [vmem:[#allocation2 + $0x408] sm:$0xff] }
 0x33f   :  { %2244 = vmatpush1.bf16.msra.mxu0 %v1875_v33  ;;  %v1967_v33 = vld [vmem:[#allocation2 + $0x500] sm:$0xff] }
 0x340   :  { %2245 = vmatprep.subr.bf16.mxu0 %v1884_v27  ;;  %v1976_v27 = vld [vmem:[#allocation2 + $0x548] sm:$0xff] }
 0x341   :  { %2084 = vmatpush1.bf16.msra.mxu1 %v1887_v36  ;;  %v8242_v36 = vpack.c.bf16 %v1798_v34, %v1798_v34  ;;  %v1916_v34 = vld [vmem:[#allocation2 + $0x368] sm:$0xff] }
 0x342   :  { %2085 = vmatprep.subr.bf16.mxu1 %v1896_v20  ;;  %v1900_v20 = vld [vmem:[#allocation2 + $0x2e8] sm:$0xff] }
 0x343   :  { %2246 = vmatpush1.bf16.msra.mxu0 %v1883_v47  ;;  %v1975_v47 = vld [vmem:[#allocation2 + $0x540] sm:$0xff] }
 0x344   :  { %2247 = vmatprep.subr.bf16.mxu0 %v1892_v41  ;;  %v1984_v41 = vld [vmem:[#allocation2 + $0x588] sm:$0xff] }
 0x345   :  { %2086 = vmatpush1.bf16.msra.mxu1 %v1895_v39  ;;  %v1943_v39 = vld [vmem:[#allocation2 + $0x440] sm:$0xff] }
 0x346   :  { %2087 = vmatprep.subr.bf16.mxu1 %v1904_v26  ;;  %v1952_v26 = vld [vmem:[#allocation2 + $0x488] sm:$0xff] }
 0x347   :  { %2248 = vmatpush1.bf16.msra.mxu0 %v1891_v37  ;;  %v1983_v37 = vld [vmem:[#allocation2 + $0x580] sm:$0xff] }
 0x348   :  { %2249 = vmatprep.subr.bf16.mxu0 %v1900_v20  ;;  %v1992_v20 = vld [vmem:[#allocation2 + $0x5c8] sm:$0xff] }
 0x349   :  { %2088 = vmatpush1.bf16.msra.mxu1 %v1903_v11  ;;  %v1915_v11 = vld [vmem:[#allocation2 + $0x360] sm:$0xff] }
 0x34a   :  { %2089 = vmatprep.subr.bf16.mxu1 %v1912_v15  ;;  %v1924_v15 = vld [vmem:[#allocation2 + $0x3a8] sm:$0xff] }
 0x34b   :  { %2250 = vmatpush1.bf16.msra.mxu0 %v1899_v42  ;;  %v1991_v42 = vld [vmem:[#allocation2 + $0x5c0] sm:$0xff] }
 0x34c   :  { %2251 = vmatprep.subr.bf16.mxu0 %v1908_v5  ;;  %v2000_v5 = vld [vmem:[#allocation2 + $0x608] sm:$0xff] }
 0x34d   :  { %2090 = vmatpush1.bf16.msra.mxu1 %v1911_v6  ;;  %v1923_v6 = vld [vmem:[#allocation2 + $0x3a0] sm:$0xff] }
 0x34e   :  { %2091 = vmatprep.subr.bf16.mxu1 %v1920_v18  ;;  %v1932_v18 = vld [vmem:[#allocation2 + $0x3e8] sm:$0xff] }
 0x34f   :  { %2252 = vmatpush1.bf16.msra.mxu0 %v1907_v56  ;;  %v1999_v56 = vld [vmem:[#allocation2 + $0x600] sm:$0xff] }
 0x350   :  { %2253 = vmatprep.subr.bf16.mxu0 %v1916_v34  ;;  %v2008_v34 = vld [vmem:[#allocation2 + $0x648] sm:$0xff] }
 0x351   :  { %2092 = vmatpush1.bf16.msra.mxu1 %v1919_v28  ;;  %v1931_v28 = vld [vmem:[#allocation2 + $0x3e0] sm:$0xff] }
 0x352   :  { %2093 = vmatprep.subr.bf16.mxu1 %v1928_v10  ;;  %v1940_v10 = vld [vmem:[#allocation2 + $0x428] sm:$0xff] }
 0x353   :  { %2254 = vmatpush1.bf16.msra.mxu0 %v1915_v11  ;;  %v2007_v11 = vld [vmem:[#allocation2 + $0x640] sm:$0xff] }
 0x354   :  { %2255 = vmatprep.subr.bf16.mxu0 %v1924_v15  ;;  %v2016_v15 = vld [vmem:[#allocation2 + $0x688] sm:$0xff] }
 0x355   :  { %2094 = vmatpush1.bf16.msra.mxu1 %v1927_v29  ;;  %v1939_v29 = vld [vmem:[#allocation2 + $0x420] sm:$0xff] }
 0x356   :  { %2104 = vmatprep.subr.bf16.mxu1 %v1936_v24  ;;  %v1948_v24 = vld [vmem:[#allocation2 + $0x468] sm:$0xff] }
 0x357   :  { %2256 = vmatpush1.bf16.msra.mxu0 %v1923_v6  ;;  %v2015_v6 = vld [vmem:[#allocation2 + $0x680] sm:$0xff] }
 0x358   :  { %2096 = vmatmul.mubr.bf16.vlgmr.msra.gmra.mrb[8].mxu1 %v8237_v21  ;;  %2257 = vmatprep.subr.bf16.mxu0 %v1932_v18  ;;  %v2024_v18 = vld [vmem:[#allocation2 + $0x6c8] sm:$0xff] }
 0x359   :  { %2105 = vmatpush1.bf16.msra.mxu1 %v1935_v44  ;;  %2136 = vmatprep.mubr.bf16.mxu1 %v8242_v36  ;;  %v1947_v44 = vld [vmem:[#allocation2 + $0x460] sm:$0xff] }
 0x35a   :  { %2106 = vmatprep.subr.bf16.mxu1 %v1944_v63  ;;  %v1956_v63 = vld [vmem:[#allocation2 + $0x4a8] sm:$0xff] }
 0x35b   :  { %2258 = vmatpush1.bf16.msra.mxu0 %v1931_v28  ;;  %v2023_v28 = vld [vmem:[#allocation2 + $0x6c0] sm:$0xff] }
 0x35c   :  { %2268 = vmatprep.subr.bf16.mxu0 %v1940_v10  ;;  %v2032_v10 = vld [vmem:[#allocation2 + $0x708] sm:$0xff] }
 0x35d   :  { %2107 = vmatpush1.bf16.msra.mxu1 %v1943_v39  ;;  %v1955_v39 = vld [vmem:[#allocation2 + $0x4a0] sm:$0xff] }
 0x35e   :  { %2108 = vmatprep.subr.bf16.mxu1 %v1952_v26  ;;  %2260 = vmatmul.mubr.bf16.vlgmr.msra.gmra.mrb[8].mxu0 %v8237_v21  ;;  %v1964_v26 = vld [vmem:[#allocation2 + $0x4e8] sm:$0xff] }
 0x35f   :  { %2269 = vmatpush1.bf16.msra.mxu0 %v1939_v29  ;;  %2300 = vmatprep.mubr.bf16.mxu0 %v8242_v36  ;;  %v2031_v29 = vld [vmem:[#allocation2 + $0x700] sm:$0xff] }
 0x360   :  { %2270 = vmatprep.subr.bf16.mxu0 %v1948_v24  ;;  %v2040_v24 = vld [vmem:[#allocation2 + $0x748] sm:$0xff] }
 0x361   :  { %2109 = vmatpush1.bf16.msra.mxu1 %v1951_v61  ;;  %v1963_v61 = vld [vmem:[#allocation2 + $0x4e0] sm:$0xff] }
 0x362   :  { %2110 = vmatprep.subr.bf16.mxu1 %v1960_v62  ;;  %v1972_v62 = vld [vmem:[#allocation2 + $0x528] sm:$0xff] }
 0x363   :  { %2271 = vmatpush1.bf16.msra.mxu0 %v1947_v44  ;;  %v2039_v44 = vld [vmem:[#allocation2 + $0x740] sm:$0xff] }
 0x364   :  { %2272 = vmatprep.subr.bf16.mxu0 %v1956_v63  ;;  %v2048_v63 = vld [vmem:[#allocation2 + $0x788] sm:$0xff] }
 0x365   :  { %2111 = vmatpush1.bf16.msra.mxu1 %v1959_v14  ;;  %v1971_v14 = vld [vmem:[#allocation2 + $0x520] sm:$0xff] }
 0x366   :  { %2112 = vmatprep.subr.bf16.mxu1 %v1968_v8  ;;  %v1980_v8 = vld [vmem:[#allocation2 + $0x568] sm:$0xff] }
 0x367   :  { %2273 = vmatpush1.bf16.msra.mxu0 %v1955_v39  ;;  %v2047_v39 = vld [vmem:[#allocation2 + $0x780] sm:$0xff] }
 0x368   :  { %2274 = vmatprep.subr.bf16.mxu0 %v1964_v26  ;;  %v2056_v26 = vld [vmem:[#allocation2 + $0x7c8] sm:$0xff] }
 0x369   :  { %2113 = vmatpush1.bf16.msra.mxu1 %v1967_v33  ;;  %v1979_v33 = vld [vmem:[#allocation2 + $0x560] sm:$0xff] }
 0x36a   :  { %2114 = vmatprep.subr.bf16.mxu1 %v1976_v27  ;;  %v1988_v27 = vld [vmem:[#allocation2 + $0x5a8] sm:$0xff] }
 0x36b   :  { %2275 = vmatpush1.bf16.msra.mxu0 %v1963_v61  ;;  %v2055_v61 = vld [vmem:[#allocation2 + $0x7c0] sm:$0xff] }
 0x36c   :  { %2276 = vmatprep.subr.bf16.mxu0 %v1972_v62  ;;  %v1810_v62 = vld [vmem:[#allocation2 + $0x18] sm:$0xff] }
 0x36d   :  { %2115 = vmatpush1.bf16.msra.mxu1 %v1975_v47  ;;  %v1987_v47 = vld [vmem:[#allocation2 + $0x5a0] sm:$0xff] }
 0x36e   :  { %2116 = vmatprep.subr.bf16.mxu1 %v1984_v41  ;;  %v1996_v41 = vld [vmem:[#allocation2 + $0x5e8] sm:$0xff] }
 0x36f   :  { %2277 = vmatpush1.bf16.msra.mxu0 %v1971_v14  ;;  %v2028_v14 = vld [vmem:[#allocation2 + $0x6e8] sm:$0xff] }
 0x370   :  { %2278 = vmatprep.subr.bf16.mxu0 %v1980_v8  ;;  %v1809_v8 = vld [vmem:[#allocation2 + $0x10] sm:$0xff] }
 0x371   :  { %2117 = vmatpush1.bf16.msra.mxu1 %v1983_v37  ;;  %v1995_v37 = vld [vmem:[#allocation2 + $0x5e0] sm:$0xff] }
 0x372   :  { %2118 = vmatprep.subr.bf16.mxu1 %v1992_v20  ;;  %v2004_v20 = vld [vmem:[#allocation2 + $0x628] sm:$0xff] }
 0x373   :  { %2279 = vmatpush1.bf16.msra.mxu0 %v1979_v33  ;;  %v2036_v33 = vld [vmem:[#allocation2 + $0x728] sm:$0xff] }
 0x374   :  { %2280 = vmatprep.subr.bf16.mxu0 %v1988_v27  ;;  %v2035_v27 = vld [vmem:[#allocation2 + $0x720] sm:$0xff] }
 0x375   :  { %2119 = vmatpush1.bf16.msra.mxu1 %v1991_v42  ;;  %v2003_v42 = vld [vmem:[#allocation2 + $0x620] sm:$0xff] }
 0x376   :  { %2120 = vmatprep.subr.bf16.mxu1 %v2000_v5  ;;  %v2012_v5 = vld [vmem:[#allocation2 + $0x668] sm:$0xff] }
 0x377   :  { %2281 = vmatpush1.bf16.msra.mxu0 %v1987_v47  ;;  %v1834_v47 = vld [vmem:[#allocation2 + $0xd8] sm:$0xff] }
 0x378   :  { %2282 = vmatprep.subr.bf16.mxu0 %v1996_v41  ;;  %v2043_v41 = vld [vmem:[#allocation2 + $0x760] sm:$0xff] }
 0x379   :  { %2121 = vmatpush1.bf16.msra.mxu1 %v1999_v56  ;;  %v2011_v56 = vld [vmem:[#allocation2 + $0x660] sm:$0xff] }
 0x37a   :  { %2122 = vmatprep.subr.bf16.mxu1 %v2008_v34  ;;  %v2020_v34 = vld [vmem:[#allocation2 + $0x6a8] sm:$0xff] }
 0x37b   :  { %2283 = vmatpush1.bf16.msra.mxu0 %v1995_v37  ;;  %v1842_v37 = vld [vmem:[#allocation2 + $0x118] sm:$0xff] }
 0x37c   :  { %2284 = vmatprep.subr.bf16.mxu0 %v2004_v20  ;;  %v2051_v20 = vld [vmem:[#allocation2 + $0x7a0] sm:$0xff] }
 0x37d   :  { %2123 = vmatpush1.bf16.msra.mxu1 %v2007_v11  ;;  %v8251_v11 = vpack.c.bf16 %v1797_v35, %v1797_v35  ;;  %v1826_v35 = vld [vmem:[#allocation2 + $0x98] sm:$0xff] }
 0x37e   :  { %2124 = vmatprep.subr.bf16.mxu1 %v2016_v15  ;;  %v2019_v15 = vld [vmem:[#allocation2 + $0x6a0] sm:$0xff] }
 0x37f   :  { %2285 = vmatpush1.bf16.msra.mxu0 %v2003_v42  ;;  %v1850_v42 = vld [vmem:[#allocation2 + $0x158] sm:$0xff] }
 0x380   :  { %2286 = vmatprep.subr.bf16.mxu0 %v2012_v5  ;;  %v2059_v5 = vld [vmem:[#allocation2 + $0x7e0] sm:$0xff] }
 0x381   :  { %2125 = vmatpush1.bf16.msra.mxu1 %v2015_v6  ;;  %v1818_v6 = vld [vmem:[#allocation2 + $0x58] sm:$0xff] }
 0x382   :  { %2126 = vmatprep.subr.bf16.mxu1 %v2024_v18  ;;  %v2027_v18 = vld [vmem:[#allocation2 + $0x6e0] sm:$0xff] }
 0x383   :  { %2287 = vmatpush1.bf16.msra.mxu0 %v2011_v56  ;;  %v1857_v56 = vld [vmem:[#allocation2 + $0x190] sm:$0xff] }
 0x384   :  { %2288 = vmatprep.subr.bf16.mxu0 %v2020_v34  ;;  %v1866_v34 = vld [vmem:[#allocation2 + $0x1d8] sm:$0xff] }
 0x385   :  { %2127 = vmatpush1.bf16.msra.mxu1 %v2023_v28  ;;  %v2044_v28 = vld [vmem:[#allocation2 + $0x768] sm:$0xff] }
 0x386   :  { %2128 = vmatprep.subr.bf16.mxu1 %v2032_v10  ;;  %v1825_v10 = vld [vmem:[#allocation2 + $0x90] sm:$0xff] }
 0x387   :  { %2289 = vmatpush1.bf16.msra.mxu0 %v2019_v15  ;;  %v1873_v15 = vld [vmem:[#allocation2 + $0x210] sm:$0xff] }
 0x388   :  { %2290 = vmatprep.subr.bf16.mxu0 %v2028_v14  ;;  %v1882_v14 = vld [vmem:[#allocation2 + $0x258] sm:$0xff] }
 0x389   :  { %2129 = vmatpush1.bf16.msra.mxu1 %v2031_v29  ;;  %v2052_v29 = vld [vmem:[#allocation2 + $0x7a8] sm:$0xff] }
 0x38a   :  { %2130 = vmatprep.subr.bf16.mxu1 %v2040_v24  ;;  %v1833_v24 = vld [vmem:[#allocation2 + $0xd0] sm:$0xff] }
 0x38b   :  { %2291 = vmatpush1.bf16.msra.mxu0 %v2027_v18  ;;  %v1889_v18 = vld [vmem:[#allocation2 + $0x290] sm:$0xff] }
 0x38c   :  { %2292 = vmatprep.subr.bf16.mxu0 %v2036_v33  ;;  %v1898_v33 = vld [vmem:[#allocation2 + $0x2d8] sm:$0xff] }
 0x38d   :  { %2131 = vmatpush1.bf16.msra.mxu1 %v2039_v44  ;;  %v2060_v44 = vld [vmem:[#allocation2 + $0x7e8] sm:$0xff] }
 0x38e   :  { %2132 = vmatprep.subr.bf16.mxu1 %v2048_v63  ;;  %v1841_v63 = vld [vmem:[#allocation2 + $0x110] sm:$0xff] }
 0x38f   :  { %2293 = vmatpush1.bf16.msra.mxu0 %v2035_v27  ;;  %v1905_v27 = vld [vmem:[#allocation2 + $0x310] sm:$0xff] }
 0x390   :  { %2294 = vmatprep.subr.bf16.mxu0 %v2044_v28  ;;  %v1914_v28 = vld [vmem:[#allocation2 + $0x358] sm:$0xff] }
 0x391   :  { %2133 = vmatpush1.bf16.msra.mxu1 %v2047_v39  ;;  %v1849_v39 = vld [vmem:[#allocation2 + $0x150] sm:$0xff] }
 0x392   :  { %2134 = vmatprep.subr.bf16.mxu1 %v2056_v26  ;;  %v1858_v26 = vld [vmem:[#allocation2 + $0x198] sm:$0xff] }
 0x393   :  { %2295 = vmatpush1.bf16.msra.mxu0 %v2043_v41  ;;  %v1921_v41 = vld [vmem:[#allocation2 + $0x390] sm:$0xff] }
 0x394   :  { %2296 = vmatprep.subr.bf16.mxu0 %v2052_v29  ;;  %v1930_v29 = vld [vmem:[#allocation2 + $0x3d8] sm:$0xff] }
 0x395   :  { %2135 = vmatpush1.bf16.msra.mxu1 %v2055_v61  ;;  %v1865_v61 = vld [vmem:[#allocation2 + $0x1d0] sm:$0xff] }
 0x396   :  { %2145 = vmatprep.subr.bf16.mxu1 %v1810_v62  ;;  %v1874_v62 = vld [vmem:[#allocation2 + $0x218] sm:$0xff] }
 0x397   :  { %2297 = vmatpush1.bf16.msra.mxu0 %v2051_v20  ;;  %v1937_v20 = vld [vmem:[#allocation2 + $0x410] sm:$0xff] }
 0x398   :  { %2137 = vmatmul.mubr.bf16.vlgmr.msra.gmra.mrb[8].mxu1 %v8251_v11  ;;  %2298 = vmatprep.subr.bf16.mxu0 %v2060_v44  ;;  %v1946_v44 = vld [vmem:[#allocation2 + $0x458] sm:$0xff] }
 0x399   :  { %2146 = vmatpush1.bf16.msra.mxu1 %v1809_v8  ;;  %2177 = vmatprep.mubr.bf16.mxu1 %v8230_v49  ;;  %v1881_v8 = vld [vmem:[#allocation2 + $0x250] sm:$0xff] }
 0x39a   :  { %2147 = vmatprep.subr.bf16.mxu1 %v1818_v6  ;;  %v1890_v6 = vld [vmem:[#allocation2 + $0x298] sm:$0xff] }
 0x39b   :  { %2299 = vmatpush1.bf16.msra.mxu0 %v2059_v5  ;;  %v2706_v5 = vand.u32 15, %v7512_v4  ;;  %v2720_v4 = vand.u32 15, %v7543_v17  ;;  %v2727_v17 = vand.u32 15, %v7591_v31  ;;  %v1969_v31 = vld [vmem:[#allocation2 + $0x510] sm:$0xff] }
 0x39d   :  { %2148 = vmatpush1.bf16.msra.mxu1 %v1817_v54  ;;  %v1897_v54 = vld [vmem:[#allocation2 + $0x2d0] sm:$0xff]  ;;  %vm4136_vm1 = vcmp.eq.s32.totalorder %v2706_v5, %v7527_v9  ;;  %vm4138_vm9 = vcmp.eq.s32.totalorder %v2720_v4, %v7527_v9  ;;  %vm4139_vm7 = vcmp.eq.s32.totalorder %v2727_v17, %v7527_v9  ;;  %v2010_v5 = vld [vmem:[#allocation2 + $0x658] sm:$0xff] }
 0x39e   :  { %2149 = vmatprep.subr.bf16.mxu1 %v1826_v35  ;;  %2301 = vmatmul.mubr.bf16.vlgmr.msra.gmra.mrb[8].mxu0 %v8251_v11  ;;  %v1906_v35 = vld [vmem:[#allocation2 + $0x318] sm:$0xff]  ;;  %v2033_v17 = vld [vmem:[#allocation2 + $0x710] sm:$0xff] }
 0x39f   :  { %v2018_v4 = vld [vmem:[#allocation2 + $0x698] sm:$0xff] }
 0x3a1   :  { %2150 = vmatpush1.bf16.msra.mxu1 %v1825_v10  ;;  %v1913_v10 = vld [vmem:[#allocation2 + $0x350] sm:$0xff] }
 0x3a2   :  { %2151 = vmatprep.subr.bf16.mxu1 %v1834_v47  ;;  %v1922_v47 = vld [vmem:[#allocation2 + $0x398] sm:$0xff] }
 0x3a5   :  { %2152 = vmatpush1.bf16.msra.mxu1 %v1833_v24  ;;  %v1929_v24 = vld [vmem:[#allocation2 + $0x3d0] sm:$0xff] }
 0x3a6   :  { %2153 = vmatprep.subr.bf16.mxu1 %v1842_v37  ;;  %v1938_v37 = vld [vmem:[#allocation2 + $0x418] sm:$0xff] }
 0x3a9   :  { %2154 = vmatpush1.bf16.msra.mxu1 %v1841_v63  ;;  %v1945_v63 = vld [vmem:[#allocation2 + $0x450] sm:$0xff] }
 0x3aa   :  { %2155 = vmatprep.subr.bf16.mxu1 %v1850_v42  ;;  %v2699_v42 = vand.u32 15, %v7508_v3  ;;  %v2713_v3 = vand.u32 15, %v7540_v16  ;;  %v1961_v16 = vld [vmem:[#allocation2 + $0x4d0] sm:$0xff] }
 0x3ac   :  { %vm4135_vm0 = vcmp.eq.s32.totalorder %v2699_v42, %v7527_v9  ;;  %vm4137_vm6 = vcmp.eq.s32.totalorder %v2713_v3, %v7527_v9  ;;  %v2009_v3 = vld [vmem:[#allocation2 + $0x650] sm:$0xff] }
 0x3ad   :  { %2156 = vmatpush1.bf16.msra.mxu1 %v1849_v39  ;;  %v1954_v39 = vld [vmem:[#allocation2 + $0x498] sm:$0xff]  ;;  %vm7078_vm11 = vmpackc.low %vm4136_vm1, %vm4135_vm0 }
 0x3ae   :  { %2157 = vmatprep.subr.bf16.mxu1 %v1858_v26  ;;  %v2587_v26 = vand.u32 15, %v7503_v2  ;;  %7079 = vmatprep.subr.msk.bf16.mxu0 %vm7078_vm11, %v9550_v48  ;;  %vm7082_vm8 = vmpackc.low %vm4138_vm9, %vm4137_vm6 }
 0x3b0   :  { %vm4119_vm13 = vcmp.eq.s32.totalorder %v2587_v26, %v7527_v9 }
 0x3b1   :  { %2158 = vmatpush1.bf16.msra.mxu1 %v1857_v56  ;;  %v2594_v56 = vand.u32 15, %v7522_v7 }
 0x3b2   :  { %2159 = vmatprep.subr.bf16.mxu1 %v1866_v34  ;;  %v1953_v34 = vld [vmem:[#allocation2 + $0x490] sm:$0xff] }
 0x3b3   :  { %vm4120_vm14 = vcmp.eq.s32.totalorder %v2594_v56, %v7527_v9  ;;  %v9566_v56 = vld [vmem:[#allocation58_spill] sm:$0xff] }
 0x3b4   :  { %vm7080_vm5 = vmpackc.low %vm4120_vm14, %vm4119_vm13 }
 0x3b5   :  { %2160 = vmatpush1.bf16.msra.mxu1 %v1865_v61  ;;  %v1962_v61 = vld [vmem:[#allocation2 + $0x4d8] sm:$0xff]  ;;  %7081 = vmatpush3.bf16.msk.msra.mxu0 %vm7080_vm5, %v9550_v48 }
 0x3b6   :  { %2161 = vmatprep.subr.bf16.mxu1 %v1874_v62  ;;  %v2601_v62 = vand.u32 15, %v7558_v22  ;;  %7083 = vmatprep.subr.msk.bf16.mxu0 %vm7082_vm8, %v9550_v48  ;;  %v2734_v22 = vand.u32 15, %v7600_v38  ;;  %v2741_v38 = vand.u32 15, %v7660_v59  ;;  %v1977_v59 = vld [vmem:[#allocation2 + $0x550] sm:$0xff] }
 0x3b8   :  { %vm4121_vm10 = vcmp.eq.s32.totalorder %v2601_v62, %v7527_v9  ;;  %vm4140_vm15 = vcmp.eq.s32.totalorder %v2734_v22, %v7527_v9  ;;  %vm4141_vm13 = vcmp.eq.s32.totalorder %v2741_v38, %v7527_v9  ;;  %v2026_v62 = vld [vmem:[#allocation2 + $0x6d8] sm:$0xff]  ;;  %v2057_v38 = vld [vmem:[#allocation2 + $0x7d0] sm:$0xff] }
 0x3b9   :  { %2162 = vmatpush1.bf16.msra.mxu1 %v1873_v15  ;;  %v2608_v15 = vand.u32 15, %v7561_v23  ;;  %v1970_v23 = vld [vmem:[#allocation2 + $0x518] sm:$0xff]  ;;  %vm7086_vm4 = vmpackc.low %vm4140_vm15, %vm4139_vm7 }
 0x3ba   :  { %2163 = vmatprep.subr.bf16.mxu1 %v1882_v14  ;;  %v2615_v14 = vand.u32 15, %v7615_v43  ;;  %v2748_v43 = vand.u32 15, %v7663_v60  ;;  %v2755_v60 = vand.u32 15, %v7878_v12  ;;  %v1985_v12 = vld [vmem:[#allocation2 + $0x590] sm:$0xff]  ;;  %v2042_v22 = vld [vmem:[#allocation2 + $0x758] sm:$0xff] }
 0x3bb   :  { %vm4122_vm12 = vcmp.eq.s32.totalorder %v2608_v15, %v7527_v9  ;;  %v2025_v15 = vld [vmem:[#allocation2 + $0x6d0] sm:$0xff] }
 0x3bc   :  { %vm7084_vm3 = vmpackc.low %vm4122_vm12, %vm4121_vm10  ;;  %vm4123_vm0 = vcmp.eq.s32.totalorder %v2615_v14, %v7527_v9  ;;  %vm4142_vm14 = vcmp.eq.s32.totalorder %v2748_v43, %v7527_v9  ;;  %vm4143_vm10 = vcmp.eq.s32.totalorder %v2755_v60, %v7527_v9  ;;  %v2050_v14 = vld [vmem:[#allocation2 + $0x798] sm:$0xff]  ;;  %v1821_v60 = vld [vmem:[#allocation2 + $0x70] sm:$0xff] }
 0x3bd   :  { %2164 = vmatpush1.bf16.msra.mxu1 %v1881_v8  ;;  %7085 = vmatpush3.bf16.msk.msra.mxu0 %vm7084_vm3, %v9550_v48  ;;  %v2622_v8 = vand.u32 15, %v7623_v45  ;;  %v1978_v45 = vld [vmem:[#allocation2 + $0x558] sm:$0xff]  ;;  %vm7090_vm5 = vmpackc.low %vm4142_vm14, %vm4141_vm13 }
 0x3be   :  { %2165 = vmatprep.subr.bf16.mxu1 %v1890_v6  ;;  %7087 = vmatprep.subr.msk.bf16.mxu0 %vm7086_vm4, %v9550_v48  ;;  %v2629_v6 = vand.u32 15, %v7856_v57  ;;  %v2762_v57 = vand.u32 15, %v7881_v13  ;;  %v2769_v13 = vand.u32 15, %v7935_v52  ;;  %v1993_v52 = vld [vmem:[#allocation2 + $0x5d0] sm:$0xff]  ;;  %v1814_v43 = vld [vmem:[#allocation2 + $0x38] sm:$0xff] }
 0x3bf   :  { %vm4124_vm1 = vcmp.eq.s32.totalorder %v2622_v8, %v7527_v9  ;;  %v2049_v8 = vld [vmem:[#allocation2 + $0x790] sm:$0xff] }
 0x3c0   :  { %vm7088_vm11 = vmpackc.low %vm4124_vm1, %vm4123_vm0  ;;  %vm4125_vm6 = vcmp.eq.s32.totalorder %v2629_v6, %v7527_v9  ;;  %vm4144_vm12 = vcmp.eq.s32.totalorder %v2762_v57, %v7527_v9  ;;  %vm4145_vm0 = vcmp.eq.s32.totalorder %v2769_v13, %v7527_v9  ;;  %v1822_v6 = vld [vmem:[#allocation2 + $0x78] sm:$0xff] }
 0x3c1   :  { %2166 = vmatpush1.bf16.msra.mxu1 %v1889_v18  ;;  %7089 = vmatpush3.bf16.msk.msra.mxu0 %vm7088_vm11, %v9550_v48  ;;  %v2636_v18 = vand.u32 15, %v7859_v58  ;;  %v1986_v58 = vld [vmem:[#allocation2 + $0x598] sm:$0xff]  ;;  %vm7094_vm3 = vmpackc.low %vm4144_vm12, %vm4143_vm10 }
 0x3c2   :  { %2167 = vmatprep.subr.bf16.mxu1 %v1898_v33  ;;  %7091 = vmatprep.subr.msk.bf16.mxu0 %vm7090_vm5, %v9550_v48  ;;  %v2643_v33 = vand.u32 15, %v7890_v25  ;;  %v2776_v25 = vand.u32 15, %v7938_v53  ;;  %v9559_v53 = vld [vmem:[#allocation45_spill] sm:$0xff]  ;;  %v1830_v57 = vld [vmem:[#allocation2 + $0xb8] sm:$0xff] }
 0x3c3   :  { %vm4126_vm9 = vcmp.eq.s32.totalorder %v2636_v18, %v7527_v9  ;;  %v2535_v18 = vadd.s32 640, %v7503_v2  ;;  %v1846_v13 = vld [vmem:[#allocation2 + $0x138] sm:$0xff] }
 0x3c4   :  { %vm7092_vm8 = vmpackc.low %vm4126_vm9, %vm4125_vm6  ;;  %vm4127_vm7 = vcmp.eq.s32.totalorder %v2643_v33, %v7527_v9  ;;  %vm4146_vm1 = vcmp.eq.s32.totalorder %v2776_v25, %v7527_v9  ;;  %v1845_v25 = vld [vmem:[#allocation2 + $0x130] sm:$0xff] }
 0x3c5   :  { %2168 = vmatpush1.bf16.msra.mxu1 %v1897_v54  ;;  %7093 = vmatpush3.bf16.msk.msra.mxu0 %vm7092_vm8, %v9550_v48  ;;  %v2650_v54 = vand.u32 15, %v7893_v32  ;;  %v1994_v32 = vld [vmem:[#allocation2 + $0x5d8] sm:$0xff]  ;;  %vm7098_vm11 = vmpackc.low %vm4146_vm1, %vm4145_vm0 }
 0x3c6   :  { %2169 = vmatprep.subr.bf16.mxu1 %v1906_v35  ;;  %7095 = vmatprep.subr.msk.bf16.mxu0 %vm7094_vm3, %v9550_v48  ;;  %v2657_v35 = vand.u32 15, %v7952_v0  ;;  %v9560_v0 = vld [vmem:[#allocation46_spill] sm:$0xff] }
 0x3c7   :  { %vm4128_vm15 = vcmp.eq.s32.totalorder %v2650_v54, %v7527_v9  ;;  %v1829_v54 = vld [vmem:[#allocation2 + $0xb0] sm:$0xff] }
 0x3c8   :  { %vm7096_vm4 = vmpackc.low %vm4128_vm15, %vm4127_vm7  ;;  %vm4129_vm13 = vcmp.eq.s32.totalorder %v2657_v35, %v7527_v9  ;;  %v1853_v35 = vld [vmem:[#allocation2 + $0x170] sm:$0xff] }
 0x3c9   :  { %2170 = vmatpush1.bf16.msra.mxu1 %v1905_v27  ;;  %7097 = vmatpush3.bf16.msk.msra.mxu0 %vm7096_vm4, %v9550_v48  ;;  %v2664_v27 = vand.u32 15, %v7955_v1  ;;  %v2002_v1 = vld [vmem:[#allocation2 + $0x618] sm:$0xff] }
 0x3ca   :  { %2171 = vmatprep.subr.bf16.mxu1 %v1914_v28  ;;  %7099 = vmatprep.subr.msk.bf16.mxu0 %vm7098_vm11, %v9550_v48  ;;  %v2783_v28 = vand.u32 15, %v9559_v53  ;;  %v1870_v53 = vld [vmem:[#allocation2 + $0x1f8] sm:$0xff] }
 0x3cb   :  { %vm4130_vm14 = vcmp.eq.s32.totalorder %v2664_v27, %v7527_v9  ;;  %v1862_v27 = vld [vmem:[#allocation2 + $0x1b8] sm:$0xff] }
 0x3cc   :  { %vm7100_vm5 = vmpackc.low %vm4130_vm14, %vm4129_vm13  ;;  %vm4147_vm6 = vcmp.eq.s32.totalorder %v2783_v28, %v7527_v9  ;;  %v1869_v28 = vld [vmem:[#allocation2 + $0x1f0] sm:$0xff] }
 0x3cd   :  { %2172 = vmatpush1.bf16.msra.mxu1 %v1913_v10  ;;  %v2790_v10 = vand.u32 15, %v9560_v0  ;;  %7101 = vmatpush3.bf16.msk.msra.mxu0 %vm7100_vm5, %v9550_v48  ;;  %v1878_v0 = vld [vmem:[#allocation2 + $0x238] sm:$0xff] }
 0x3ce   :  { %2173 = vmatprep.subr.bf16.mxu1 %v1922_v47  ;;  %v9561_v47 = vld [vmem:[#allocation49_spill] sm:$0xff] }
 0x3cf   :  { %vm4148_vm9 = vcmp.eq.s32.totalorder %v2790_v10, %v7527_v9  ;;  %v1877_v10 = vld [vmem:[#allocation2 + $0x230] sm:$0xff] }
 0x3d0   :  { %vm7102_vm8 = vmpackc.low %vm4148_vm9, %vm4147_vm6  ;;  %vm9567_vm6 = vcmask 1041408  }
 0x3d1   :  { %2174 = vmatpush1.bf16.msra.mxu1 %v1921_v41  ;;  %v2671_v41 = vand.u32 15, %v9561_v47  ;;  %7103 = vmatprep.subr.msk.bf16.mxu0 %vm7102_vm8, %v9550_v48  ;;  %v1885_v47 = vld [vmem:[#allocation2 + $0x270] sm:$0xff]  ;;  %vm9568_vm9 = vmmov %vm9567_vm6 }
 0x3d2   :  { %2175 = vmatprep.subr.bf16.mxu1 %v1930_v29  ;;  %v9562_v29 = vld [vmem:[#allocation50_spill] sm:$0xff]  ;;  %vm9569_vm8 = vmmov %vm9567_vm6 }
 0x3d3   :  { %vm4131_vm10 = vcmp.eq.s32.totalorder %v2671_v41, %v7527_v9  ;;  %v1894_v41 = vld [vmem:[#allocation2 + $0x2b8] sm:$0xff] }
 0x3d5   :  { %2176 = vmatpush1.bf16.msra.mxu1 %v1929_v24  ;;  %v2678_v24 = vand.u32 15, %v9562_v29  ;;  %v1893_v29 = vld [vmem:[#allocation2 + $0x2b0] sm:$0xff] }
 0x3d6   :  { %2186 = vmatprep.subr.bf16.mxu1 %v1938_v37  ;;  %v2001_v37 = vld [vmem:[#allocation2 + $0x610] sm:$0xff] }
 0x3d7   :  { %vm4132_vm12 = vcmp.eq.s32.totalorder %v2678_v24, %v7527_v9  ;;  %v1902_v24 = vld [vmem:[#allocation2 + $0x2f8] sm:$0xff] }
 0x3d8   :  { %2178 = vmatmul.mubr.bf16.vlgmr.msra.gmra.mrb[12].mxu1 %v8237_v21  ;;  %vm7104_vm3 = vmpackc.low %vm4132_vm12, %vm4131_vm10 }
 0x3d9   :  { %2187 = vmatpush1.bf16.msra.mxu1 %v1937_v20  ;;  %2218 = vmatprep.mubr.bf16.mxu1 %v8242_v36  ;;  %v9563_v20 = vld [vmem:[#allocation53_spill] sm:$0xff]  ;;  %vm9570_vm10 = vmmov %vm9567_vm6 }
 0x3da   :  { %2188 = vmatprep.subr.bf16.mxu1 %v1946_v44  ;;  %v2797_v44 = vand.u32 15, %v9563_v20  ;;  %7105 = vmatpush3.bf16.msk.msra.mxu0 %vm7104_vm3, %v9550_v48  ;;  %v1910_v20 = vld [vmem:[#allocation2 + $0x338] sm:$0xff] }
 0x3dc   :  { %vm4149_vm7 = vcmp.eq.s32.totalorder %v2797_v44, %v7527_v9  ;;  %v1909_v44 = vld [vmem:[#allocation2 + $0x330] sm:$0xff] }
 0x3dd   :  { %2189 = vmatpush1.bf16.msra.mxu1 %v1945_v63  ;;  %v9564_v63 = vld [vmem:[#allocation54_spill] sm:$0xff] }
 0x3de   :  { %2190 = vmatprep.subr.bf16.mxu1 %v1954_v39  ;;  %v2804_v42 = vand.u32 15, %v9564_v63  ;;  %v9565_v39 = vld [vmem:[#allocation57_spill] sm:$0xff]  ;;  %v1918_v63 = vld [vmem:[#allocation2 + $0x378] sm:$0xff] }
 0x3df   :  { %v2685_v26 = vand.u32 15, %v9565_v39  ;;  %v1925_v39 = vld [vmem:[#allocation2 + $0x3b0] sm:$0xff] }
 0x3e0   :  { %vm4150_vm15 = vcmp.eq.s32.totalorder %v2804_v42, %v7527_v9  ;;  %v1917_v42 = vld [vmem:[#allocation2 + $0x370] sm:$0xff] }
 0x3e1   :  { %2191 = vmatpush1.bf16.msra.mxu1 %v1953_v34  ;;  %v2692_v34 = vand.u32 15, %v9566_v56  ;;  %vm7106_vm4 = vmpackc.low %vm4150_vm15, %vm4149_vm7  ;;  %vm4133_vm0 = vcmp.eq.s32.totalorder %v2685_v26, %v7527_v9  ;;  %v1934_v26 = vld [vmem:[#allocation2 + $0x3f8] sm:$0xff]  ;;  %v1933_v56 = vld [vmem:[#allocation2 + $0x3f0] sm:$0xff] }
 0x3e2   :  { %2192 = vmatprep.subr.bf16.mxu1 %v1962_v61  ;;  %7107 = vmatprep.subr.msk.bf16.mxu0 %vm7106_vm4, %v9550_v48  ;;  %v2017_v61 = vld [vmem:[#allocation2 + $0x690] sm:$0xff] }
 0x3e3   :  { %vm4134_vm1 = vcmp.eq.s32.totalorder %v2692_v34, %v7527_v9  ;;  %v1942_v34 = vld [vmem:[#allocation2 + $0x438] sm:$0xff] }
 0x3e4   :  { %vm7108_vm11 = vmpackc.low %vm4134_vm1, %vm4133_vm0 }
 0x3e5   :  { %2193 = vmatpush1.bf16.msra.mxu1 %v1961_v16  ;;  %7109 = vmatpush3.bf16.msk.msra.mxu0 %vm7108_vm11, %v9550_v48  ;;  %v2034_v16 = vld [vmem:[#allocation2 + $0x718] sm:$0xff] }
 0x3e6   :  { %2194 = vmatprep.subr.bf16.mxu1 %v1970_v23  ;;  %v2041_v23 = vld [vmem:[#allocation2 + $0x750] sm:$0xff] }
 0x3e9   :  { %2195 = vmatpush1.bf16.msra.mxu1 %v1969_v31  ;;  %v2058_v31 = vld [vmem:[#allocation2 + $0x7d8] sm:$0xff] }
 0x3ea   :  { %2196 = vmatprep.subr.bf16.mxu1 %v1978_v45  ;;  %v1813_v45 = vld [vmem:[#allocation2 + $0x30] sm:$0xff] }
 0x3ed   :  { %2197 = vmatpush1.bf16.msra.mxu1 %v1977_v59  ;;  %v2536_v59 = vadd.s32 648, %v7503_v2 }
 0x3ee   :  { %2198 = vmatprep.subr.bf16.mxu1 %v1986_v58  ;;  %v3147_v58 = vand.u32 15, %v2535_v18  ;;  %v2537_v18 = vadd.s32 656, %v7503_v2 }
 0x3ef   :  { %v3154_v33 = vand.u32 15, %v2536_v59  ;;  %v2538_v59 = vadd.s32 664, %v7503_v2 }
 0x3f0   :  { %vm4199_vm13 = vcmp.eq.s32.totalorder %v3147_v58, %v7527_v9 }
 0x3f1   :  { %2199 = vmatpush1.bf16.msra.mxu1 %v1985_v12  ;;  %vm4200_vm14 = vcmp.eq.s32.totalorder %v3154_v33, %v7527_v9  ;;  %v1838_v12 = vld [vmem:[#allocation2 + $0xf8] sm:$0xff] }
 0x3f2   :  { %2200 = vmatprep.subr.bf16.mxu1 %v1994_v32  ;;  %vm7142_vm5 = vmpackc.low %vm4200_vm14, %vm4199_vm13  ;;  %v1854_v32 = vld [vmem:[#allocation2 + $0x178] sm:$0xff] }
 0x3f3   :  { %7143 = vmatprep.subr.msk.bf16.mxu0 %vm7142_vm5, %v9550_v48 }
 0x3f5   :  { %2201 = vmatpush1.bf16.msra.mxu1 %v1993_v52  ;;  %v1861_v52 = vld [vmem:[#allocation2 + $0x1b0] sm:$0xff] }
 0x3f6   :  { %2202 = vmatprep.subr.bf16.mxu1 %v2002_v1  ;;  %v1886_v1 = vld [vmem:[#allocation2 + $0x278] sm:$0xff] }
 0x3f9   :  { %2203 = vmatpush1.bf16.msra.mxu1 %v2001_v37  ;;  %v1901_v37 = vld [vmem:[#allocation2 + $0x2f0] sm:$0xff] }
 0x3fa   :  { %2204 = vmatprep.subr.bf16.mxu1 %v2010_v5  ;;  %v1926_v5 = vld [vmem:[#allocation2 + $0x3b8] sm:$0xff] }
 0x3fd   :  { %2205 = vmatpush1.bf16.msra.mxu1 %v2009_v3  ;;  %v1941_v3 = vld [vmem:[#allocation2 + $0x430] sm:$0xff] }
 0x3fe   :  { %2206 = vmatprep.subr.bf16.mxu1 %v2018_v4  ;;  %v1950_v4 = vld [vmem:[#allocation2 + $0x478] sm:$0xff] }
 0x401   :  { %2207 = vmatpush1.bf16.msra.mxu1 %v2017_v61  ;;  %v1949_v61 = vld [vmem:[#allocation2 + $0x470] sm:$0xff] }
 0x402   :  { %2208 = vmatprep.subr.bf16.mxu1 %v2026_v62  ;;  %v1958_v62 = vld [vmem:[#allocation2 + $0x4b8] sm:$0xff] }
 0x405   :  { %2209 = vmatpush1.bf16.msra.mxu1 %v2025_v15  ;;  %v1957_v15 = vld [vmem:[#allocation2 + $0x4b0] sm:$0xff] }
 0x406   :  { %2210 = vmatprep.subr.bf16.mxu1 %v2034_v16  ;;  %v1966_v16 = vld [vmem:[#allocation2 + $0x4f8] sm:$0xff] }
 0x409   :  { %2211 = vmatpush1.bf16.msra.mxu1 %v2033_v17  ;;  %v1965_v17 = vld [vmem:[#allocation2 + $0x4f0] sm:$0xff] }
 0x40a   :  { %2212 = vmatprep.subr.bf16.mxu1 %v2042_v22  ;;  %v1974_v22 = vld [vmem:[#allocation2 + $0x538] sm:$0xff] }
 0x40d   :  { %2213 = vmatpush1.bf16.msra.mxu1 %v2041_v23  ;;  %v1973_v23 = vld [vmem:[#allocation2 + $0x530] sm:$0xff] }
 0x40e   :  { %2214 = vmatprep.subr.bf16.mxu1 %v2050_v14  ;;  %v1982_v14 = vld [vmem:[#allocation2 + $0x578] sm:$0xff] }
 0x411   :  { %2215 = vmatpush1.bf16.msra.mxu1 %v2049_v8 }
 0x412   :  { %2216 = vmatprep.subr.bf16.mxu1 %v2058_v31  ;;  %v1990_v31 = vld [vmem:[#allocation2 + $0x5b8] sm:$0xff] }
 0x415   :  { %2217 = vmatpush1.bf16.msra.mxu1 %v2057_v38  ;;  %v2520_v38 = vadd.s32 520, %v7503_v2 }
 0x416   :  { %2309 = vmatprep.subr.bf16.mxu1 %v1814_v43 }
 0x418   :  { %2219 = vmatmul.mubr.bf16.vlgmr.msra.gmra.mrb[12].mxu1 %v8251_v11 }
 0x419   :  { %2310 = vmatpush1.bf16.msra.mxu1 %v1813_v45  ;;  %2341 = vmatprep.mubr.bf16.mxu1 %v8230_v49  ;;  %v1837_v49 = vld [vmem:[#allocation2 + $0xf0] sm:$0xff] }
 0x41a   :  { %2311 = vmatprep.subr.bf16.mxu1 %v1822_v6 }
 0x41d   :  { %2312 = vmatpush1.bf16.msra.mxu1 %v1821_v60 }
 0x41e   :  { %2313 = vmatprep.subr.bf16.mxu1 %v1830_v57 }
 0x421   :  { %2314 = vmatpush1.bf16.msra.mxu1 %v1829_v54  ;;  %v2521_v54 = vadd.s32 528, %v7503_v2 }
 0x422   :  { %2315 = vmatprep.subr.bf16.mxu1 %v1838_v12 }
 0x425   :  { %2316 = vmatpush1.bf16.msra.mxu1 %v1837_v49 }
 0x426   :  { %2317 = vmatprep.subr.bf16.mxu1 %v1846_v13 }
 0x429   :  { %2318 = vmatpush1.bf16.msra.mxu1 %v1845_v25  ;;  %v1989_v25 = vld [vmem:[#allocation2 + $0x5b0] sm:$0xff] }
 0x42a   :  { %2319 = vmatprep.subr.bf16.mxu1 %v1854_v32 }
 0x42d   :  { %2320 = vmatpush1.bf16.msra.mxu1 %v1853_v35 }
 0x42e   :  { %2321 = vmatprep.subr.bf16.mxu1 %v1862_v27 }
 0x431   :  { %2322 = vmatpush1.bf16.msra.mxu1 %v1861_v52 }
 0x432   :  { %2323 = vmatprep.subr.bf16.mxu1 %v1870_v53  ;;  %v1998_v53 = vld [vmem:[#allocation2 + $0x5f8] sm:$0xff] }
 0x435   :  { %2324 = vmatpush1.bf16.msra.mxu1 %v1869_v28  ;;  %v3042_v28 = vand.u32 15, %v2520_v38 }
 0x436   :  { %2325 = vmatprep.subr.bf16.mxu1 %v1878_v0 }
 0x437   :  { %vm8375_vm3 = vcmp.eq.s32.totalorder %v3042_v28, %v7527_v9 }
 0x439   :  { %2326 = vmatpush1.bf16.msra.mxu1 %v1877_v10 }
 0x43a   :  { %2327 = vmatprep.subr.bf16.mxu1 %v1886_v1  ;;  %v3161_v1 = vand.u32 15, %v2537_v18  ;;  %v2014_v18 = vld [vmem:[#allocation2 + $0x678] sm:$0xff] }
 0x43c   :  { %vm8380_vm7 = vcmp.eq.s32.totalorder %v3161_v1, %v7527_v9  ;;  %v2022_v1 = vld [vmem:[#allocation2 + $0x6b8] sm:$0xff] }
 0x43d   :  { %2328 = vmatpush1.bf16.msra.mxu1 %v1885_v47  ;;  %v2522_v47 = vadd.s32 536, %v7503_v2 }
 0x43e   :  { %2329 = vmatprep.subr.bf16.mxu1 %v1894_v41 }
 0x441   :  { %2330 = vmatpush1.bf16.msra.mxu1 %v1893_v29 }
 0x442   :  { %2331 = vmatprep.subr.bf16.mxu1 %v1902_v24  ;;  %v3168_v24 = vand.u32 15, %v2538_v59 }
 0x444   :  { %vm8385_vm15 = vcmp.eq.s32.totalorder %v3168_v24, %v7527_v9 }
 0x445   :  { %2332 = vmatpush1.bf16.msra.mxu1 %v1901_v37  ;;  %v3049_v37 = vand.u32 15, %v2521_v54  ;;  %v2542_v54 = vadd.s32 696, %v7503_v2  ;;  %vm7146_vm11 = vmpackc.low %vm8385_vm15, %vm8380_vm7 }
 0x446   :  { %2333 = vmatprep.subr.bf16.mxu1 %v1910_v20 }
 0x447   :  { %vm8390_vm4 = vcmp.eq.s32.totalorder %v3049_v37, %v7527_v9  ;;  %v3196_v37 = vand.u32 15, %v2542_v54 }
 0x449   :  { %2334 = vmatpush1.bf16.msra.mxu1 %v1909_v44 }
 0x44a   :  { %2335 = vmatprep.subr.bf16.mxu1 %v1918_v63  ;;  %v1997_v63 = vld [vmem:[#allocation2 + $0x5f0] sm:$0xff] }
 0x44d   :  { %2336 = vmatpush1.bf16.msra.mxu1 %v1917_v42  ;;  %v9571_v42 = vld [vmem:[#allocation18_spill] sm:$0xff] }
 0x44e   :  { %2337 = vmatprep.subr.bf16.mxu1 %v1926_v5  ;;  %v2923_v5 = vand.u32 15, %v9571_v42 }
 0x451   :  { %2338 = vmatpush1.bf16.msra.mxu1 %v1925_v39  ;;  %v9572_v39 = vld [vmem:[#allocation19_spill] sm:$0xff] }
 0x452   :  { %2339 = vmatprep.subr.bf16.mxu1 %v1934_v26  ;;  %v2930_v26 = vand.u32 15, %v9572_v39 }
 0x455   :  { %2340 = vmatpush1.bf16.msra.mxu1 %v1933_v56 }
 0x456   :  { %2350 = vmatprep.subr.bf16.mxu1 %v1942_v34 }
 0x458   :  { %2342 = vmatmul.mubr.bf16.vlgmr.msra.gmra.mrb[16].mxu1 %v8237_v21  ;;  %v1981_v21 = vld [vmem:[#allocation2 + $0x570] sm:$0xff] }
 0x459   :  { %2351 = vmatpush1.bf16.msra.mxu1 %v1941_v3  ;;  %2382 = vmatprep.mubr.bf16.mxu1 %v8242_v36  ;;  %v2519_v36 = vadd.s32 512, %v7503_v2  ;;  %v2006_v3 = vld [vmem:[#allocation2 + $0x638] sm:$0xff] }
 0x45a   :  { %2352 = vmatprep.subr.bf16.mxu1 %v1950_v4 }
 0x45b   :  { %v3035_v32 = vand.u32 15, %v2519_v36  ;;  %v2005_v36 = vld [vmem:[#allocation2 + $0x630] sm:$0xff] }
 0x45d   :  { %2353 = vmatpush1.bf16.msra.mxu1 %v1949_v61  ;;  %vm8370_vm12 = vcmp.eq.s32.totalorder %v3035_v32, %v7527_v9  ;;  %v2543_v32 = vadd.s32 704, %v7503_v2 }
 0x45e   :  { %2354 = vmatprep.subr.bf16.mxu1 %v1958_v62  ;;  %vm7144_vm1 = vmpackc.low %vm8375_vm3, %vm8370_vm12 }
 0x461   :  { %2355 = vmatpush1.bf16.msra.mxu1 %v1957_v15 }
 0x462   :  { %2356 = vmatprep.subr.bf16.mxu1 %v1966_v16  ;;  %v2546_v16 = vadd.s32 728, %v7503_v2 }
 0x465   :  { %2357 = vmatpush1.bf16.msra.mxu1 %v1965_v17  ;;  %v3056_v17 = vand.u32 15, %v2522_v47 }
 0x466   :  { %2358 = vmatprep.subr.bf16.mxu1 %v1974_v22 }
 0x467   :  { %vm8403_vm0 = vcmp.eq.s32.totalorder %v3056_v17, %v7527_v9 }
 0x469   :  { %2359 = vmatpush1.bf16.msra.mxu1 %v1973_v23  ;;  %v2545_v23 = vadd.s32 720, %v7503_v2 }
 0x46a   :  { %2360 = vmatprep.subr.bf16.mxu1 %v1982_v14 }
 0x46b   :  { %v8348_v8 = vpop.f32.mrb[8].mxu1 }
 0x46c   :  { %v2391_v43 = vsel %vm9567_vm6, %v8348_v8, 0.0  ;;  %v2447_v45 = vmul.f32 %v8348_v8, %v8348_v8  ;;  %v8355_v6 = vpop.f32.mrb[9].mxu1 }
 0x46d   :  { %v2392_v60 = vrot.slane %v2391_v43, 4  ;;  %v2398_v57 = vsel %vm9568_vm9, %v8355_v6, 0.0  ;;  %v2448_v58 = vmul.f32 %v8355_v6, %v8355_v6  ;;  %v2142_v33 = vpop.f32.mrb[10].mxu1  ;;  %2361 = vmatpush1.bf16.msra.mxu1 %v1981_v21  ;;  %v2539_v21 = vadd.s32 672, %v7503_v2 }
 0x46e   :  { %v2455_v12 = vsel %vm9569_vm8, %v2447_v45, 0.0  ;;  %v2399_v49 = vrot.slane %v2398_v57, 4  ;;  %v2143_v13 = vpop.f32.mrb[11].mxu1  ;;  %2362 = vmatprep.subr.bf16.mxu1 %v1990_v31  ;;  %v2523_v45 = vadd.s32 544, %v7503_v2  ;;  %vm7148_vm8 = vmpackc.low %vm8403_vm0, %vm8390_vm4 }
 0x46f   :  { %v2393_v35 = vadd.f32 %v2392_v60, %v2391_v43  ;;  %v2456_v27 = vrot.slane %v2455_v12, 4  ;;  %v2462_v52 = vsel %vm9570_vm10, %v2448_v58, 0.0  ;;  %v2540_v43 = vadd.s32 680, %v7503_v2 }
 0x470   :  { %v2400_v0 = vadd.f32 %v2399_v49, %v2398_v57  ;;  %v2463_v10 = vrot.slane %v2462_v52, 4  ;;  %v2524_v57 = vadd.s32 552, %v7503_v2  ;;  %v2541_v58 = vadd.s32 688, %v7503_v2 }
 0x471   :  { %v2394_v41 = vrot.slane %v2393_v35, 2  ;;  %v2457_v29 = vadd.f32 %v2456_v27, %v2455_v12  ;;  %2363 = vmatpush1.bf16.msra.mxu1 %v1989_v25  ;;  %v2525_v12 = vadd.s32 560, %v7503_v2  ;;  %v2526_v49 = vadd.s32 568, %v7503_v2  ;;  %v2013_v27 = vld [vmem:[#allocation2 + $0x670] sm:$0xff] }
 0x472   :  { %v2401_v20 = vrot.slane %v2400_v0, 2  ;;  %v2464_v44 = vadd.f32 %v2463_v10, %v2462_v52  ;;  %2364 = vmatprep.subr.bf16.mxu1 %v1998_v53  ;;  %v3175_v28 = vand.u32 15, %v2539_v21  ;;  %v3063_v47 = vand.u32 15, %v2523_v45 }
 0x473   :  { %v2395_v56 = vadd.f32 %v2394_v41, %v2393_v35  ;;  %v2458_v34 = vrot.slane %v2457_v29, 2  ;;  %v2544_v35 = vadd.s32 712, %v7503_v2  ;;  %v3070_v41 = vand.u32 15, %v2524_v57 }
 0x474   :  { %v2465_v62 = vrot.slane %v2464_v44, 2  ;;  %v2402_v15 = vadd.f32 %v2401_v20, %v2400_v0  ;;  %v3182_v0 = vand.u32 15, %v2540_v43  ;;  %v3077_v20 = vand.u32 15, %v2525_v12  ;;  %v2029_v12 = vld [vmem:[#allocation2 + $0x6f0] sm:$0xff] }
 0x475   :  { %v2459_v22 = vadd.f32 %v2458_v34, %v2457_v29  ;;  %2365 = vmatpush1.bf16.msra.mxu1 %v1997_v63  ;;  %v2396_v59 = vrot.slane %v2395_v56, 1  ;;  %v3189_v29 = vand.u32 15, %v2541_v58  ;;  %v3210_v34 = vand.u32 15, %v2544_v35 }
 0x476   :  { %2366 = vmatprep.subr.bf16.mxu1 %v2006_v3  ;;  %v2403_v31 = vrot.slane %v2402_v15, 1  ;;  %v2466_v38 = vadd.f32 %v2465_v62, %v2464_v44  ;;  %v3084_v44 = vand.u32 15, %v2526_v49  ;;  %v2527_v3 = vadd.s32 576, %v7503_v2  ;;  %v2021_v62 = vld [vmem:[#allocation2 + $0x6b0] sm:$0xff] }
 0x477   :  { %v2460_v60 = vrot.slane %v2459_v22, 1  ;;  %v2397_v10 = vadd.f32 %v2396_v59, %v2395_v56  ;;  %v3203_v56 = vand.u32 15, %v2543_v32  ;;  %vm8422_vm13 = vcmp.eq.s32.totalorder %v3175_v28, %v7527_v9 }
 0x478   :  { %v2467_v33 = vrot.slane %v2466_v38, 1  ;;  %v2404_v52 = vadd.f32 %v2403_v31, %v2402_v15  ;;  %v9585_v15 = vld [vmem:[#allocation20_spill] sm:$0xff]  ;;  %vm8427_vm14 = vcmp.eq.s32.totalorder %v3182_v0, %v7527_v9  ;;  %vm8440_vm5 = vcmp.eq.s32.totalorder %v3063_v47, %v7527_v9 }
 0x479   :  { %2367 = vmatpush1.bf16.msra.mxu1 %v2005_v36  ;;  %v2461_v13 = vadd.f32 %v2460_v60, %v2459_v22  ;;  %v2811_v17 = vand.u32 15, %v9585_v15  ;;  %v2528_v36 = vadd.s32 584, %v7503_v2  ;;  %v2030_v31 = vld [vmem:[#allocation2 + $0x6f8] sm:$0xff]  ;;  %vm8445_vm6 = vcmp.eq.s32.totalorder %v3070_v41, %v7527_v9  ;;  %vm7150_vm3 = vmpackc.low %vm8427_vm14, %vm8422_vm13  ;;  %v8480_v60 = vpop.f32.mrb[8].mxu0 }
 0x47a   :  { %2368 = vmatprep.subr.bf16.mxu1 %v2014_v18  ;;  %v2468_v53 = vadd.f32 %v2467_v33, %v2466_v38  ;;  %v9590_v38 = vld [vmem:[#allocation21_spill] sm:$0xff]  ;;  %vm8450_vm9 = vcmp.eq.s32.totalorder %v3189_v29, %v7527_v9  ;;  %vm8465_vm10 = vcmp.eq.s32.totalorder %v3196_v37, %v7527_v9  ;;  %vm8470_vm12 = vcmp.eq.s32.totalorder %v3077_v20, %v7527_v9  ;;  %v8501_v32 = vpop.f32.mrb[9].mxu0  ;;  %vm7152_vm4 = vmpackc.low %vm8445_vm6, %vm8440_vm5  ;;  %v2046_v22 = vld [vmem:[#allocation2 + $0x778] sm:$0xff] }
 0x47b   :  { %v2511_v63 = vsel %vm9427_vm2, %v2397_v10, %v2461_v13  ;;  %v2818_v43 = vand.u32 15, %v9590_v38  ;;  %vm8483_vm7 = vcmp.eq.s32.totalorder %v3084_v44, %v7527_v9  ;;  %vm8488_vm15 = vcmp.eq.s32.totalorder %v3203_v56, %v7527_v9 }
 0x47c   :  { %v2512_v24 = vsel %vm9427_vm2, %v2404_v52, %v2468_v53  ;;  %v3091_v54 = vand.u32 15, %v2527_v3  ;;  %v2451_v13 = vmul.f32 %v8480_v60, %v8480_v60  ;;  %v3098_v35 = vand.u32 15, %v2528_v36  ;;  %v2038_v52 = vld [vmem:[#allocation2 + $0x738] sm:$0xff] }
 0x47d   :  { %2369 = vmatpush1.bf16.msra.mxu1 %v2013_v27  ;;  %4567 = vmatprep.mubr.f32.mxu0 %v2512_v24  ;;  %v2529_v27 = vadd.s32 592, %v7503_v2  ;;  %v2452_v0 = vmul.f32 %v8501_v32, %v8501_v32  ;;  %v2530_v10 = vadd.s32 600, %v7503_v2  ;;  %v3217_v47 = vand.u32 15, %v2545_v23 }
 0x47e   :  { %4568 = vmatmul.mubr.f32.vlgmr.msra.gmra.mrb[12].mxu0 %v2511_v63  ;;  %2370 = vmatprep.subr.bf16.mxu1 %v2022_v1  ;;  %v2306_v1 = vpop.f32.mrb[10].mxu0  ;;  %v3224_v41 = vand.u32 15, %v2546_v16  ;;  %v2547_v20 = vadd.s32 736, %v7503_v2  ;;  %v2548_v44 = vadd.s32 744, %v7503_v2  ;;  %v2037_v63 = vld [vmem:[#allocation2 + $0x730] sm:$0xff]  ;;  %vm8534_vm14 = vcmp.eq.s32.totalorder %v3091_v54, %v7527_v9 }
 0x47f   :  { %7145 = vmatpush3.bf16.msk.msra.mxu0 %vm7144_vm1, %v9550_v48  ;;  %vm8493_vm1 = vcmp.eq.s32.totalorder %v3210_v34, %v7527_v9  ;;  %v2307_v29 = vpop.f32.mrb[11].mxu0  ;;  %v3112_v23 = vand.u32 15, %v2530_v10  ;;  %v2531_v16 = vadd.s32 608, %v7503_v2  ;;  %v2532_v54 = vadd.s32 616, %v7503_v2 }
 0x480   :  { %7147 = vmatprep.subr.msk.bf16.mxu0 %vm7146_vm11, %v9550_v48  ;;  %vm9607_vm11 = vcmask 1041408   ;;  %vm7158_vm5 = vmpackc.low %vm8493_vm1, %vm8488_vm15  ;;  %vm8566_vm6 = vcmp.eq.s32.totalorder %v3217_v47, %v7527_v9  ;;  %v2534_v29 = vadd.s32 632, %v7503_v2  ;;  %vm8622_vm1 = vcmp.eq.s32.totalorder %v2923_v5, %v7527_v9  ;;  %v9633_v5 = vld [vmem:[#allocation22_spill] sm:$0xff] }
 0x481   :  { %2371 = vmatpush1.bf16.msra.mxu1 %v2021_v62  ;;  %v2419_v49 = vsel %vm9607_vm11, %v8480_v60, 0.0  ;;  %vm9608_vm2 = vmmov %vm9607_vm11  ;;  %vm8589_vm11 = vcmp.eq.s32.totalorder %v3112_v23, %v7527_v9  ;;  %v3119_v61 = vand.u32 15, %v2531_v16  ;;  %v3126_v57 = vand.u32 15, %v2532_v54 }
 0x482   :  { %2372 = vmatprep.subr.bf16.mxu1 %v2030_v31  ;;  %v2420_v53 = vrot.slane %v2419_v49, 4  ;;  %v2426_v28 = vsel %vm9608_vm2, %v8501_v32, 0.0  ;;  %vm9609_vm0 = vmmov %vm9608_vm2  ;;  %v3105_v31 = vand.u32 15, %v2529_v27  ;;  %v2549_v27 = vadd.s32 752, %v7503_v2 }
 0x483   :  { %7149 = vmatpush3.bf16.msk.msra.mxu0 %vm7148_vm8, %v9550_v48  ;;  %v2483_v14 = vsel %vm9609_vm0, %v2451_v13, 0.0  ;;  %v2427_v25 = vrot.slane %v2426_v28, 4  ;;  %vm7154_vm2 = vmpackc.low %vm8465_vm10, %vm8450_vm9  ;;  %vm8539_vm8 = vcmp.eq.s32.totalorder %v3098_v35, %v7527_v9  ;;  %vm8571_vm9 = vcmp.eq.s32.totalorder %v3224_v41, %v7527_v9  ;;  %v2045_v13 = vld [vmem:[#allocation2 + $0x770] sm:$0xff] }
 0x484   :  { %7151 = vmatprep.subr.msk.bf16.mxu0 %vm7150_vm3, %v9550_v48  ;;  %v2484_v24 = vrot.slane %v2483_v14, 4  ;;  %vm9610_vm13 = vmmov %vm9609_vm0  ;;  %v2421_v21 = vadd.f32 %v2420_v53, %v2419_v49  ;;  %v3238_v49 = vand.u32 15, %v2548_v44  ;;  %vm8584_vm10 = vcmp.eq.s32.totalorder %v3105_v31, %v7527_v9 }
 0x485   :  { %2373 = vmatpush1.bf16.msra.mxu1 %v2029_v12  ;;  %v2490_v37 = vsel %vm9610_vm13, %v2452_v0, 0.0  ;;  %v2428_v56 = vadd.f32 %v2427_v25, %v2426_v28  ;;  %vm7156_vm3 = vmpackc.low %vm8483_vm7, %vm8470_vm12  ;;  %v3231_v12 = vand.u32 15, %v2547_v20  ;;  %v2054_v28 = vld [vmem:[#allocation2 + $0x7b8] sm:$0xff]  ;;  %v2533_v41 = vadd.s32 624, %v7503_v2 }
 0x486   :  { %2374 = vmatprep.subr.bf16.mxu1 %v2038_v52  ;;  %v2491_v34 = vrot.slane %v2490_v37, 4  ;;  %v2485_v36 = vadd.f32 %v2484_v24, %v2483_v14  ;;  %v2550_v52 = vadd.s32 760, %v7503_v2  ;;  %v2422_v0 = vrot.slane %v2421_v21, 2  ;;  %vm7160_vm12 = vmpackc.low %vm8539_vm8, %vm8534_vm14  ;;  %v2053_v24 = vld [vmem:[#allocation2 + $0x7b0] sm:$0xff]  ;;  %v9708_v14 = vld [vmem:[#allocation48_spill] sm:$0xff] }
 0x487   :  { %7153 = vmatpush3.bf16.msk.msra.mxu0 %vm7152_vm4, %v9550_v48  ;;  %v2429_v18 = vrot.slane %v2428_v56, 2  ;;  %vm7162_vm7 = vmpackc.low %vm8571_vm9, %vm8566_vm6  ;;  %vm8608_vm4 = vcmp.eq.s32.totalorder %v3231_v12, %v7527_v9  ;;  %vm8613_vm15 = vcmp.eq.s32.totalorder %v3238_v49, %v7527_v9  ;;  %vm8629_vm0 = vcmp.eq.s32.totalorder %v2930_v26, %v7527_v9  ;;  %v9634_v26 = vld [vmem:[#allocation23_spill] sm:$0xff]  ;;  %v9647_v49 = vld [vmem:[#allocation25_spill] sm:$0xff] }
 0x488   :  { %7155 = vmatprep.subr.msk.bf16.mxu0 %vm7154_vm2, %v9550_v48  ;;  %v2492_v45 = vadd.f32 %v2491_v34, %v2490_v37  ;;  %v2486_v10 = vrot.slane %v2485_v36, 2  ;;  %v3245_v37 = vand.u32 15, %v2549_v27  ;;  %v3252_v20 = vand.u32 15, %v2550_v52  ;;  %vm7164_vm13 = vmpackc.low %vm8589_vm11, %vm8584_vm10  ;;  %v9676_v34 = vld [vmem:[#allocation35_spill] sm:$0xff] }
 0x489   :  { %2375 = vmatpush1.bf16.msra.mxu1 %v2037_v63  ;;  %v2430_v53 = vadd.f32 %v2429_v18, %v2428_v56  ;;  %v2062_v56 = vld [vmem:[#allocation2 + $0x7f8] sm:$0xff]  ;;  %v2423_v31 = vadd.f32 %v2422_v0, %v2421_v21  ;;  %vm8642_vm2 = vcmp.eq.s32.totalorder %v2811_v17, %v7527_v9  ;;  %v2937_v39 = vand.u32 15, %v9633_v5  ;;  %vm7166_vm14 = vmpackc.low %vm8613_vm15, %vm8608_vm4 }
 0x48a   :  { %2376 = vmatprep.subr.bf16.mxu1 %v2046_v22  ;;  %v2493_v35 = vrot.slane %v2492_v45, 2  ;;  %v2487_v23 = vadd.f32 %v2486_v10, %v2485_v36  ;;  %v2944_v18 = vand.u32 15, %v9634_v26  ;;  %vm8663_vm8 = vcmp.eq.s32.totalorder %v3119_v61, %v7527_v9  ;;  %v2061_v36 = vld [vmem:[#allocation2 + $0x7f0] sm:$0xff]  ;;  %vm9658_vm4 = vmpackc.low %vm8629_vm0, %vm8622_vm1  ;;  %v9661_v61 = vld [vmem:[#allocation28_spill] sm:$0xff] }
 0x48b   :  { %7157 = vmatpush3.bf16.msk.msra.mxu0 %vm7156_vm3, %v9550_v48  ;;  %v2431_v25 = vrot.slane %v2430_v53, 1  ;;  %vm8668_vm3 = vcmp.eq.s32.totalorder %v3126_v57, %v7527_v9  ;;  %v3133_v62 = vand.u32 15, %v2533_v41  ;;  %v3140_v21 = vand.u32 15, %v2534_v29  ;;  %v9683_v26 = vld [vmem:[#allocation37_spill] sm:$0xff]  ;;  %v9701_v52 = vld [vmem:[#allocation43_spill] sm:$0xff] }
 0x48c   :  { %7159 = vmatprep.subr.msk.bf16.mxu0 %vm7158_vm5, %v9550_v48  ;;  %v2494_v47 = vadd.f32 %v2493_v35, %v2492_v45  ;;  %v9639_v45 = vld [vmem:[#allocation24_spill] sm:$0xff]  ;;  %vm8674_vm5 = vcmp.eq.s32.totalorder %v3245_v37, %v7527_v9  ;;  %vm8679_vm6 = vcmp.eq.s32.totalorder %v3252_v20, %v7527_v9  ;;  %vm9644_vm9 = vcmask 1040384   ;;  %vm7168_vm10 = vmpackc.low %vm8668_vm3, %vm8663_vm8  ;;  %v9670_v37 = vld [vmem:[#allocation33_spill] sm:$0xff] }
 0x48d   :  { %2377 = vmatpush1.bf16.msra.mxu1 %v2045_v13  ;;  %v2432_v44 = vadd.f32 %v2431_v25, %v2430_v53  ;;  %v2825_v16 = vand.u32 15, %v9639_v45  ;;  %v2832_v13 = vand.u32 15, %v9647_v49  ;;  %v2424_v35 = vrot.slane %v2423_v31, 1  ;;  %vm7170_vm11 = vmpackc.low %vm8679_vm6, %vm8674_vm5  ;;  %v9690_v45 = vld [vmem:[#allocation40_spill] sm:$0xff]  ;;  %v9696_v49 = vld [vmem:[#allocation42_spill] sm:$0xff] }
 0x48e   :  { %2378 = vmatprep.subr.bf16.mxu1 %v2054_v28  ;;  %v2495_v63 = vrot.slane %v2494_v47, 1  ;;  %v2488_v27 = vrot.slane %v2487_v23, 1  ;;  %v9650_v38 = vmov 0  ;;  %v9653_v28 = vld [vmem:[#allocation27_spill] sm:$0xff]  ;;  %v2839_v57 = vand.u32 15, %v9661_v61 }
 0x48f   :  { %7161 = vmatpush3.bf16.msk.msra.mxu0 %vm7160_vm12, %v9550_v48  ;;  %vm8708_vm12 = vcmp.eq.s32.totalorder %v2944_v18, %v7527_v9  ;;  %v2958_v0 = vand.u32 15, %v9653_v28  ;;  %vm8759_vm1 = vcmp.eq.s32.totalorder %v2832_v13, %v7527_v9  ;;  %v2425_v33 = vadd.f32 %v2424_v35, %v2423_v31  ;;  %v9677_v31 = vld [vmem:[#allocation36_spill] sm:$0xff]  ;;  %v9707_v10 = vld [vmem:[#allocation47_spill] sm:$0xff] }
 0x490   :  { %7163 = vmatprep.subr.msk.bf16.mxu0 %vm7162_vm7, %v9550_v48  ;;  %v2496_v15 = vadd.f32 %v2495_v63, %v2494_v47  ;;  %vm8691_vm7 = vcmp.eq.s32.totalorder %v2818_v43, %v7527_v9  ;;  %v9651_v38 = vsel %vm8708_vm12, 4294967295, %v9650_v38  ;;  %v9652_v43 = vld [vmem:[#allocation26_spill] sm:$0xff]  ;;  %vm8734_vm12 = vcmp.eq.s32.totalorder %v3140_v21, %v7527_v9  ;;  %v9665_v47 = vld [vmem:[#allocation29_spill] sm:$0xff]  ;;  %v9689_v21 = vld [vmem:[#allocation39_spill] sm:$0xff] }
 0x491   :  { %2379 = vmatpush1.bf16.msra.mxu1 %v2053_v24  ;;  %v2951_v53 = vand.u32 15, %v9652_v43  ;;  %vm7112_vm15 = vmpackc.low %vm8691_vm7, %vm8642_vm2  ;;  %vm9662_vm8 = vnez %v9651_v38  ;;  %v2846_v58 = vand.u32 15, %v9665_v47  ;;  %v2489_v41 = vadd.f32 %v2488_v27, %v2487_v23  ;;  %v9702_v43 = vld [vmem:[#allocation44_spill] sm:$0xff]  ;;  %v9713_v47 = vld [vmem:[#allocation51_spill] sm:$0xff] }
 0x492   :  { %2380 = vmatprep.subr.bf16.mxu1 %v2062_v56  ;;  %v2516_v4 = vsel %vm9644_vm9, %v2432_v44, %v2496_v15  ;;  %vm8703_vm9 = vcmp.eq.s32.totalorder %v2937_v39, %v7527_v9  ;;  %v2965_v20 = vand.u32 15, %v9670_v37  ;;  %v9671_v44 = vld [vmem:[#allocation34_spill] sm:$0xff]  ;;  %vm8800_vm6 = vcmp.eq.s32.totalorder %v2839_v57, %v7527_v9  ;;  %v9717_v24 = vld [vmem:[#allocation55_spill] sm:$0xff]  ;;  %v9720_v56 = vld [vmem:[#allocation60_spill] sm:$0xff] }
 0x493   :  { %7165 = vmatpush3.bf16.msk.msra.mxu0 %vm7164_vm13, %v9550_v48  ;;  %4707 = vmatprep.mubr.f32.mxu0 %v2516_v4  ;;  %vm8729_vm13 = vcmp.eq.s32.totalorder %v3133_v62, %v7527_v9  ;;  %vm7114_vm3 = vmpackc.low %vm9662_vm8, %vm8703_vm9  ;;  %vm8767_vm0 = vcmp.eq.s32.totalorder %v2951_v53, %v7527_v9  ;;  %vm8772_vm9 = vcmp.eq.s32.totalorder %v2958_v0, %v7527_v9  ;;  %v2972_v63 = vand.u32 15, %v9671_v44  ;;  %v9684_v15 = vld [vmem:[#allocation38_spill] sm:$0xff]  ;;  %v9695_v4 = vld [vmem:[#allocation41_spill] sm:$0xff] }
 0x494   :  { %7167 = vmatprep.subr.msk.bf16.mxu0 %vm7166_vm14, %v9550_v48  ;;  %vm8749_vm14 = vcmp.eq.s32.totalorder %v2825_v16, %v7527_v9  ;;  %vm8809_vm2 = vcmp.eq.s32.totalorder %v2846_v58, %v7527_v9  ;;  %v2853_v22 = vand.u32 15, %v9676_v34  ;;  %v2860_v23 = vand.u32 15, %v9677_v31 }
 0x495   :  { %2381 = vmatpush1.bf16.msra.mxu1 %v2061_v36  ;;  %vm7116_vm5 = vmpackc.low %vm8759_vm1, %vm8749_vm14  ;;  %vm9678_vm7 = vcmask 1040384   ;;  %v2979_v18 = vand.u32 15, %v9683_v26  ;;  %v2986_v17 = vand.u32 15, %v9684_v15  ;;  %v2867_v36 = vand.u32 15, %v9689_v21 }
 0x496   :  { %7111 = vmatprep.subr.msk.bf16.mxu1 %vm9658_vm4, %v9550_v48  ;;  %v2515_v42 = vsel %vm9678_vm7, %v2425_v33, %v2489_v41  ;;  %vm7120_vm4 = vmpackc.low %vm8809_vm2, %vm8800_vm6  ;;  %vm8840_vm14 = vcmp.eq.s32.totalorder %v2853_v22, %v7527_v9  ;;  %vm8845_vm8 = vcmp.eq.s32.totalorder %v2860_v23, %v7527_v9  ;;  %v2874_v16 = vand.u32 15, %v9690_v45  ;;  %v9714_v33 = vld [vmem:[#allocation52_spill] sm:$0xff] }
 0x497   :  { %7169 = vmatpush3.bf16.msk.msra.mxu0 %vm7168_vm10, %v9550_v48  ;;  %vm7172_vm10 = vmpackc.low %vm8734_vm12, %vm8729_vm13  ;;  %vm8823_vm13 = vcmp.eq.s32.totalorder %v2972_v63, %v7527_v9  ;;  %vm8858_vm1 = vcmp.eq.s32.totalorder %v2986_v17, %v7527_v9  ;;  %v2993_v12 = vand.u32 15, %v9695_v4  ;;  %v3000_v13 = vand.u32 15, %v9696_v49  ;;  %v9719_v63 = vld [vmem:[#allocation59_spill] sm:$0xff] }
 0x498   :  { %2383 = vmatmul.mubr.bf16.vlgmr.msra.gmra.mrb[16].mxu1 %v8251_v11  ;;  %7171 = vmatprep.subr.msk.bf16.mxu0 %vm7170_vm11, %v9550_v48  ;;  %vm7118_vm12 = vmpackc.low %vm8772_vm9, %vm8767_vm0  ;;  %vm8818_vm11 = vcmp.eq.s32.totalorder %v2965_v20, %v7527_v9  ;;  %v2881_v38 = vand.u32 15, %v9701_v52  ;;  %v2888_v53 = vand.u32 15, %v9702_v43  ;;  %v3007_v1 = vand.u32 15, %v9707_v10  ;;  %v9718_v20 = vld [vmem:[#allocation56_spill] sm:$0xff] }
 0x499   :  { %7113 = vmatpush3.bf16.msk.msra.mxu1 %vm7112_vm15, %v9550_v48  ;;  %vm7122_vm15 = vmpackc.low %vm8823_vm13, %vm8818_vm11  ;;  %vm8887_vm6 = vcmp.eq.s32.totalorder %v2993_v12, %v7527_v9  ;;  %v3014_v61 = vand.u32 15, %v9708_v14  ;;  %v2895_v58 = vand.u32 15, %v9713_v47  ;;  %v2902_v41 = vand.u32 15, %v9714_v33 }
 0x49a   :  { %7115 = vmatprep.subr.msk.bf16.mxu1 %vm7114_vm3, %v9550_v48  ;;  %vm8853_vm3 = vcmp.eq.s32.totalorder %v2979_v18, %v7527_v9  ;;  %vm7124_vm0 = vmpackc.low %vm8845_vm8, %vm8840_vm14  ;;  %vm8909_vm11 = vcmp.eq.s32.totalorder %v2881_v38, %v7527_v9  ;;  %vm8914_vm13 = vcmp.eq.s32.totalorder %v2888_v53, %v7527_v9  ;;  %v3021_v37 = vand.u32 15, %v9717_v24 }
 0x49b   :  { %7173 = vmatpush3.bf16.msk.msra.mxu0 %vm7172_vm10, %v9550_v48  ;;  %vm7126_vm9 = vmpackc.low %vm8858_vm1, %vm8853_vm3  ;;  %vm8875_vm10 = vcmp.eq.s32.totalorder %v2867_v36, %v7527_v9  ;;  %v3028_v44 = vand.u32 15, %v9718_v20  ;;  %vm4163_vm3 = vcmp.eq.s32.totalorder %v2895_v58, %v7527_v9  ;;  %vm4164_vm1 = vcmp.eq.s32.totalorder %v2902_v41, %v7527_v9 }
 0x49c   :  { %vm7132_vm14 = vmpackc.low %vm8914_vm13, %vm8909_vm11  ;;  %v2909_v11 = vand.u32 15, %v9719_v63  ;;  %v2916_v34 = vand.u32 15, %v9720_v56  ;;  %v2567_v22 = vadd.s32 896, %v7503_v2  ;;  %v2568_v31 = vadd.s32 904, %v7503_v2 }
 0x49d   :  { %7117 = vmatpush3.bf16.msk.msra.mxu1 %vm7116_vm5, %v9550_v48  ;;  %vm8880_vm5 = vcmp.eq.s32.totalorder %v2874_v16, %v7527_v9  ;;  %v2551_v16 = vadd.s32 768, %v7503_v2  ;;  %v2552_v12 = vadd.s32 776, %v7503_v2  ;;  %v2569_v35 = vadd.s32 912, %v7503_v2 }
 0x49e   :  { %7119 = vmatprep.subr.msk.bf16.mxu1 %vm7118_vm12, %v9550_v48  ;;  %4708 = vmatmul.mubr.f32.vlgmr.msra.gmra.mrb[14].mxu0 %v2515_v42  ;;  %vm8892_vm12 = vcmp.eq.s32.totalorder %v3000_v13, %v7527_v9  ;;  %vm7128_vm2 = vmpackc.low %vm8880_vm5, %vm8875_vm10  ;;  %v3371_v23 = vand.u32 15, %v2567_v22  ;;  %v3378_v42 = vand.u32 15, %v2568_v31  ;;  %v2570_v27 = vadd.s32 920, %v7503_v2 }
 0x49f   :  { %5034 = vmatprep.mubr.f32.mxu0 %v7425_v51  ;;  %vm7130_vm7 = vmpackc.low %vm8892_vm12, %vm8887_vm6  ;;  %vm4165_vm6 = vcmp.eq.s32.totalorder %v2909_v11, %v7527_v9  ;;  %vm4166_vm12 = vcmp.eq.s32.totalorder %v2916_v34, %v7527_v9  ;;  %v2553_v43 = vadd.s32 784, %v7503_v2  ;;  %v2554_v53 = vadd.s32 792, %v7503_v2 }
 0x4a0   :  { %vm7136_vm10 = vmpackc.low %vm4164_vm1, %vm4163_vm3  ;;  %vm4232_vm11 = vcmp.eq.s32.totalorder %v3378_v42, %v7527_v9  ;;  %v3259_v14 = vand.u32 15, %v2551_v16  ;;  %v3385_v47 = vand.u32 15, %v2569_v35  ;;  %v3392_v33 = vand.u32 15, %v2570_v27 }
 0x4a1   :  { %7121 = vmatpush3.bf16.msk.msra.mxu1 %vm7120_vm4, %v9550_v48  ;;  %vm8921_vm4 = vcmp.eq.s32.totalorder %v3007_v1, %v7527_v9  ;;  %v3273_v41 = vand.u32 15, %v2553_v43  ;;  %v3280_v29 = vand.u32 15, %v2554_v53  ;;  %v2571_v20 = vadd.s32 928, %v7503_v2 }
 0x4a2   :  { %7123 = vmatprep.subr.msk.bf16.mxu1 %vm7122_vm15, %v9550_v48  ;;  %vm4180_vm15 = vcmp.eq.s32.totalorder %v3014_v61, %v7527_v9  ;;  %v3266_v61 = vand.u32 15, %v2552_v12  ;;  %vm8977_vm3 = vcmp.eq.s32.totalorder %v3259_v14, %v7527_v9  ;;  %v2555_v31 = vadd.s32 800, %v7503_v2 }
 0x4a3   :  { %vm7134_vm8 = vmpackc.low %vm4180_vm15, %vm8921_vm4  ;;  %vm9721_vm4 = vcmask 1041408   ;;  %v2573_v42 = vadd.s32 944, %v7503_v2  ;;  %v2557_v27 = vadd.s32 816, %v7503_v2  ;;  %v2575_v53 = vadd.s32 960, %v7503_v2 }
 0x4a4   :  { %vm9722_vm15 = vmmov %vm9721_vm4  ;;  %vm8982_vm1 = vcmp.eq.s32.totalorder %v3266_v61, %v7527_v9  ;;  %v2560_v14 = vadd.s32 840, %v7503_v2 }
 0x4a5   :  { %7125 = vmatpush3.bf16.msk.msra.mxu1 %vm7124_vm0, %v9550_v48  ;;  %vm4181_vm0 = vcmp.eq.s32.totalorder %v3021_v37, %v7527_v9  ;;  %v3301_v61 = vand.u32 15, %v2557_v27  ;;  %v2566_v27 = vadd.s32 888, %v7503_v2 }
 0x4a6   :  { %7127 = vmatprep.subr.msk.bf16.mxu1 %vm7126_vm9, %v9550_v48  ;;  %vm4182_vm9 = vcmp.eq.s32.totalorder %v3028_v44, %v7527_v9  ;;  %v2572_v44 = vadd.s32 936, %v7503_v2 }
 0x4a7   :  { %vm7138_vm5 = vmpackc.low %vm4182_vm9, %vm4181_vm0  ;;  %vm8990_vm0 = vcmp.eq.s32.totalorder %v3385_v47, %v7527_v9  ;;  %vm8995_vm9 = vcmp.eq.s32.totalorder %v3392_v33, %v7527_v9  ;;  %v2578_v47 = vadd.s32 984, %v7503_v2 }
 0x4a9   :  { %7129 = vmatpush3.bf16.msk.msra.mxu1 %vm7128_vm2, %v9550_v48  ;;  %vm7140_vm2 = vmpackc.low %vm4166_vm12, %vm4165_vm6  ;;  %vm9737_vm6 = vcmask 1040384   ;;  %v3448_v34 = vand.u32 15, %v2578_v47 }
 0x4aa   :  { %7131 = vmatprep.subr.msk.bf16.mxu1 %vm7130_vm7, %v9550_v48  ;;  %vm4231_vm7 = vcmp.eq.s32.totalorder %v3371_v23, %v7527_v9  ;;  %v2556_v23 = vadd.s32 808, %v7503_v2  ;;  %vm7176_vm12 = vmpackc.low %vm8982_vm1, %vm8977_vm3 }
 0x4ab   :  { %vm7174_vm13 = vmpackc.low %vm4232_vm11, %vm4231_vm7 }
 0x4ac   :  { %v3294_v12 = vand.u32 15, %v2556_v23  ;;  %vm7178_vm7 = vmpackc.low %vm8995_vm9, %vm8990_vm0  ;;  %v2579_v23 = vadd.s32 992, %v7503_v2 }
 0x4ad   :  { %7133 = vmatpush3.bf16.msk.msra.mxu1 %vm7132_vm14, %v9550_v48  ;;  %vm9723_vm14 = vmmov %vm9721_vm4 }
 0x4ae   :  { %7135 = vmatprep.subr.msk.bf16.mxu1 %vm7134_vm8, %v9550_v48  ;;  %vm9724_vm8 = vmmov %vm9721_vm4 }
 0x4b1   :  { %7137 = vmatpush3.bf16.msk.msra.mxu1 %vm7136_vm10, %v9550_v48  ;;  %vm9001_vm10 = vcmp.eq.s32.totalorder %v3273_v41, %v7527_v9  ;;  %v3427_v41 = vand.u32 15, %v2575_v53 }
 0x4b2   :  { %7139 = vmatprep.subr.msk.bf16.mxu1 %vm7138_vm5, %v9550_v48  ;;  %vm9006_vm5 = vcmp.eq.s32.totalorder %v3280_v29, %v7527_v9 }
 0x4b5   :  { %7141 = vmatpush3.bf16.msk.msra.mxu1 %vm7140_vm2, %v9550_v48  ;;  %vm9738_vm2 = vmmov %vm9737_vm6 }
 0x4b6   :  { %7175 = vmatprep.subr.msk.bf16.mxu1 %vm7174_vm13, %v9550_v48 }
 0x4eb   :  { %v8954_v5 = vpop.f32.mrb[12].mxu1 }
 0x4ec   :  { %v2405_v39 = vsel %vm9721_vm4, %v8954_v5, 0.0  ;;  %v2449_v26 = vmul.f32 %v8954_v5, %v8954_v5  ;;  %v8960_v18 = vpop.f32.mrb[13].mxu1  ;;  %vm7180_vm4 = vmpackc.low %vm9006_vm5, %vm9001_vm10  ;;  %vm9081_vm10 = vcmp.eq.s32.totalorder %v3301_v61, %v7527_v9 }
 0x4ed   :  { %v2406_v15 = vrot.slane %v2405_v39, 4  ;;  %v2412_v17 = vsel %vm9722_vm15, %v8960_v18, 0.0  ;;  %v2450_v3 = vmul.f32 %v8960_v18, %v8960_v18  ;;  %v2224_v62 = vpop.f32.mrb[14].mxu1 }
 0x4ee   :  { %v2469_v21 = vsel %vm9723_vm14, %v2449_v26, 0.0  ;;  %v2413_v36 = vrot.slane %v2412_v17, 4  ;;  %v2225_v45 = vpop.f32.mrb[15].mxu1  ;;  %vm9046_vm14 = vcmp.eq.s32.totalorder %v3294_v12, %v7527_v9 }
 0x4ef   :  { %v2407_v54 = vadd.f32 %v2406_v15, %v2405_v39  ;;  %v2470_v59 = vrot.slane %v2469_v21, 4  ;;  %v2476_v4 = vsel %vm9724_vm8, %v2450_v3, 0.0 }
 0x4f0   :  { %v2414_v49 = vadd.f32 %v2413_v36, %v2412_v17  ;;  %v2477_v13 = vrot.slane %v2476_v4, 4  ;;  %v2574_v17 = vadd.s32 952, %v7503_v2  ;;  %v3406_v36 = vand.u32 15, %v2572_v44 }
 0x4f1   :  { %v2408_v52 = vrot.slane %v2407_v54, 2  ;;  %v2471_v38 = vadd.f32 %v2470_v59, %v2469_v21  ;;  %v3399_v21 = vand.u32 15, %v2571_v20  ;;  %v2561_v20 = vadd.s32 848, %v7503_v2 }
 0x4f2   :  { %v2415_v28 = vrot.slane %v2414_v49, 2  ;;  %v2478_v0 = vadd.f32 %v2477_v13, %v2476_v4  ;;  %v3287_v4 = vand.u32 15, %v2555_v31  ;;  %v3420_v35 = vand.u32 15, %v2574_v17 }
 0x4f3   :  { %v2409_v10 = vadd.f32 %v2408_v52, %v2407_v54  ;;  %v2472_v1 = vrot.slane %v2471_v38, 2  ;;  %v2558_v52 = vadd.s32 824, %v7503_v2  ;;  %vm9023_vm11 = vcmp.eq.s32.totalorder %v3399_v21, %v7527_v9 }
 0x4f4   :  { %v2479_v57 = vrot.slane %v2478_v0, 2  ;;  %v2416_v25 = vadd.f32 %v2415_v28, %v2414_v49  ;;  %v3413_v49 = vand.u32 15, %v2573_v42  ;;  %vm9028_vm13 = vcmp.eq.s32.totalorder %v3406_v36, %v7527_v9 }
 0x4f5   :  { %v2473_v58 = vadd.f32 %v2472_v1, %v2471_v38  ;;  %v2410_v63 = vrot.slane %v2409_v10, 1  ;;  %v2576_v28 = vadd.s32 968, %v7503_v2  ;;  %vm9041_vm15 = vcmp.eq.s32.totalorder %v3287_v4, %v7527_v9  ;;  %vm7182_vm8 = vmpackc.low %vm9028_vm13, %vm9023_vm11 }
 0x4f6   :  { %v2417_v24 = vrot.slane %v2416_v25, 1  ;;  %v2480_v37 = vadd.f32 %v2479_v57, %v2478_v0  ;;  %v2559_v1 = vadd.s32 832, %v7503_v2  ;;  %v3308_v57 = vand.u32 15, %v2558_v52  ;;  %vm7184_vm0 = vmpackc.low %vm9046_vm14, %vm9041_vm15 }
 0x4f7   :  { %v2474_v11 = vrot.slane %v2473_v58, 1  ;;  %v2411_v45 = vadd.f32 %v2410_v63, %v2409_v10  ;;  %vm9059_vm3 = vcmp.eq.s32.totalorder %v3413_v49, %v7527_v9  ;;  %vm9064_vm1 = vcmp.eq.s32.totalorder %v3420_v35, %v7527_v9 }
 0x4f8   :  { %v2481_v22 = vrot.slane %v2480_v37, 1  ;;  %v2418_v3 = vadd.f32 %v2417_v24, %v2416_v25  ;;  %v2577_v25 = vadd.s32 976, %v7503_v2  ;;  %v3434_v29 = vand.u32 15, %v2576_v28  ;;  %vm7186_vm9 = vmpackc.low %vm9064_vm1, %vm9059_vm3 }
 0x4f9   :  { %v2475_v39 = vadd.f32 %v2474_v11, %v2473_v58  ;;  %v3315_v24 = vand.u32 15, %v2559_v1  ;;  %v2562_v44 = vadd.s32 856, %v7503_v2  ;;  %vm9086_vm5 = vcmp.eq.s32.totalorder %v3308_v57, %v7527_v9 }
 0x4fa   :  { %v2482_v62 = vadd.f32 %v2481_v22, %v2480_v37  ;;  %v3322_v37 = vand.u32 15, %v2560_v14  ;;  %v3441_v56 = vand.u32 15, %v2577_v25  ;;  %v2580_v42 = vadd.s32 1000, %v7503_v2 }
 0x4fb   :  { %v2513_v13 = vsel %vm9738_vm2, %v2411_v45, %v2475_v39  ;;  %vm7188_vm2 = vmpackc.low %vm9086_vm5, %vm9081_vm10  ;;  %v3329_v15 = vand.u32 15, %v2561_v20  ;;  %v3336_v17 = vand.u32 15, %v2562_v44  ;;  %vm9128_vm15 = vcmp.eq.s32.totalorder %v3448_v34, %v7527_v9 }
 0x4fc   :  { %v2514_v59 = vsel %vm9737_vm6, %v2418_v3, %v2482_v62  ;;  %vm9091_vm6 = vcmp.eq.s32.totalorder %v3427_v41, %v7527_v9  ;;  %vm9114_vm11 = vcmp.eq.s32.totalorder %v3322_v37, %v7527_v9  ;;  %v2563_v21 = vadd.s32 864, %v7503_v2 }
 0x4fd   :  { %4637 = vmatprep.mubr.f32.mxu1 %v2514_v59  ;;  %v2564_v36 = vadd.s32 872, %v7503_v2  ;;  %v3455_v45 = vand.u32 15, %v2579_v23  ;;  %v3462_v16 = vand.u32 15, %v2580_v42  ;;  %v2581_v54 = vadd.s32 1008, %v7503_v2 }
 0x4fe   :  { %4638 = vmatmul.mubr.f32.vlgmr.msra.gmra.mrb[20].mxu1 %v2513_v13  ;;  %v2582_v59 = vadd.s32 1016, %v7503_v2  ;;  %vm9148_vm3 = vcmp.eq.s32.totalorder %v3336_v17, %v7527_v9  ;;  %v3343_v49 = vand.u32 15, %v2563_v21  ;;  %v2565_v35 = vadd.s32 880, %v7503_v2 }
 0x4ff   :  { %7177 = vmatpush3.bf16.msk.msra.mxu1 %vm7176_vm12, %v9550_v48  ;;  %vm9096_vm12 = vcmp.eq.s32.totalorder %v3434_v29, %v7527_v9  ;;  %v3350_v13 = vand.u32 15, %v2564_v36  ;;  %v3469_v38 = vand.u32 15, %v2581_v54  ;;  %v3364_v28 = vand.u32 15, %v2566_v27 }
 0x500   :  { %7179 = vmatprep.subr.msk.bf16.mxu1 %vm7178_vm7, %v9550_v48  ;;  %vm9109_vm7 = vcmp.eq.s32.totalorder %v3315_v24, %v7527_v9  ;;  %vm7190_vm13 = vmpackc.low %vm9096_vm12, %vm9091_vm6  ;;  %v3476_v43 = vand.u32 15, %v2582_v59  ;;  %vm4227_vm6 = vcmp.eq.s32.totalorder %v3343_v49, %v7527_v9  ;;  %v3357_v53 = vand.u32 15, %v2565_v35 }
 0x501   :  { %vm7192_vm14 = vmpackc.low %vm9114_vm11, %vm9109_vm7  ;;  %vm4228_vm12 = vcmp.eq.s32.totalorder %v3350_v13, %v7527_v9 }
 0x502   :  { %vm4246_vm7 = vcmp.eq.s32.totalorder %v3476_v43, %v7527_v9  ;;  %vm7200_vm11 = vmpackc.low %vm4228_vm12, %vm4227_vm6 }
 0x503   :  { %7181 = vmatpush3.bf16.msk.msra.mxu1 %vm7180_vm4, %v9550_v48  ;;  %vm9123_vm4 = vcmp.eq.s32.totalorder %v3441_v56, %v7527_v9 }
 0x504   :  { %7183 = vmatprep.subr.msk.bf16.mxu1 %vm7182_vm8, %v9550_v48  ;;  %vm9143_vm8 = vcmp.eq.s32.totalorder %v3329_v15, %v7527_v9  ;;  %vm7194_vm1 = vmpackc.low %vm9128_vm15, %vm9123_vm4  ;;  %vm4229_vm4 = vcmp.eq.s32.totalorder %v3357_v53, %v7527_v9  ;;  %vm4230_vm15 = vcmp.eq.s32.totalorder %v3364_v28, %v7527_v9 }
 0x505   :  { %vm7196_vm10 = vmpackc.low %vm9148_vm3, %vm9143_vm8  ;;  %vm9773_vm8 = vcmask 1041408  }
 0x506   :  { %vm9774_vm3 = vmmov %vm9773_vm8 }
 0x507   :  { %7185 = vmatpush3.bf16.msk.msra.mxu1 %vm7184_vm0, %v9550_v48  ;;  %vm9159_vm0 = vcmp.eq.s32.totalorder %v3455_v45, %v7527_v9 }
 0x508   :  { %7187 = vmatprep.subr.msk.bf16.mxu1 %vm7186_vm9, %v9550_v48  ;;  %vm4244_vm9 = vcmp.eq.s32.totalorder %v3462_v16, %v7527_v9 }
 0x509   :  { %vm7198_vm5 = vmpackc.low %vm4244_vm9, %vm9159_vm0  ;;  %vm9777_vm9 = vcmask 1040384  }
 0x50b   :  { %7189 = vmatpush3.bf16.msk.msra.mxu1 %vm7188_vm2, %v9550_v48  ;;  %vm4245_vm2 = vcmp.eq.s32.totalorder %v3469_v38, %v7527_v9 }
 0x50c   :  { %7191 = vmatprep.subr.msk.bf16.mxu1 %vm7190_vm13, %v9550_v48  ;;  %vm7202_vm13 = vmpackc.low %vm4246_vm7, %vm4245_vm2 }
 0x50f   :  { %7193 = vmatpush3.bf16.msk.msra.mxu1 %vm7192_vm14, %v9550_v48  ;;  %vm7204_vm14 = vmpackc.low %vm4230_vm15, %vm4229_vm4 }
 0x510   :  { %7195 = vmatprep.subr.msk.bf16.mxu1 %vm7194_vm1, %v9550_v48  ;;  %vm9775_vm1 = vmmov %vm9774_vm3 }
 0x511   :  { %vm9776_vm0 = vmmov %vm9775_vm1 }
 0x513   :  { %7197 = vmatpush3.bf16.msk.msra.mxu1 %vm7196_vm10, %v9550_v48  ;;  %vm9778_vm10 = vmmov %vm9777_vm9 }
 0x514   :  { %7199 = vmatprep.subr.msk.bf16.mxu1 %vm7198_vm5, %v9550_v48 }
 0x517   :  { %7201 = vmatpush3.bf16.msk.msra.mxu1 %vm7200_vm11, %v9550_v48 }
 0x518   :  { %7203 = vmatprep.subr.msk.bf16.mxu1 %vm7202_vm13, %v9550_v48 }
 0x51b   :  { %7205 = vmatpush3.bf16.msk.msra.mxu1 %vm7204_vm14, %v9550_v48 }
 0x551   :  { %v6890_v0 = vpop.f32.mrb[12].mxu0 }
 0x552   :  { %v6891_v10 = vpop.f32.mrb[13].mxu0 }
 0x553   :  { %v6892_v1 = vadd.f32 %v6891_v10, %v6890_v0  ;;  %v4834_v0 = vand.u32 15, %v8158_v50  ;;  %v4848_v10 = vand.u32 15, %v8161_v40 }
 0x555   :  { %vm4920_vm5 = vcmp.eq.s32.totalorder %v4834_v0, %v7503_v2  ;;  %vm4928_vm6 = vcmp.eq.s32.totalorder %v4834_v0, %v7522_v7  ;;  %vm4922_vm12 = vcmp.eq.s32.totalorder %v4848_v10, %v7503_v2  ;;  %vm4930_vm2 = vcmp.eq.s32.totalorder %v4848_v10, %v7522_v7 }
 0x556   :  { %vm7206_vm7 = vmpackc.low %vm4928_vm6, %vm4920_vm5 }
 0x557   :  { %7207 = vmatprep.subr.msk.bf16.mxu0 %vm7206_vm7, %v9550_v48  ;;  %vm7210_vm14 = vmpackc.low %vm4930_vm2, %vm4922_vm12 }
 0x558   :  { %7211 = vmatprep.subr.msk.bf16.mxu1 %vm7210_vm14, %v9550_v48  ;;  %vm9782_vm14 = vcmask 130048  }
 0x56b   :  { %v9183_v14 = vpop.f32.mrb[16].mxu1 }
 0x56c   :  { %v2433_v61 = vsel %vm9773_vm8, %v9183_v14, 0.0  ;;  %v2453_v57 = vmul.f32 %v9183_v14, %v9183_v14  ;;  %v9189_v25 = vpop.f32.mrb[17].mxu1 }
 0x56d   :  { %v2434_v47 = vrot.slane %v2433_v61, 4  ;;  %v2440_v58 = vsel %vm9774_vm3, %v9189_v25, 0.0  ;;  %v2454_v33 = vmul.f32 %v9189_v25, %v9189_v25  ;;  %v2388_v41 = vpop.f32.mrb[18].mxu1 }
 0x56e   :  { %v2497_v29 = vsel %vm9775_vm1, %v2453_v57, 0.0  ;;  %v2441_v24 = vrot.slane %v2440_v58, 4  ;;  %v2389_v37 = vpop.f32.mrb[19].mxu1  ;;  %v4841_v57 = vand.u32 15, %v8164_v30 }
 0x56f   :  { %v2435_v20 = vadd.f32 %v2434_v47, %v2433_v61  ;;  %v2498_v44 = vrot.slane %v2497_v29, 4  ;;  %v2504_v63 = vsel %vm9776_vm0, %v2454_v33, 0.0  ;;  %v4827_v61 = vand.u32 15, %v7527_v9 }
 0x570   :  { %v2442_v11 = vadd.f32 %v2441_v24, %v2440_v58  ;;  %v2505_v56 = vrot.slane %v2504_v63, 4  ;;  %v4820_v47 = vadd.s32 640, %v7527_v9  ;;  %v4822_v58 = vadd.s32 896, %v7527_v9 }
 0x571   :  { %v2436_v34 = vrot.slane %v2435_v20, 2  ;;  %v2499_v22 = vadd.f32 %v2498_v44, %v2497_v29  ;;  %v6960_v31 = vpop.f32.mrb[14].mxu0  ;;  %vm4919_vm11 = vcmp.eq.s32.totalorder %v4827_v61, %v7503_v2  ;;  %vm4927_vm13 = vcmp.eq.s32.totalorder %v4827_v61, %v7522_v7 }
 0x572   :  { %v2443_v23 = vrot.slane %v2442_v11, 2  ;;  %v2506_v42 = vadd.f32 %v2505_v56, %v2504_v63  ;;  %v6961_v39 = vpop.f32.mrb[15].mxu0  ;;  %vm4921_vm4 = vcmp.eq.s32.totalorder %v4841_v57, %v7503_v2  ;;  %vm4929_vm15 = vcmp.eq.s32.totalorder %v4841_v57, %v7522_v7  ;;  %vm7208_vm8 = vmpackc.low %vm4927_vm13, %vm4919_vm11 }
 0x573   :  { %v2437_v26 = vadd.f32 %v2436_v34, %v2435_v20  ;;  %v2500_v15 = vrot.slane %v2499_v22, 2  ;;  %v6962_v17 = vadd.f32 %v6961_v39, %v6960_v31  ;;  %v4862_v50 = vand.u32 15, %v4820_v47  ;;  %7209 = vmatpush1.bf16.msk.msra.mxu0 %vm7208_vm8, %v9550_v48  ;;  %vm7212_vm3 = vmpackc.low %vm4929_vm15, %vm4921_vm4 }
 0x574   :  { %v2507_v3 = vrot.slane %v2506_v42, 2  ;;  %v2444_v62 = vadd.f32 %v2443_v23, %v2442_v11  ;;  %v4876_v40 = vand.u32 15, %v4822_v58  ;;  %v4819_v56 = vadd.s32 512, %v7527_v9  ;;  %vm9783_vm8 = vmmov %vm9782_vm14 }
 0x575   :  { %v2501_v21 = vadd.f32 %v2500_v15, %v2499_v22  ;;  %v2438_v16 = vrot.slane %v2437_v26, 1  ;;  %vm4924_vm1 = vcmp.eq.s32.totalorder %v4862_v50, %v7503_v2  ;;  %vm4932_vm0 = vcmp.eq.s32.totalorder %v4862_v50, %v7522_v7 }
 0x576   :  { %v2445_v36 = vrot.slane %v2444_v62, 1  ;;  %v2508_v45 = vadd.f32 %v2507_v3, %v2506_v42  ;;  %vm7214_vm5 = vmpackc.low %vm4932_vm0, %vm4924_vm1  ;;  %v4821_v22 = vadd.s32 768, %v7527_v9  ;;  %v4855_v23 = vand.u32 15, %v4819_v56  ;;  %v9779_v42 = vld [vmem:[#allocation30_spill] sm:$0xff] }
 0x577   :  { %v2502_v54 = vrot.slane %v2501_v21, 1  ;;  %v2439_v13 = vadd.f32 %v2438_v16, %v2437_v26  ;;  %7215 = vmatprep.subr.msk.bf16.mxu0 %vm7214_vm5, %v9550_v48  ;;  %vm9781_vm15 = vcmask 1040384  }
 0x578   :  { %v2509_v59 = vrot.slane %v2508_v45, 1  ;;  %v2446_v12 = vadd.f32 %v2445_v36, %v2444_v62  ;;  %v4869_v26 = vand.u32 15, %v4821_v22  ;;  %vm4923_vm12 = vcmp.eq.s32.totalorder %v4855_v23, %v7503_v2 }
 0x579   :  { %v2503_v4 = vadd.f32 %v2502_v54, %v2501_v21  ;;  %vm4931_vm2 = vcmp.eq.s32.totalorder %v4855_v23, %v7522_v7 }
 0x57a   :  { %v2510_v49 = vadd.f32 %v2509_v59, %v2508_v45  ;;  %vm4925_vm7 = vcmp.eq.s32.totalorder %v4869_v26, %v7503_v2  ;;  %vm4933_vm11 = vcmp.eq.s32.totalorder %v4869_v26, %v7522_v7  ;;  %vm7216_vm13 = vmpackc.low %vm4931_vm2, %vm4923_vm12 }
 0x57b   :  { %v2517_v27 = vsel %vm9778_vm10, %v2439_v13, %v2503_v4  ;;  %vm4934_vm10 = vcmp.eq.s32.totalorder %v4876_v40, %v7522_v7  ;;  %vm7220_vm4 = vmpackc.low %vm4933_vm11, %vm4925_vm7 }
 0x57c   :  { %v2518_v35 = vsel %vm9777_vm9, %v2446_v12, %v2510_v49  ;;  %vm4926_vm9 = vcmp.eq.s32.totalorder %v4876_v40, %v7503_v2 }
 0x57d   :  { %4777 = vmatprep.mubr.f32.mxu1 %v2518_v35  ;;  %vm7218_vm6 = vmpackc.low %vm4934_vm10, %vm4926_vm9 }
 0x57e   :  { %4778 = vmatmul.mubr.f32.vlgmr.msra.gmra.mrb[22].mxu1 %v2517_v27 }
 0x57f   :  { %5105 = vmatprep.mubr.f32.mxu1 %v7425_v51  ;;  %7213 = vmatpush1.bf16.msk.msra.mxu1 %vm7212_vm3, %v9550_v48  ;;  %vm9784_vm3 = vmmov %vm9783_vm8 }
 0x580   :  { %7219 = vmatprep.subr.msk.bf16.mxu1 %vm7218_vm6, %v9550_v48  ;;  %vm9785_vm1 = vmmov %vm9784_vm3 }
 0x5d1   :  { %v6925_v52 = vpop.f32.mrb[20].mxu1 }
 0x5d2   :  { %v6926_v38 = vpop.f32.mrb[21].mxu1 }
 0x5d3   :  { %v6927_v43 = vadd.f32 %v6926_v38, %v6925_v52 }
 0x5d5   :  { %v4640_v53 = vadd.f32 %v6927_v43, %v6892_v1 }
 0x5d7   :  { %v4710_v28 = vadd.f32 %v6962_v17, %v4640_v53  ;;  %v9780_v17 = vld [vmem:[#allocation31_spill] sm:$0xff] }
 0x651   :  { %v6995_v30 = vpop.f32.mrb[22].mxu1 }
 0x652   :  { %v6996_v1 = vpop.f32.mrb[23].mxu1 }
 0x653   :  { %v6997_v33 = vadd.f32 %v6996_v1, %v6995_v30 }
 0x655   :  { %v4780_v41 = vadd.f32 %v6997_v33, %v4710_v28 }
 0x657   :  { %v4784_v29 = vmul.f32 0.0078125, %v4780_v41 }
 0x659   :  { %v4785_v24 = vmul.f32 %v4784_v29, %v4784_v29 }
 0x65b   :  { %v4787_v37 = vrot.slane %v4785_v24, 7 }
 0x65d   :  { %v4789_v20 = vsub.f32 %v4784_v29, %v4787_v37 }
 0x65f   :  { %v4790_v44 = vadd.f32 1e-05, %v4789_v20 }
 0x661   :  { %7314 = vrsqrt.f32 %v4790_v44 }
 0x66b   :  { %v7315_v63 = vpop.eup %7314 }
 0x66c   :  { %v4799_v11 = vrot.slane %v7315_v63, %v8197_v19 }
 0x66e   :  { %v4800_v34 = vcombine.high %v4799_v11, %v4799_v11 }
 0x670   :  { %v4807_v31 = vrot.slane %v4800_v34, %v8197_v19 }
 0x672   :  { %v4809_v39 = vmul.f32 %v4807_v31, %v9779_v42 }
 0x674   :  { %v4810_v15 = vmul.f32 %v4809_v39, %v4784_v29 }
 0x676   :  { %v4811_v3 = vsub.f32 %v9780_v17, %v4810_v15 }
 0x678   :  { %v4816_v62 = vrot.slane %v4811_v3, %v8202_v46 }
 0x67a   :  { %v4818_v9 = vsel %vm9781_vm15, %v4809_v39, %v4816_v62 }
 0x67b   :  { %6769 = vmatmul.mubr.msk.f32.vlgmr.msra.gmra.mrb[16].mxu0 %vm9782_vm14, %v4818_v9  ;;  %6774 = vmatmul.mubr.msk.f32.vlgmr.msra.gmra.mrb[24].mxu1 %vm9783_vm8, %v4818_v9 }
 0x67c   :  { %7217 = vmatpush1.bf16.msk.msra.mxu0 %vm7216_vm13, %v9550_v48  ;;  %7221 = vmatpush1.bf16.msk.msra.mxu1 %vm7220_vm4, %v9550_v48 }
 0x67d   :  { %5176 = vmatprep.mubr.f32.mxu0 %v7425_v51  ;;  %5247 = vmatprep.mubr.f32.mxu1 %v7425_v51 }
 0x67f   :  { %6779 = vmatmul.mubr.msk.f32.vlgmr.msra.gmra.mrb[18].mxu0 %vm9784_vm3, %v4818_v9  ;;  %6784 = vmatmul.mubr.msk.f32.vlgmr.msra.gmra.mrb[26].mxu1 %vm9785_vm1, %v4818_v9 }
 0x74e   :  { %v5036_v7 = vpop.f32.mrb[16].mxu0  ;;  %v5107_v19 = vpop.f32.mrb[24].mxu1 }
 0x74f   :  { %v5257_v21 = vrot.slane %v5036_v7, %v8202_v46  ;;  %v5265_v36 = vrot.slane %v5107_v19, %v8202_v46  ;;  %v5038_v45 = vpop.f32.mrb[17].mxu0  ;;  %v5109_v16 = vpop.f32.mrb[25].mxu1  ;;  %v5297_v51 = vrot.slane %v5036_v7, %v8207_v55  ;;  %v5305_v12 = vrot.slane %v5107_v19, %v8207_v55 }
 0x750   :  { %v5261_v54 = vrot.slane %v5038_v45, %v8202_v46  ;;  %v5269_v48 = vrot.slane %v5109_v16, %v8202_v46  ;;  %v5301_v13 = vrot.slane %v5038_v45, %v8207_v55  ;;  %v5309_v27 = vrot.slane %v5109_v16, %v8207_v55 }
 0x751   :  { %v5286_v59 = vmul.f32 %v5257_v21, %v8348_v8  ;;  %v5288_v4 = vmul.f32 %v5265_v36, %v8954_v5 }
 0x752   :  { %v5287_v49 = vmul.f32 %v5261_v54, %v8355_v6  ;;  %v5289_v35 = vmul.f32 %v5269_v48, %v8960_v18  ;;  %v5178_v52 = vpop.f32.mrb[18].mxu0  ;;  %v5249_v38 = vpop.f32.mrb[26].mxu1 }
 0x753   :  { %v9256_v43 = vadd.f32 %v5297_v51, %v5286_v59  ;;  %v9258_v53 = vadd.f32 %v5305_v12, %v5288_v4  ;;  %v5273_v8 = vrot.slane %v5178_v52, %v8202_v46  ;;  %v5180_v28 = vpop.f32.mrb[19].mxu0  ;;  %v5251_v5 = vpop.f32.mrb[27].mxu1  ;;  %v5313_v6 = vrot.slane %v5178_v52, %v8207_v55 }
 0x754   :  { %v5327_v0 = vadd.f32 %v5301_v13, %v5287_v49  ;;  %v9261_v10 = vadd.f32 %v5309_v27, %v5289_v35  ;;  %v5281_v61 = vrot.slane %v5249_v38, %v8202_v46  ;;  %v5277_v58 = vrot.slane %v5180_v28, %v8202_v46 }
 0x755   :  { %v5334_v18 = vmax.f32 %v9256_v43, 0.0  ;;  %v5336_v57 = vmax.f32 %v9258_v53, 0.0  ;;  %v5290_v47 = vmul.f32 %v5273_v8, %v8480_v60  ;;  %v5321_v1 = vrot.slane %v5249_v38, %v8207_v55 }
 0x756   :  { %v5335_v50 = vmax.f32 %v5327_v0, 0.0  ;;  %v5337_v40 = vmax.f32 %v9261_v10, 0.0  ;;  %v5292_v30 = vmul.f32 %v5281_v61, %v9183_v14  ;;  %v5291_v41 = vmul.f32 %v5277_v58, %v8501_v32 }
 0x757   :  { %v9272_v33 = vadd.f32 %v5313_v6, %v5290_v47  ;;  %v5317_v29 = vrot.slane %v5180_v28, %v8207_v55  ;;  %v5285_v24 = vrot.slane %v5251_v5, %v8202_v46  ;;  %v5325_v14 = vrot.slane %v5251_v5, %v8207_v55 }
 0x758   :  { %v9277_v37 = vadd.f32 %v5321_v1, %v5292_v30 }
 0x759   :  { %v5338_v60 = vmax.f32 %v9272_v33, 0.0  ;;  %v9280_v20 = vadd.f32 %v5317_v29, %v5291_v41  ;;  %v5293_v44 = vmul.f32 %v5285_v24, %v9189_v25 }
 0x75a   :  { %v5340_v63 = vmax.f32 %v9277_v37, 0.0 }
 0x75b   :  { %v5339_v11 = vmax.f32 %v9280_v20, 0.0  ;;  %v9286_v56 = vadd.f32 %v5325_v14, %v5293_v44 }
 0x75d   :  { %v5341_v32 = vmax.f32 %v9286_v56, 0.0 }
 0x75e   :  { %7400 = dma.done.wait [#allocation4 + $0x1], 49152 }
 0x75f   :  { %7401 = vsyncadd [#allocation4 + $0x1], 4294918144  ;;  %v9289_v34 = vpack.c.bf16 %v5335_v50, %v5335_v50  ;;  %v5355_v22 = vld [vmem:[#allocation3 + $0x8] sm:$0xff]  ;;  %v5357_v25 = vld [vmem:[#allocation3 + $0x18] sm:$0xff] }
 0x760   :  { %v5354_v31 = vld [vmem:[#allocation3] sm:$0xff]  ;;  %5769 = vmatprep.subr.bf16.mxu0 %v5355_v22  ;;  %5933 = vmatprep.subr.bf16.mxu1 %v5357_v25  ;;  %v5356_v23 = vld [vmem:[#allocation3 + $0x10] sm:$0xff]  ;;  %v5361_v42 = vld [vmem:[#allocation3 + $0x38] sm:$0xff] }
 0x761   :  { %5801 = vmatprep.mubr.bf16.mxu0 %v9289_v34  ;;  %5965 = vmatprep.mubr.bf16.mxu1 %v9289_v34  ;;  %v5363_v39 = vld [vmem:[#allocation3 + $0x48] sm:$0xff]  ;;  %v5360_v26 = vld [vmem:[#allocation3 + $0x30] sm:$0xff]  ;;  %v5362_v15 = vld [vmem:[#allocation3 + $0x40] sm:$0xff] }
 0x762   :  { %5770 = vmatpush1.bf16.msra.mxu0 %v5354_v31  ;;  %5934 = vmatpush1.bf16.msra.mxu1 %v5356_v23  ;;  %v5367_v17 = vld [vmem:[#allocation3 + $0x68] sm:$0xff]  ;;  %v5369_v3 = vld [vmem:[#allocation3 + $0x78] sm:$0xff]  ;;  %v5366_v62 = vld [vmem:[#allocation3 + $0x60] sm:$0xff] }
 0x763   :  { %5771 = vmatprep.subr.bf16.mxu0 %v5361_v42  ;;  %5935 = vmatprep.subr.bf16.mxu1 %v5363_v39  ;;  %v5368_v9 = vld [vmem:[#allocation3 + $0x70] sm:$0xff]  ;;  %v5373_v7 = vld [vmem:[#allocation3 + $0x98] sm:$0xff]  ;;  %v5375_v19 = vld [vmem:[#allocation3 + $0xa8] sm:$0xff] }
 0x764   :  { %v5372_v21 = vld [vmem:[#allocation3 + $0x90] sm:$0xff]  ;;  %v5374_v36 = vld [vmem:[#allocation3 + $0xa0] sm:$0xff]  ;;  %v5379_v45 = vld [vmem:[#allocation3 + $0xc8] sm:$0xff] }
 0x765   :  { %v5381_v16 = vld [vmem:[#allocation3 + $0xd8] sm:$0xff]  ;;  %v5378_v54 = vld [vmem:[#allocation3 + $0xc0] sm:$0xff]  ;;  %v5380_v48 = vld [vmem:[#allocation3 + $0xd0] sm:$0xff] }
 0x766   :  { %5772 = vmatpush1.bf16.msra.mxu0 %v5360_v26  ;;  %5936 = vmatpush1.bf16.msra.mxu1 %v5362_v15  ;;  %v5385_v59 = vld [vmem:[#allocation3 + $0xf8] sm:$0xff]  ;;  %v5387_v51 = vld [vmem:[#allocation3 + $0x108] sm:$0xff]  ;;  %v5384_v4 = vld [vmem:[#allocation3 + $0xf0] sm:$0xff] }
 0x767   :  { %5773 = vmatprep.subr.bf16.mxu0 %v5367_v17  ;;  %5937 = vmatprep.subr.bf16.mxu1 %v5369_v3  ;;  %v5386_v12 = vld [vmem:[#allocation3 + $0x100] sm:$0xff]  ;;  %v5391_v49 = vld [vmem:[#allocation3 + $0x128] sm:$0xff]  ;;  %v5393_v13 = vld [vmem:[#allocation3 + $0x138] sm:$0xff] }
 0x768   :  { %v5390_v35 = vld [vmem:[#allocation3 + $0x120] sm:$0xff]  ;;  %v5392_v27 = vld [vmem:[#allocation3 + $0x130] sm:$0xff]  ;;  %v5397_v52 = vld [vmem:[#allocation3 + $0x158] sm:$0xff] }
 0x769   :  { %v5399_v38 = vld [vmem:[#allocation3 + $0x168] sm:$0xff]  ;;  %v5396_v8 = vld [vmem:[#allocation3 + $0x150] sm:$0xff]  ;;  %v5398_v28 = vld [vmem:[#allocation3 + $0x160] sm:$0xff] }
 0x76a   :  { %5774 = vmatpush1.bf16.msra.mxu0 %v5366_v62  ;;  %5938 = vmatpush1.bf16.msra.mxu1 %v5368_v9  ;;  %v5403_v5 = vld [vmem:[#allocation3 + $0x188] sm:$0xff]  ;;  %v5405_v0 = vld [vmem:[#allocation3 + $0x198] sm:$0xff]  ;;  %v5402_v6 = vld [vmem:[#allocation3 + $0x180] sm:$0xff] }
 0x76b   :  { %5775 = vmatprep.subr.bf16.mxu0 %v5373_v7  ;;  %5939 = vmatprep.subr.bf16.mxu1 %v5375_v19  ;;  %v5404_v61 = vld [vmem:[#allocation3 + $0x190] sm:$0xff]  ;;  %v5409_v47 = vld [vmem:[#allocation3 + $0x1b8] sm:$0xff]  ;;  %v5411_v58 = vld [vmem:[#allocation3 + $0x1c8] sm:$0xff] }
 0x76c   :  { %v5408_v50 = vld [vmem:[#allocation3 + $0x1b0] sm:$0xff]  ;;  %v5410_v30 = vld [vmem:[#allocation3 + $0x1c0] sm:$0xff]  ;;  %v5415_v1 = vld [vmem:[#allocation3 + $0x1e8] sm:$0xff] }
 0x76d   :  { %v5417_v41 = vld [vmem:[#allocation3 + $0x1f8] sm:$0xff]  ;;  %v5414_v29 = vld [vmem:[#allocation3 + $0x1e0] sm:$0xff]  ;;  %v5416_v24 = vld [vmem:[#allocation3 + $0x1f0] sm:$0xff] }
 0x76e   :  { %5776 = vmatpush1.bf16.msra.mxu0 %v5372_v21  ;;  %5940 = vmatpush1.bf16.msra.mxu1 %v5374_v36  ;;  %v5421_v44 = vld [vmem:[#allocation3 + $0x218] sm:$0xff]  ;;  %v5423_v14 = vld [vmem:[#allocation3 + $0x228] sm:$0xff]  ;;  %v5420_v22 = vld [vmem:[#allocation3 + $0x210] sm:$0xff] }
 0x76f   :  { %5777 = vmatprep.subr.bf16.mxu0 %v5379_v45  ;;  %5941 = vmatprep.subr.bf16.mxu1 %v5381_v16  ;;  %v5422_v25 = vld [vmem:[#allocation3 + $0x220] sm:$0xff]  ;;  %v5427_v31 = vld [vmem:[#allocation3 + $0x248] sm:$0xff]  ;;  %v5429_v23 = vld [vmem:[#allocation3 + $0x258] sm:$0xff] }
 0x770   :  { %v5426_v42 = vld [vmem:[#allocation3 + $0x240] sm:$0xff]  ;;  %v5428_v39 = vld [vmem:[#allocation3 + $0x250] sm:$0xff]  ;;  %v5433_v26 = vld [vmem:[#allocation3 + $0x278] sm:$0xff] }
 0x771   :  { %v5435_v15 = vld [vmem:[#allocation3 + $0x288] sm:$0xff]  ;;  %v5432_v17 = vld [vmem:[#allocation3 + $0x270] sm:$0xff]  ;;  %v5434_v3 = vld [vmem:[#allocation3 + $0x280] sm:$0xff] }
 0x772   :  { %5778 = vmatpush1.bf16.msra.mxu0 %v5378_v54  ;;  %5942 = vmatpush1.bf16.msra.mxu1 %v5380_v48  ;;  %v5439_v62 = vld [vmem:[#allocation3 + $0x2a8] sm:$0xff]  ;;  %v5441_v9 = vld [vmem:[#allocation3 + $0x2b8] sm:$0xff]  ;;  %v5438_v7 = vld [vmem:[#allocation3 + $0x2a0] sm:$0xff] }
 0x773   :  { %5779 = vmatprep.subr.bf16.mxu0 %v5385_v59  ;;  %5943 = vmatprep.subr.bf16.mxu1 %v5387_v51  ;;  %v5440_v19 = vld [vmem:[#allocation3 + $0x2b0] sm:$0xff]  ;;  %v5445_v21 = vld [vmem:[#allocation3 + $0x2d8] sm:$0xff]  ;;  %v5447_v36 = vld [vmem:[#allocation3 + $0x2e8] sm:$0xff]  ;;  %v9296_v59 = vpack.c.bf16 %v5334_v18, %v5334_v18 }
 0x774   :  { %v5444_v45 = vld [vmem:[#allocation3 + $0x2d0] sm:$0xff]  ;;  %v5446_v16 = vld [vmem:[#allocation3 + $0x2e0] sm:$0xff]  ;;  %v5451_v54 = vld [vmem:[#allocation3 + $0x308] sm:$0xff] }
 0x775   :  { %v5453_v48 = vld [vmem:[#allocation3 + $0x318] sm:$0xff]  ;;  %v5450_v51 = vld [vmem:[#allocation3 + $0x300] sm:$0xff]  ;;  %v5456_v43 = vld [vmem:[#allocation3 + $0x330] sm:$0xff] }
 0x776   :  { %5780 = vmatpush1.bf16.msra.mxu0 %v5384_v4  ;;  %5944 = vmatpush1.bf16.msra.mxu1 %v5386_v12  ;;  %v5452_v4 = vld [vmem:[#allocation3 + $0x310] sm:$0xff]  ;;  %v5457_v12 = vld [vmem:[#allocation3 + $0x338] sm:$0xff]  ;;  %v5458_v18 = vld [vmem:[#allocation3 + $0x340] sm:$0xff] }
 0x777   :  { %5781 = vmatprep.subr.bf16.mxu0 %v5391_v49  ;;  %5945 = vmatprep.subr.bf16.mxu1 %v5393_v13  ;;  %v5459_v49 = vld [vmem:[#allocation3 + $0x348] sm:$0xff]  ;;  %v9301_v13 = vpack.c.bf16 %v5337_v40, %v5337_v40  ;;  %v5462_v10 = vld [vmem:[#allocation3 + $0x360] sm:$0xff]  ;;  %v5464_v40 = vld [vmem:[#allocation3 + $0x370] sm:$0xff] }
 0x778   :  { %v5552_v53 = vld [vmem:[#allocation3 + $0x630] sm:$0xff]  ;;  %v5558_v20 = vld [vmem:[#allocation3 + $0x660] sm:$0xff] }
 0x779   :  { %v5648_v33 = vld [vmem:[#allocation3 + $0x930] sm:$0xff]  ;;  %v5654_v56 = vld [vmem:[#allocation3 + $0x960] sm:$0xff] }
 0x77a   :  { %5782 = vmatpush1.bf16.msra.mxu0 %v5390_v35  ;;  %5946 = vmatpush1.bf16.msra.mxu1 %v5392_v27  ;;  %v5463_v35 = vld [vmem:[#allocation3 + $0x368] sm:$0xff]  ;;  %v5465_v27 = vld [vmem:[#allocation3 + $0x378] sm:$0xff]  ;;  %v5370_v37 = vld [vmem:[#allocation3 + $0x80] sm:$0xff] }
 0x77b   :  { %5783 = vmatprep.subr.bf16.mxu0 %v5397_v52  ;;  %5947 = vmatprep.subr.bf16.mxu1 %v5399_v38  ;;  %v5469_v52 = vld [vmem:[#allocation3 + $0x398] sm:$0xff]  ;;  %v5471_v38 = vld [vmem:[#allocation3 + $0x3a8] sm:$0xff] }
 0x77e   :  { %5784 = vmatpush1.bf16.msra.mxu0 %v5396_v8  ;;  %5948 = vmatpush1.bf16.msra.mxu1 %v5398_v28  ;;  %v5468_v8 = vld [vmem:[#allocation3 + $0x390] sm:$0xff]  ;;  %v5470_v28 = vld [vmem:[#allocation3 + $0x3a0] sm:$0xff] }
 0x77f   :  { %5785 = vmatprep.subr.bf16.mxu0 %v5403_v5  ;;  %5949 = vmatprep.subr.bf16.mxu1 %v5405_v0  ;;  %v5475_v5 = vld [vmem:[#allocation3 + $0x3c8] sm:$0xff]  ;;  %v5477_v0 = vld [vmem:[#allocation3 + $0x3d8] sm:$0xff] }
 0x782   :  { %5786 = vmatpush1.bf16.msra.mxu0 %v5402_v6  ;;  %5950 = vmatpush1.bf16.msra.mxu1 %v5404_v61  ;;  %v5474_v6 = vld [vmem:[#allocation3 + $0x3c0] sm:$0xff]  ;;  %v5476_v61 = vld [vmem:[#allocation3 + $0x3d0] sm:$0xff] }
 0x783   :  { %5787 = vmatprep.subr.bf16.mxu0 %v5409_v47  ;;  %5951 = vmatprep.subr.bf16.mxu1 %v5411_v58  ;;  %v5481_v47 = vld [vmem:[#allocation3 + $0x3f8] sm:$0xff]  ;;  %v5483_v58 = vld [vmem:[#allocation3 + $0x408] sm:$0xff] }
 0x786   :  { %5788 = vmatpush1.bf16.msra.mxu0 %v5408_v50  ;;  %5952 = vmatpush1.bf16.msra.mxu1 %v5410_v30  ;;  %v5480_v50 = vld [vmem:[#allocation3 + $0x3f0] sm:$0xff]  ;;  %v5482_v30 = vld [vmem:[#allocation3 + $0x400] sm:$0xff] }
 0x787   :  { %5789 = vmatprep.subr.bf16.mxu0 %v5415_v1  ;;  %5953 = vmatprep.subr.bf16.mxu1 %v5417_v41  ;;  %v5487_v1 = vld [vmem:[#allocation3 + $0x428] sm:$0xff]  ;;  %v5489_v41 = vld [vmem:[#allocation3 + $0x438] sm:$0xff] }
 0x78a   :  { %5790 = vmatpush1.bf16.msra.mxu0 %v5414_v29  ;;  %5954 = vmatpush1.bf16.msra.mxu1 %v5416_v24  ;;  %v5486_v29 = vld [vmem:[#allocation3 + $0x420] sm:$0xff]  ;;  %v5488_v24 = vld [vmem:[#allocation3 + $0x430] sm:$0xff] }
 0x78b   :  { %5791 = vmatprep.subr.bf16.mxu0 %v5421_v44  ;;  %5955 = vmatprep.subr.bf16.mxu1 %v5423_v14  ;;  %v5493_v44 = vld [vmem:[#allocation3 + $0x458] sm:$0xff]  ;;  %v5495_v14 = vld [vmem:[#allocation3 + $0x468] sm:$0xff] }
 0x78e   :  { %5792 = vmatpush1.bf16.msra.mxu0 %v5420_v22  ;;  %5956 = vmatpush1.bf16.msra.mxu1 %v5422_v25  ;;  %v5492_v22 = vld [vmem:[#allocation3 + $0x450] sm:$0xff]  ;;  %v5494_v25 = vld [vmem:[#allocation3 + $0x460] sm:$0xff] }
 0x78f   :  { %5793 = vmatprep.subr.bf16.mxu0 %v5427_v31  ;;  %5957 = vmatprep.subr.bf16.mxu1 %v5429_v23  ;;  %v5499_v31 = vld [vmem:[#allocation3 + $0x488] sm:$0xff]  ;;  %v5501_v23 = vld [vmem:[#allocation3 + $0x498] sm:$0xff] }
 0x792   :  { %5794 = vmatpush1.bf16.msra.mxu0 %v5426_v42  ;;  %5958 = vmatpush1.bf16.msra.mxu1 %v5428_v39  ;;  %v5498_v42 = vld [vmem:[#allocation3 + $0x480] sm:$0xff]  ;;  %v5500_v39 = vld [vmem:[#allocation3 + $0x490] sm:$0xff] }
 0x793   :  { %5795 = vmatprep.subr.bf16.mxu0 %v5433_v26  ;;  %5959 = vmatprep.subr.bf16.mxu1 %v5435_v15  ;;  %v5505_v26 = vld [vmem:[#allocation3 + $0x4b8] sm:$0xff]  ;;  %v5507_v15 = vld [vmem:[#allocation3 + $0x4c8] sm:$0xff] }
 0x796   :  { %5796 = vmatpush1.bf16.msra.mxu0 %v5432_v17  ;;  %5960 = vmatpush1.bf16.msra.mxu1 %v5434_v3  ;;  %v5504_v17 = vld [vmem:[#allocation3 + $0x4b0] sm:$0xff]  ;;  %v5506_v3 = vld [vmem:[#allocation3 + $0x4c0] sm:$0xff] }
 0x797   :  { %5797 = vmatprep.subr.bf16.mxu0 %v5439_v62  ;;  %5961 = vmatprep.subr.bf16.mxu1 %v5441_v9  ;;  %v5511_v62 = vld [vmem:[#allocation3 + $0x4e8] sm:$0xff]  ;;  %v5513_v9 = vld [vmem:[#allocation3 + $0x4f8] sm:$0xff] }
 0x79a   :  { %5798 = vmatpush1.bf16.msra.mxu0 %v5438_v7  ;;  %5962 = vmatpush1.bf16.msra.mxu1 %v5440_v19  ;;  %v5510_v7 = vld [vmem:[#allocation3 + $0x4e0] sm:$0xff]  ;;  %v5512_v19 = vld [vmem:[#allocation3 + $0x4f0] sm:$0xff] }
 0x79b   :  { %5799 = vmatprep.subr.bf16.mxu0 %v5445_v21  ;;  %5963 = vmatprep.subr.bf16.mxu1 %v5447_v36  ;;  %v5517_v21 = vld [vmem:[#allocation3 + $0x518] sm:$0xff]  ;;  %v5519_v36 = vld [vmem:[#allocation3 + $0x528] sm:$0xff] }
 0x79e   :  { %5800 = vmatpush1.bf16.msra.mxu0 %v5444_v45  ;;  %5964 = vmatpush1.bf16.msra.mxu1 %v5446_v16  ;;  %v5516_v45 = vld [vmem:[#allocation3 + $0x510] sm:$0xff]  ;;  %v5518_v16 = vld [vmem:[#allocation3 + $0x520] sm:$0xff] }
 0x79f   :  { %5810 = vmatprep.subr.bf16.mxu0 %v5451_v54  ;;  %5974 = vmatprep.subr.bf16.mxu1 %v5453_v48  ;;  %v5523_v54 = vld [vmem:[#allocation3 + $0x548] sm:$0xff]  ;;  %v5525_v48 = vld [vmem:[#allocation3 + $0x558] sm:$0xff] }
 0x7a1   :  { %5802 = vmatmul.mubr.bf16.vlgmr.msra.gmra.mrb[20].mxu0 %v9296_v59  ;;  %5966 = vmatmul.mubr.bf16.vlgmr.msra.gmra.mrb[28].mxu1 %v9296_v59 }
 0x7a2   :  { %5811 = vmatpush1.bf16.msra.mxu0 %v5450_v51  ;;  %5975 = vmatpush1.bf16.msra.mxu1 %v5452_v4  ;;  %v5522_v51 = vld [vmem:[#allocation3 + $0x540] sm:$0xff]  ;;  %v5524_v4 = vld [vmem:[#allocation3 + $0x550] sm:$0xff] }
 0x7a3   :  { %5812 = vmatprep.subr.bf16.mxu0 %v5457_v12  ;;  %5976 = vmatprep.subr.bf16.mxu1 %v5459_v49  ;;  %v5529_v12 = vld [vmem:[#allocation3 + $0x578] sm:$0xff]  ;;  %v5531_v49 = vld [vmem:[#allocation3 + $0x588] sm:$0xff] }
 0x7a4   :  { %5842 = vmatprep.mubr.bf16.mxu0 %v9301_v13  ;;  %6006 = vmatprep.mubr.bf16.mxu1 %v9301_v13 }
 0x7a6   :  { %5813 = vmatpush1.bf16.msra.mxu0 %v5456_v43  ;;  %5977 = vmatpush1.bf16.msra.mxu1 %v5458_v18  ;;  %v5528_v43 = vld [vmem:[#allocation3 + $0x570] sm:$0xff]  ;;  %v5530_v18 = vld [vmem:[#allocation3 + $0x580] sm:$0xff] }
 0x7a7   :  { %5814 = vmatprep.subr.bf16.mxu0 %v5463_v35  ;;  %5978 = vmatprep.subr.bf16.mxu1 %v5465_v27  ;;  %v5535_v35 = vld [vmem:[#allocation3 + $0x5a8] sm:$0xff]  ;;  %v5537_v27 = vld [vmem:[#allocation3 + $0x5b8] sm:$0xff] }
 0x7aa   :  { %5815 = vmatpush1.bf16.msra.mxu0 %v5462_v10  ;;  %5979 = vmatpush1.bf16.msra.mxu1 %v5464_v40  ;;  %v5534_v10 = vld [vmem:[#allocation3 + $0x5a0] sm:$0xff]  ;;  %v5536_v40 = vld [vmem:[#allocation3 + $0x5b0] sm:$0xff] }
 0x7ab   :  { %5816 = vmatprep.subr.bf16.mxu0 %v5469_v52  ;;  %5980 = vmatprep.subr.bf16.mxu1 %v5471_v38  ;;  %v5541_v52 = vld [vmem:[#allocation3 + $0x5d8] sm:$0xff]  ;;  %v5543_v38 = vld [vmem:[#allocation3 + $0x5e8] sm:$0xff] }
 0x7ae   :  { %5817 = vmatpush1.bf16.msra.mxu0 %v5468_v8  ;;  %5981 = vmatpush1.bf16.msra.mxu1 %v5470_v28  ;;  %v5540_v8 = vld [vmem:[#allocation3 + $0x5d0] sm:$0xff]  ;;  %v5542_v28 = vld [vmem:[#allocation3 + $0x5e0] sm:$0xff] }
 0x7af   :  { %5818 = vmatprep.subr.bf16.mxu0 %v5475_v5  ;;  %5982 = vmatprep.subr.bf16.mxu1 %v5477_v0  ;;  %v5547_v5 = vld [vmem:[#allocation3 + $0x608] sm:$0xff]  ;;  %v5549_v0 = vld [vmem:[#allocation3 + $0x618] sm:$0xff] }
 0x7b2   :  { %5819 = vmatpush1.bf16.msra.mxu0 %v5474_v6  ;;  %5983 = vmatpush1.bf16.msra.mxu1 %v5476_v61  ;;  %v9310_v6 = vpack.c.bf16 %v5336_v57, %v5336_v57  ;;  %v5546_v61 = vld [vmem:[#allocation3 + $0x600] sm:$0xff] }
 0x7b3   :  { %5820 = vmatprep.subr.bf16.mxu0 %v5481_v47  ;;  %5984 = vmatprep.subr.bf16.mxu1 %v5483_v58  ;;  %v5548_v47 = vld [vmem:[#allocation3 + $0x610] sm:$0xff]  ;;  %v5553_v58 = vld [vmem:[#allocation3 + $0x638] sm:$0xff]  ;;  %v5554_v57 = vld [vmem:[#allocation3 + $0x640] sm:$0xff] }
 0x7b6   :  { %5821 = vmatpush1.bf16.msra.mxu0 %v5480_v50  ;;  %5985 = vmatpush1.bf16.msra.mxu1 %v5482_v30  ;;  %v5555_v50 = vld [vmem:[#allocation3 + $0x648] sm:$0xff]  ;;  %v9315_v30 = vpack.c.bf16 %v5339_v11, %v5339_v11  ;;  %v5560_v11 = vld [vmem:[#allocation3 + $0x670] sm:$0xff] }
 0x7b7   :  { %5822 = vmatprep.subr.bf16.mxu0 %v5487_v1  ;;  %5986 = vmatprep.subr.bf16.mxu1 %v5489_v41  ;;  %v5559_v1 = vld [vmem:[#allocation3 + $0x668] sm:$0xff]  ;;  %v5561_v41 = vld [vmem:[#allocation3 + $0x678] sm:$0xff] }
 0x7ba   :  { %5823 = vmatpush1.bf16.msra.mxu0 %v5486_v29  ;;  %5987 = vmatpush1.bf16.msra.mxu1 %v5488_v24  ;;  %v5565_v29 = vld [vmem:[#allocation3 + $0x698] sm:$0xff]  ;;  %v5567_v24 = vld [vmem:[#allocation3 + $0x6a8] sm:$0xff] }
 0x7bb   :  { %5824 = vmatprep.subr.bf16.mxu0 %v5493_v44  ;;  %5988 = vmatprep.subr.bf16.mxu1 %v5495_v14  ;;  %v5564_v44 = vld [vmem:[#allocation3 + $0x690] sm:$0xff]  ;;  %v5566_v14 = vld [vmem:[#allocation3 + $0x6a0] sm:$0xff] }
 0x7be   :  { %5825 = vmatpush1.bf16.msra.mxu0 %v5492_v22  ;;  %5989 = vmatpush1.bf16.msra.mxu1 %v5494_v25  ;;  %v5571_v22 = vld [vmem:[#allocation3 + $0x6c8] sm:$0xff]  ;;  %v5573_v25 = vld [vmem:[#allocation3 + $0x6d8] sm:$0xff] }
 0x7bf   :  { %5826 = vmatprep.subr.bf16.mxu0 %v5499_v31  ;;  %5990 = vmatprep.subr.bf16.mxu1 %v5501_v23  ;;  %v5570_v31 = vld [vmem:[#allocation3 + $0x6c0] sm:$0xff]  ;;  %v5572_v23 = vld [vmem:[#allocation3 + $0x6d0] sm:$0xff] }
 0x7c2   :  { %5827 = vmatpush1.bf16.msra.mxu0 %v5498_v42  ;;  %5991 = vmatpush1.bf16.msra.mxu1 %v5500_v39  ;;  %v5577_v42 = vld [vmem:[#allocation3 + $0x6f8] sm:$0xff]  ;;  %v5579_v39 = vld [vmem:[#allocation3 + $0x708] sm:$0xff] }
 0x7c3   :  { %5828 = vmatprep.subr.bf16.mxu0 %v5505_v26  ;;  %5992 = vmatprep.subr.bf16.mxu1 %v5507_v15  ;;  %v5576_v26 = vld [vmem:[#allocation3 + $0x6f0] sm:$0xff]  ;;  %v5578_v15 = vld [vmem:[#allocation3 + $0x700] sm:$0xff] }
 0x7c6   :  { %5829 = vmatpush1.bf16.msra.mxu0 %v5504_v17  ;;  %5993 = vmatpush1.bf16.msra.mxu1 %v5506_v3  ;;  %v5583_v17 = vld [vmem:[#allocation3 + $0x728] sm:$0xff]  ;;  %v5585_v3 = vld [vmem:[#allocation3 + $0x738] sm:$0xff] }
 0x7c7   :  { %5830 = vmatprep.subr.bf16.mxu0 %v5511_v62  ;;  %5994 = vmatprep.subr.bf16.mxu1 %v5513_v9  ;;  %v5582_v62 = vld [vmem:[#allocation3 + $0x720] sm:$0xff]  ;;  %v5584_v9 = vld [vmem:[#allocation3 + $0x730] sm:$0xff] }
 0x7ca   :  { %5831 = vmatpush1.bf16.msra.mxu0 %v5510_v7  ;;  %5995 = vmatpush1.bf16.msra.mxu1 %v5512_v19  ;;  %v5589_v7 = vld [vmem:[#allocation3 + $0x758] sm:$0xff]  ;;  %v5591_v19 = vld [vmem:[#allocation3 + $0x768] sm:$0xff] }
 0x7cb   :  { %5832 = vmatprep.subr.bf16.mxu0 %v5517_v21  ;;  %5996 = vmatprep.subr.bf16.mxu1 %v5519_v36  ;;  %v5588_v21 = vld [vmem:[#allocation3 + $0x750] sm:$0xff]  ;;  %v5590_v36 = vld [vmem:[#allocation3 + $0x760] sm:$0xff] }
 0x7ce   :  { %5833 = vmatpush1.bf16.msra.mxu0 %v5516_v45  ;;  %5997 = vmatpush1.bf16.msra.mxu1 %v5518_v16  ;;  %v5595_v45 = vld [vmem:[#allocation3 + $0x788] sm:$0xff]  ;;  %v5597_v16 = vld [vmem:[#allocation3 + $0x798] sm:$0xff] }
 0x7cf   :  { %5834 = vmatprep.subr.bf16.mxu0 %v5523_v54  ;;  %5998 = vmatprep.subr.bf16.mxu1 %v5525_v48  ;;  %v5594_v54 = vld [vmem:[#allocation3 + $0x780] sm:$0xff]  ;;  %v5596_v48 = vld [vmem:[#allocation3 + $0x790] sm:$0xff] }
 0x7d2   :  { %5835 = vmatpush1.bf16.msra.mxu0 %v5522_v51  ;;  %5999 = vmatpush1.bf16.msra.mxu1 %v5524_v4  ;;  %v5601_v51 = vld [vmem:[#allocation3 + $0x7b8] sm:$0xff]  ;;  %v5603_v4 = vld [vmem:[#allocation3 + $0x7c8] sm:$0xff] }
 0x7d3   :  { %5836 = vmatprep.subr.bf16.mxu0 %v5529_v12  ;;  %6000 = vmatprep.subr.bf16.mxu1 %v5531_v49  ;;  %v5600_v12 = vld [vmem:[#allocation3 + $0x7b0] sm:$0xff]  ;;  %v5602_v49 = vld [vmem:[#allocation3 + $0x7c0] sm:$0xff] }
 0x7d6   :  { %5837 = vmatpush1.bf16.msra.mxu0 %v5528_v43  ;;  %6001 = vmatpush1.bf16.msra.mxu1 %v5530_v18  ;;  %v5607_v43 = vld [vmem:[#allocation3 + $0x7e8] sm:$0xff]  ;;  %v5609_v18 = vld [vmem:[#allocation3 + $0x7f8] sm:$0xff] }
 0x7d7   :  { %5838 = vmatprep.subr.bf16.mxu0 %v5535_v35  ;;  %6002 = vmatprep.subr.bf16.mxu1 %v5537_v27  ;;  %v5606_v35 = vld [vmem:[#allocation3 + $0x7e0] sm:$0xff]  ;;  %v5608_v27 = vld [vmem:[#allocation3 + $0x7f0] sm:$0xff] }
 0x7da   :  { %5839 = vmatpush1.bf16.msra.mxu0 %v5534_v10  ;;  %6003 = vmatpush1.bf16.msra.mxu1 %v5536_v40  ;;  %v5613_v10 = vld [vmem:[#allocation3 + $0x818] sm:$0xff]  ;;  %v5615_v40 = vld [vmem:[#allocation3 + $0x828] sm:$0xff] }
 0x7db   :  { %5840 = vmatprep.subr.bf16.mxu0 %v5541_v52  ;;  %6004 = vmatprep.subr.bf16.mxu1 %v5543_v38  ;;  %v5612_v52 = vld [vmem:[#allocation3 + $0x810] sm:$0xff]  ;;  %v5614_v38 = vld [vmem:[#allocation3 + $0x820] sm:$0xff] }
 0x7de   :  { %5841 = vmatpush1.bf16.msra.mxu0 %v5540_v8  ;;  %6005 = vmatpush1.bf16.msra.mxu1 %v5542_v28  ;;  %v5619_v8 = vld [vmem:[#allocation3 + $0x848] sm:$0xff]  ;;  %v5621_v28 = vld [vmem:[#allocation3 + $0x858] sm:$0xff] }
 0x7df   :  { %5851 = vmatprep.subr.bf16.mxu0 %v5547_v5  ;;  %6015 = vmatprep.subr.bf16.mxu1 %v5549_v0  ;;  %v5618_v5 = vld [vmem:[#allocation3 + $0x840] sm:$0xff]  ;;  %v5620_v0 = vld [vmem:[#allocation3 + $0x850] sm:$0xff] }
 0x7e1   :  { %5843 = vmatmul.mubr.bf16.vlgmr.msra.gmra.mrb[20].mxu0 %v9310_v6  ;;  %6007 = vmatmul.mubr.bf16.vlgmr.msra.gmra.mrb[28].mxu1 %v9310_v6 }
 0x7e2   :  { %5852 = vmatpush1.bf16.msra.mxu0 %v5546_v61  ;;  %6016 = vmatpush1.bf16.msra.mxu1 %v5548_v47  ;;  %v5625_v61 = vld [vmem:[#allocation3 + $0x878] sm:$0xff]  ;;  %v5627_v47 = vld [vmem:[#allocation3 + $0x888] sm:$0xff] }
 0x7e3   :  { %5853 = vmatprep.subr.bf16.mxu0 %v5553_v58  ;;  %6017 = vmatprep.subr.bf16.mxu1 %v5555_v50  ;;  %v5624_v58 = vld [vmem:[#allocation3 + $0x870] sm:$0xff]  ;;  %v5626_v50 = vld [vmem:[#allocation3 + $0x880] sm:$0xff] }
 0x7e4   :  { %5883 = vmatprep.mubr.bf16.mxu0 %v9315_v30  ;;  %6047 = vmatprep.mubr.bf16.mxu1 %v9315_v30 }
 0x7e6   :  { %5854 = vmatpush1.bf16.msra.mxu0 %v5552_v53  ;;  %6018 = vmatpush1.bf16.msra.mxu1 %v5554_v57  ;;  %v5631_v53 = vld [vmem:[#allocation3 + $0x8a8] sm:$0xff]  ;;  %v5633_v57 = vld [vmem:[#allocation3 + $0x8b8] sm:$0xff] }
 0x7e7   :  { %5855 = vmatprep.subr.bf16.mxu0 %v5559_v1  ;;  %6019 = vmatprep.subr.bf16.mxu1 %v5561_v41  ;;  %v5630_v1 = vld [vmem:[#allocation3 + $0x8a0] sm:$0xff]  ;;  %v5632_v41 = vld [vmem:[#allocation3 + $0x8b0] sm:$0xff] }
 0x7ea   :  { %5856 = vmatpush1.bf16.msra.mxu0 %v5558_v20  ;;  %6020 = vmatpush1.bf16.msra.mxu1 %v5560_v11  ;;  %v5637_v20 = vld [vmem:[#allocation3 + $0x8d8] sm:$0xff]  ;;  %v5639_v11 = vld [vmem:[#allocation3 + $0x8e8] sm:$0xff] }
 0x7eb   :  { %5857 = vmatprep.subr.bf16.mxu0 %v5565_v29  ;;  %6021 = vmatprep.subr.bf16.mxu1 %v5567_v24  ;;  %v5636_v29 = vld [vmem:[#allocation3 + $0x8d0] sm:$0xff]  ;;  %v5638_v24 = vld [vmem:[#allocation3 + $0x8e0] sm:$0xff] }
 0x7ee   :  { %5858 = vmatpush1.bf16.msra.mxu0 %v5564_v44  ;;  %6022 = vmatpush1.bf16.msra.mxu1 %v5566_v14  ;;  %v5643_v44 = vld [vmem:[#allocation3 + $0x908] sm:$0xff]  ;;  %v5645_v14 = vld [vmem:[#allocation3 + $0x918] sm:$0xff] }
 0x7ef   :  { %5859 = vmatprep.subr.bf16.mxu0 %v5571_v22  ;;  %6023 = vmatprep.subr.bf16.mxu1 %v5573_v25  ;;  %v9324_v22 = vpack.c.bf16 %v5338_v60, %v5338_v60  ;;  %v5642_v25 = vld [vmem:[#allocation3 + $0x900] sm:$0xff] }
 0x7f0   :  { %v5650_v60 = vld [vmem:[#allocation3 + $0x940] sm:$0xff] }
 0x7f2   :  { %5860 = vmatpush1.bf16.msra.mxu0 %v5570_v31  ;;  %6024 = vmatpush1.bf16.msra.mxu1 %v5572_v23  ;;  %v5644_v31 = vld [vmem:[#allocation3 + $0x910] sm:$0xff]  ;;  %v5649_v23 = vld [vmem:[#allocation3 + $0x938] sm:$0xff] }
 0x7f3   :  { %5861 = vmatprep.subr.bf16.mxu0 %v5577_v42  ;;  %6025 = vmatprep.subr.bf16.mxu1 %v5579_v39  ;;  %v5651_v42 = vld [vmem:[#allocation3 + $0x948] sm:$0xff]  ;;  %v9329_v39 = vpack.c.bf16 %v5341_v32, %v5341_v32  ;;  %v5656_v32 = vld [vmem:[#allocation3 + $0x970] sm:$0xff] }
 0x7f6   :  { %5862 = vmatpush1.bf16.msra.mxu0 %v5576_v26  ;;  %6026 = vmatpush1.bf16.msra.mxu1 %v5578_v15  ;;  %v5655_v26 = vld [vmem:[#allocation3 + $0x968] sm:$0xff]  ;;  %v5657_v15 = vld [vmem:[#allocation3 + $0x978] sm:$0xff] }
 0x7f7   :  { %5863 = vmatprep.subr.bf16.mxu0 %v5583_v17  ;;  %6027 = vmatprep.subr.bf16.mxu1 %v5585_v3  ;;  %v5661_v17 = vld [vmem:[#allocation3 + $0x998] sm:$0xff]  ;;  %v5663_v3 = vld [vmem:[#allocation3 + $0x9a8] sm:$0xff] }
 0x7fa   :  { %5864 = vmatpush1.bf16.msra.mxu0 %v5582_v62  ;;  %6028 = vmatpush1.bf16.msra.mxu1 %v5584_v9  ;;  %v5660_v62 = vld [vmem:[#allocation3 + $0x990] sm:$0xff]  ;;  %v5662_v9 = vld [vmem:[#allocation3 + $0x9a0] sm:$0xff] }
 0x7fb   :  { %5865 = vmatprep.subr.bf16.mxu0 %v5589_v7  ;;  %6029 = vmatprep.subr.bf16.mxu1 %v5591_v19  ;;  %v5667_v7 = vld [vmem:[#allocation3 + $0x9c8] sm:$0xff]  ;;  %v5669_v19 = vld [vmem:[#allocation3 + $0x9d8] sm:$0xff] }
 0x7fe   :  { %5866 = vmatpush1.bf16.msra.mxu0 %v5588_v21  ;;  %6030 = vmatpush1.bf16.msra.mxu1 %v5590_v36  ;;  %v5666_v21 = vld [vmem:[#allocation3 + $0x9c0] sm:$0xff]  ;;  %v5668_v36 = vld [vmem:[#allocation3 + $0x9d0] sm:$0xff] }
 0x7ff   :  { %5867 = vmatprep.subr.bf16.mxu0 %v5595_v45  ;;  %6031 = vmatprep.subr.bf16.mxu1 %v5597_v16  ;;  %v5673_v45 = vld [vmem:[#allocation3 + $0x9f8] sm:$0xff]  ;;  %v5675_v16 = vld [vmem:[#allocation3 + $0xa08] sm:$0xff] }
 0x802   :  { %5868 = vmatpush1.bf16.msra.mxu0 %v5594_v54  ;;  %6032 = vmatpush1.bf16.msra.mxu1 %v5596_v48  ;;  %v5672_v54 = vld [vmem:[#allocation3 + $0x9f0] sm:$0xff]  ;;  %v5674_v48 = vld [vmem:[#allocation3 + $0xa00] sm:$0xff] }
 0x803   :  { %5869 = vmatprep.subr.bf16.mxu0 %v5601_v51  ;;  %6033 = vmatprep.subr.bf16.mxu1 %v5603_v4  ;;  %v5679_v51 = vld [vmem:[#allocation3 + $0xa28] sm:$0xff]  ;;  %v5681_v4 = vld [vmem:[#allocation3 + $0xa38] sm:$0xff] }
 0x806   :  { %5870 = vmatpush1.bf16.msra.mxu0 %v5600_v12  ;;  %6034 = vmatpush1.bf16.msra.mxu1 %v5602_v49  ;;  %v5678_v12 = vld [vmem:[#allocation3 + $0xa20] sm:$0xff]  ;;  %v5680_v49 = vld [vmem:[#allocation3 + $0xa30] sm:$0xff] }
 0x807   :  { %5871 = vmatprep.subr.bf16.mxu0 %v5607_v43  ;;  %6035 = vmatprep.subr.bf16.mxu1 %v5609_v18  ;;  %v5685_v43 = vld [vmem:[#allocation3 + $0xa58] sm:$0xff]  ;;  %v5687_v18 = vld [vmem:[#allocation3 + $0xa68] sm:$0xff] }
 0x80a   :  { %5872 = vmatpush1.bf16.msra.mxu0 %v5606_v35  ;;  %6036 = vmatpush1.bf16.msra.mxu1 %v5608_v27  ;;  %v5684_v35 = vld [vmem:[#allocation3 + $0xa50] sm:$0xff]  ;;  %v5686_v27 = vld [vmem:[#allocation3 + $0xa60] sm:$0xff] }
 0x80b   :  { %5873 = vmatprep.subr.bf16.mxu0 %v5613_v10  ;;  %6037 = vmatprep.subr.bf16.mxu1 %v5615_v40  ;;  %v5691_v10 = vld [vmem:[#allocation3 + $0xa88] sm:$0xff]  ;;  %v5693_v40 = vld [vmem:[#allocation3 + $0xa98] sm:$0xff] }
 0x80e   :  { %5874 = vmatpush1.bf16.msra.mxu0 %v5612_v52  ;;  %6038 = vmatpush1.bf16.msra.mxu1 %v5614_v38  ;;  %v5690_v52 = vld [vmem:[#allocation3 + $0xa80] sm:$0xff]  ;;  %v5692_v38 = vld [vmem:[#allocation3 + $0xa90] sm:$0xff] }
 0x80f   :  { %5875 = vmatprep.subr.bf16.mxu0 %v5619_v8  ;;  %6039 = vmatprep.subr.bf16.mxu1 %v5621_v28  ;;  %v5697_v8 = vld [vmem:[#allocation3 + $0xab8] sm:$0xff]  ;;  %v5699_v28 = vld [vmem:[#allocation3 + $0xac8] sm:$0xff] }
 0x812   :  { %5876 = vmatpush1.bf16.msra.mxu0 %v5618_v5  ;;  %6040 = vmatpush1.bf16.msra.mxu1 %v5620_v0  ;;  %v5696_v5 = vld [vmem:[#allocation3 + $0xab0] sm:$0xff]  ;;  %v5698_v0 = vld [vmem:[#allocation3 + $0xac0] sm:$0xff] }
 0x813   :  { %5877 = vmatprep.subr.bf16.mxu0 %v5625_v61  ;;  %6041 = vmatprep.subr.bf16.mxu1 %v5627_v47  ;;  %v5703_v61 = vld [vmem:[#allocation3 + $0xae8] sm:$0xff]  ;;  %v5705_v47 = vld [vmem:[#allocation3 + $0xaf8] sm:$0xff] }
 0x816   :  { %5878 = vmatpush1.bf16.msra.mxu0 %v5624_v58  ;;  %6042 = vmatpush1.bf16.msra.mxu1 %v5626_v50  ;;  %v5702_v58 = vld [vmem:[#allocation3 + $0xae0] sm:$0xff]  ;;  %v5704_v50 = vld [vmem:[#allocation3 + $0xaf0] sm:$0xff] }
 0x817   :  { %5879 = vmatprep.subr.bf16.mxu0 %v5631_v53  ;;  %6043 = vmatprep.subr.bf16.mxu1 %v5633_v57  ;;  %v5709_v53 = vld [vmem:[#allocation3 + $0xb18] sm:$0xff]  ;;  %v5711_v57 = vld [vmem:[#allocation3 + $0xb28] sm:$0xff] }
 0x81a   :  { %5880 = vmatpush1.bf16.msra.mxu0 %v5630_v1  ;;  %6044 = vmatpush1.bf16.msra.mxu1 %v5632_v41  ;;  %v5708_v1 = vld [vmem:[#allocation3 + $0xb10] sm:$0xff]  ;;  %v5710_v41 = vld [vmem:[#allocation3 + $0xb20] sm:$0xff] }
 0x81b   :  { %5881 = vmatprep.subr.bf16.mxu0 %v5637_v20  ;;  %6045 = vmatprep.subr.bf16.mxu1 %v5639_v11  ;;  %v5715_v20 = vld [vmem:[#allocation3 + $0xb48] sm:$0xff]  ;;  %v5717_v11 = vld [vmem:[#allocation3 + $0xb58] sm:$0xff] }
 0x81e   :  { %5882 = vmatpush1.bf16.msra.mxu0 %v5636_v29  ;;  %6046 = vmatpush1.bf16.msra.mxu1 %v5638_v24  ;;  %v5714_v29 = vld [vmem:[#allocation3 + $0xb40] sm:$0xff]  ;;  %v5716_v24 = vld [vmem:[#allocation3 + $0xb50] sm:$0xff] }
 0x81f   :  { %5892 = vmatprep.subr.bf16.mxu0 %v5643_v44  ;;  %6056 = vmatprep.subr.bf16.mxu1 %v5645_v14  ;;  %v5721_v44 = vld [vmem:[#allocation3 + $0xb78] sm:$0xff]  ;;  %v5723_v14 = vld [vmem:[#allocation3 + $0xb88] sm:$0xff] }
 0x821   :  { %5884 = vmatmul.mubr.bf16.vlgmr.msra.gmra.mrb[20].mxu0 %v9324_v22  ;;  %6048 = vmatmul.mubr.bf16.vlgmr.msra.gmra.mrb[28].mxu1 %v9324_v22 }
 0x822   :  { %5893 = vmatpush1.bf16.msra.mxu0 %v5642_v25  ;;  %6057 = vmatpush1.bf16.msra.mxu1 %v5644_v31  ;;  %v5720_v25 = vld [vmem:[#allocation3 + $0xb70] sm:$0xff]  ;;  %v5722_v31 = vld [vmem:[#allocation3 + $0xb80] sm:$0xff] }
 0x823   :  { %5894 = vmatprep.subr.bf16.mxu0 %v5649_v23  ;;  %6058 = vmatprep.subr.bf16.mxu1 %v5651_v42  ;;  %v5727_v23 = vld [vmem:[#allocation3 + $0xba8] sm:$0xff]  ;;  %v5729_v42 = vld [vmem:[#allocation3 + $0xbb8] sm:$0xff] }
 0x824   :  { %5924 = vmatprep.mubr.bf16.mxu0 %v9329_v39  ;;  %6088 = vmatprep.mubr.bf16.mxu1 %v9329_v39 }
 0x826   :  { %5895 = vmatpush1.bf16.msra.mxu0 %v5648_v33  ;;  %6059 = vmatpush1.bf16.msra.mxu1 %v5650_v60  ;;  %v5726_v33 = vld [vmem:[#allocation3 + $0xba0] sm:$0xff]  ;;  %v5728_v60 = vld [vmem:[#allocation3 + $0xbb0] sm:$0xff] }
 0x827   :  { %5896 = vmatprep.subr.bf16.mxu0 %v5655_v26  ;;  %6060 = vmatprep.subr.bf16.mxu1 %v5657_v15  ;;  %v5733_v26 = vld [vmem:[#allocation3 + $0xbd8] sm:$0xff]  ;;  %v5735_v15 = vld [vmem:[#allocation3 + $0xbe8] sm:$0xff] }
 0x82a   :  { %5897 = vmatpush1.bf16.msra.mxu0 %v5654_v56  ;;  %6061 = vmatpush1.bf16.msra.mxu1 %v5656_v32  ;;  %v5732_v56 = vld [vmem:[#allocation3 + $0xbd0] sm:$0xff]  ;;  %v5734_v32 = vld [vmem:[#allocation3 + $0xbe0] sm:$0xff] }
 0x82b   :  { %5898 = vmatprep.subr.bf16.mxu0 %v5661_v17  ;;  %6062 = vmatprep.subr.bf16.mxu1 %v5663_v3  ;;  %v5359_v17 = vld [vmem:[#allocation3 + $0x28] sm:$0xff]  ;;  %v9338_v3 = vpack.c.bf16 %v5340_v63, %v5340_v63  ;;  %v5377_v63 = vld [vmem:[#allocation3 + $0xb8] sm:$0xff] }
 0x82e   :  { %5899 = vmatpush1.bf16.msra.mxu0 %v5660_v62  ;;  %6063 = vmatpush1.bf16.msra.mxu1 %v5662_v9  ;;  %v5358_v62 = vld [vmem:[#allocation3 + $0x20] sm:$0xff]  ;;  %v5365_v9 = vld [vmem:[#allocation3 + $0x58] sm:$0xff] }
 0x82f   :  { %5900 = vmatprep.subr.bf16.mxu0 %v5667_v7  ;;  %6064 = vmatprep.subr.bf16.mxu1 %v5669_v19  ;;  %v5364_v7 = vld [vmem:[#allocation3 + $0x50] sm:$0xff]  ;;  %v5371_v19 = vld [vmem:[#allocation3 + $0x88] sm:$0xff] }
 0x832   :  { %5901 = vmatpush1.bf16.msra.mxu0 %v5666_v21  ;;  %6065 = vmatpush1.bf16.msra.mxu1 %v5668_v36  ;;  %v5376_v21 = vld [vmem:[#allocation3 + $0xb0] sm:$0xff]  ;;  %v5383_v36 = vld [vmem:[#allocation3 + $0xe8] sm:$0xff] }
 0x833   :  { %5902 = vmatprep.subr.bf16.mxu0 %v5673_v45  ;;  %6066 = vmatprep.subr.bf16.mxu1 %v5675_v16  ;;  %v5382_v45 = vld [vmem:[#allocation3 + $0xe0] sm:$0xff]  ;;  %v5389_v16 = vld [vmem:[#allocation3 + $0x118] sm:$0xff] }
 0x836   :  { %5903 = vmatpush1.bf16.msra.mxu0 %v5672_v54  ;;  %6067 = vmatpush1.bf16.msra.mxu1 %v5674_v48  ;;  %v5388_v54 = vld [vmem:[#allocation3 + $0x110] sm:$0xff]  ;;  %v5395_v48 = vld [vmem:[#allocation3 + $0x148] sm:$0xff] }
 0x837   :  { %5904 = vmatprep.subr.bf16.mxu0 %v5679_v51  ;;  %6068 = vmatprep.subr.bf16.mxu1 %v5681_v4  ;;  %v5401_v51 = vld [vmem:[#allocation3 + $0x178] sm:$0xff]  ;;  %v5400_v4 = vld [vmem:[#allocation3 + $0x170] sm:$0xff] }
 0x83a   :  { %5905 = vmatpush1.bf16.msra.mxu0 %v5678_v12  ;;  %6069 = vmatpush1.bf16.msra.mxu1 %v5680_v49  ;;  %v5407_v12 = vld [vmem:[#allocation3 + $0x1a8] sm:$0xff]  ;;  %v5406_v49 = vld [vmem:[#allocation3 + $0x1a0] sm:$0xff] }
 0x83b   :  { %5906 = vmatprep.subr.bf16.mxu0 %v5685_v43  ;;  %6070 = vmatprep.subr.bf16.mxu1 %v5687_v18  ;;  %v5413_v43 = vld [vmem:[#allocation3 + $0x1d8] sm:$0xff]  ;;  %v5412_v18 = vld [vmem:[#allocation3 + $0x1d0] sm:$0xff] }
 0x83e   :  { %5907 = vmatpush1.bf16.msra.mxu0 %v5684_v35  ;;  %6071 = vmatpush1.bf16.msra.mxu1 %v5686_v27  ;;  %v5419_v35 = vld [vmem:[#allocation3 + $0x208] sm:$0xff]  ;;  %v5418_v27 = vld [vmem:[#allocation3 + $0x200] sm:$0xff] }
 0x83f   :  { %5908 = vmatprep.subr.bf16.mxu0 %v5691_v10  ;;  %6072 = vmatprep.subr.bf16.mxu1 %v5693_v40  ;;  %v5425_v10 = vld [vmem:[#allocation3 + $0x238] sm:$0xff]  ;;  %v5424_v40 = vld [vmem:[#allocation3 + $0x230] sm:$0xff] }
 0x842   :  { %5909 = vmatpush1.bf16.msra.mxu0 %v5690_v52  ;;  %6073 = vmatpush1.bf16.msra.mxu1 %v5692_v38  ;;  %v5431_v52 = vld [vmem:[#allocation3 + $0x268] sm:$0xff]  ;;  %v5430_v38 = vld [vmem:[#allocation3 + $0x260] sm:$0xff] }
 0x843   :  { %5910 = vmatprep.subr.bf16.mxu0 %v5697_v8  ;;  %6074 = vmatprep.subr.bf16.mxu1 %v5699_v28  ;;  %v5437_v8 = vld [vmem:[#allocation3 + $0x298] sm:$0xff]  ;;  %v5436_v28 = vld [vmem:[#allocation3 + $0x290] sm:$0xff] }
 0x846   :  { %5911 = vmatpush1.bf16.msra.mxu0 %v5696_v5  ;;  %6075 = vmatpush1.bf16.msra.mxu1 %v5698_v0  ;;  %v5443_v5 = vld [vmem:[#allocation3 + $0x2c8] sm:$0xff]  ;;  %v5442_v0 = vld [vmem:[#allocation3 + $0x2c0] sm:$0xff] }
 0x847   :  { %5912 = vmatprep.subr.bf16.mxu0 %v5703_v61  ;;  %6076 = vmatprep.subr.bf16.mxu1 %v5705_v47  ;;  %v5449_v61 = vld [vmem:[#allocation3 + $0x2f8] sm:$0xff]  ;;  %v5448_v47 = vld [vmem:[#allocation3 + $0x2f0] sm:$0xff] }
 0x84a   :  { %5913 = vmatpush1.bf16.msra.mxu0 %v5702_v58  ;;  %6077 = vmatpush1.bf16.msra.mxu1 %v5704_v50  ;;  %v5455_v58 = vld [vmem:[#allocation3 + $0x328] sm:$0xff]  ;;  %v5454_v50 = vld [vmem:[#allocation3 + $0x320] sm:$0xff] }
 0x84b   :  { %5914 = vmatprep.subr.bf16.mxu0 %v5709_v53  ;;  %6078 = vmatprep.subr.bf16.mxu1 %v5711_v57  ;;  %v5461_v53 = vld [vmem:[#allocation3 + $0x358] sm:$0xff]  ;;  %v5460_v57 = vld [vmem:[#allocation3 + $0x350] sm:$0xff] }
 0x84e   :  { %5915 = vmatpush1.bf16.msra.mxu0 %v5708_v1  ;;  %6079 = vmatpush1.bf16.msra.mxu1 %v5710_v41  ;;  %v5467_v1 = vld [vmem:[#allocation3 + $0x388] sm:$0xff]  ;;  %v5466_v41 = vld [vmem:[#allocation3 + $0x380] sm:$0xff] }
 0x84f   :  { %5916 = vmatprep.subr.bf16.mxu0 %v5715_v20  ;;  %6080 = vmatprep.subr.bf16.mxu1 %v5717_v11  ;;  %v5473_v20 = vld [vmem:[#allocation3 + $0x3b8] sm:$0xff]  ;;  %v5472_v11 = vld [vmem:[#allocation3 + $0x3b0] sm:$0xff] }
 0x852   :  { %5917 = vmatpush1.bf16.msra.mxu0 %v5714_v29  ;;  %6081 = vmatpush1.bf16.msra.mxu1 %v5716_v24  ;;  %v5479_v29 = vld [vmem:[#allocation3 + $0x3e8] sm:$0xff]  ;;  %v5478_v24 = vld [vmem:[#allocation3 + $0x3e0] sm:$0xff] }
 0x853   :  { %5918 = vmatprep.subr.bf16.mxu0 %v5721_v44  ;;  %6082 = vmatprep.subr.bf16.mxu1 %v5723_v14  ;;  %v5485_v44 = vld [vmem:[#allocation3 + $0x418] sm:$0xff]  ;;  %v5491_v14 = vld [vmem:[#allocation3 + $0x448] sm:$0xff] }
 0x856   :  { %5919 = vmatpush1.bf16.msra.mxu0 %v5720_v25  ;;  %6083 = vmatpush1.bf16.msra.mxu1 %v5722_v31  ;;  %v5497_v25 = vld [vmem:[#allocation3 + $0x478] sm:$0xff]  ;;  %v5496_v31 = vld [vmem:[#allocation3 + $0x470] sm:$0xff] }
 0x857   :  { %5920 = vmatprep.subr.bf16.mxu0 %v5727_v23  ;;  %6084 = vmatprep.subr.bf16.mxu1 %v5729_v42  ;;  %v5503_v23 = vld [vmem:[#allocation3 + $0x4a8] sm:$0xff]  ;;  %v5502_v42 = vld [vmem:[#allocation3 + $0x4a0] sm:$0xff] }
 0x85a   :  { %5921 = vmatpush1.bf16.msra.mxu0 %v5726_v33  ;;  %6085 = vmatpush1.bf16.msra.mxu1 %v5728_v60  ;;  %v5509_v33 = vld [vmem:[#allocation3 + $0x4d8] sm:$0xff]  ;;  %v5508_v60 = vld [vmem:[#allocation3 + $0x4d0] sm:$0xff] }
 0x85b   :  { %5922 = vmatprep.subr.bf16.mxu0 %v5733_v26  ;;  %6086 = vmatprep.subr.bf16.mxu1 %v5735_v15  ;;  %v5515_v26 = vld [vmem:[#allocation3 + $0x508] sm:$0xff]  ;;  %v5514_v15 = vld [vmem:[#allocation3 + $0x500] sm:$0xff] }
 0x85e   :  { %5923 = vmatpush1.bf16.msra.mxu0 %v5732_v56  ;;  %6087 = vmatpush1.bf16.msra.mxu1 %v5734_v32  ;;  %v5521_v56 = vld [vmem:[#allocation3 + $0x538] sm:$0xff]  ;;  %v5520_v32 = vld [vmem:[#allocation3 + $0x530] sm:$0xff] }
 0x85f   :  { %6097 = vmatprep.subr.bf16.mxu0 %v5359_v17  ;;  %v5527_v17 = vld [vmem:[#allocation3 + $0x568] sm:$0xff] }
 0x861   :  { %5925 = vmatmul.mubr.bf16.vlgmr.msra.gmra.mrb[20].mxu0 %v9338_v3  ;;  %6089 = vmatmul.mubr.bf16.vlgmr.msra.gmra.mrb[28].mxu1 %v9338_v3 }
 0x862   :  { %6098 = vmatpush1.bf16.msra.mxu0 %v5358_v62  ;;  %6129 = vmatprep.mubr.bf16.mxu0 %v9289_v34  ;;  %v5394_v34 = vld [vmem:[#allocation3 + $0x140] sm:$0xff] }
 0x863   :  { %6099 = vmatprep.subr.bf16.mxu0 %v5365_v9  ;;  %v5526_v62 = vld [vmem:[#allocation3 + $0x560] sm:$0xff]  ;;  %v5533_v9 = vld [vmem:[#allocation3 + $0x598] sm:$0xff] }
 0x866   :  { %6100 = vmatpush1.bf16.msra.mxu0 %v5364_v7  ;;  %v5532_v7 = vld [vmem:[#allocation3 + $0x590] sm:$0xff] }
 0x867   :  { %6101 = vmatprep.subr.bf16.mxu0 %v5371_v19  ;;  %v5539_v19 = vld [vmem:[#allocation3 + $0x5c8] sm:$0xff] }
 0x86a   :  { %6102 = vmatpush1.bf16.msra.mxu0 %v5370_v37  ;;  %v5538_v37 = vld [vmem:[#allocation3 + $0x5c0] sm:$0xff] }
 0x86b   :  { %6103 = vmatprep.subr.bf16.mxu0 %v5377_v63  ;;  %v5545_v63 = vld [vmem:[#allocation3 + $0x5f8] sm:$0xff] }
 0x86e   :  { %6104 = vmatpush1.bf16.msra.mxu0 %v5376_v21  ;;  %v5544_v21 = vld [vmem:[#allocation3 + $0x5f0] sm:$0xff] }
 0x86f   :  { %6105 = vmatprep.subr.bf16.mxu0 %v5383_v36  ;;  %v5551_v36 = vld [vmem:[#allocation3 + $0x628] sm:$0xff] }
 0x872   :  { %6106 = vmatpush1.bf16.msra.mxu0 %v5382_v45  ;;  %v5550_v45 = vld [vmem:[#allocation3 + $0x620] sm:$0xff] }
 0x873   :  { %6107 = vmatprep.subr.bf16.mxu0 %v5389_v16  ;;  %v5557_v16 = vld [vmem:[#allocation3 + $0x658] sm:$0xff] }
 0x876   :  { %6108 = vmatpush1.bf16.msra.mxu0 %v5388_v54  ;;  %v5556_v54 = vld [vmem:[#allocation3 + $0x650] sm:$0xff] }
 0x877   :  { %6109 = vmatprep.subr.bf16.mxu0 %v5395_v48  ;;  %v5563_v48 = vld [vmem:[#allocation3 + $0x688] sm:$0xff] }
 0x87a   :  { %6110 = vmatpush1.bf16.msra.mxu0 %v5394_v34  ;;  %v5562_v34 = vld [vmem:[#allocation3 + $0x680] sm:$0xff] }
 0x87b   :  { %6111 = vmatprep.subr.bf16.mxu0 %v5401_v51  ;;  %v5569_v51 = vld [vmem:[#allocation3 + $0x6b8] sm:$0xff] }
 0x87e   :  { %6112 = vmatpush1.bf16.msra.mxu0 %v5400_v4  ;;  %v5568_v4 = vld [vmem:[#allocation3 + $0x6b0] sm:$0xff] }
 0x87f   :  { %6113 = vmatprep.subr.bf16.mxu0 %v5407_v12  ;;  %v5575_v12 = vld [vmem:[#allocation3 + $0x6e8] sm:$0xff] }
 0x882   :  { %6114 = vmatpush1.bf16.msra.mxu0 %v5406_v49  ;;  %v5574_v49 = vld [vmem:[#allocation3 + $0x6e0] sm:$0xff] }
 0x883   :  { %6115 = vmatprep.subr.bf16.mxu0 %v5413_v43  ;;  %v5581_v43 = vld [vmem:[#allocation3 + $0x718] sm:$0xff] }
 0x886   :  { %6116 = vmatpush1.bf16.msra.mxu0 %v5412_v18  ;;  %v5587_v18 = vld [vmem:[#allocation3 + $0x748] sm:$0xff] }
 0x887   :  { %6117 = vmatprep.subr.bf16.mxu0 %v5419_v35  ;;  %v5593_v35 = vld [vmem:[#allocation3 + $0x778] sm:$0xff] }
 0x88a   :  { %6118 = vmatpush1.bf16.msra.mxu0 %v5418_v27  ;;  %v5592_v27 = vld [vmem:[#allocation3 + $0x770] sm:$0xff] }
 0x88b   :  { %6119 = vmatprep.subr.bf16.mxu0 %v5425_v10  ;;  %v5599_v10 = vld [vmem:[#allocation3 + $0x7a8] sm:$0xff] }
 0x88e   :  { %6120 = vmatpush1.bf16.msra.mxu0 %v5424_v40  ;;  %v5598_v40 = vld [vmem:[#allocation3 + $0x7a0] sm:$0xff] }
 0x88f   :  { %6121 = vmatprep.subr.bf16.mxu0 %v5431_v52  ;;  %v5605_v52 = vld [vmem:[#allocation3 + $0x7d8] sm:$0xff] }
 0x892   :  { %6122 = vmatpush1.bf16.msra.mxu0 %v5430_v38  ;;  %v5604_v38 = vld [vmem:[#allocation3 + $0x7d0] sm:$0xff] }
 0x893   :  { %6123 = vmatprep.subr.bf16.mxu0 %v5437_v8  ;;  %v5611_v8 = vld [vmem:[#allocation3 + $0x808] sm:$0xff] }
 0x896   :  { %6124 = vmatpush1.bf16.msra.mxu0 %v5436_v28  ;;  %v5610_v28 = vld [vmem:[#allocation3 + $0x800] sm:$0xff] }
 0x897   :  { %6125 = vmatprep.subr.bf16.mxu0 %v5443_v5  ;;  %v5617_v5 = vld [vmem:[#allocation3 + $0x838] sm:$0xff] }
 0x89a   :  { %6126 = vmatpush1.bf16.msra.mxu0 %v5442_v0  ;;  %v5616_v0 = vld [vmem:[#allocation3 + $0x830] sm:$0xff] }
 0x89b   :  { %6127 = vmatprep.subr.bf16.mxu0 %v5449_v61  ;;  %v5623_v61 = vld [vmem:[#allocation3 + $0x868] sm:$0xff] }
 0x89e   :  { %6128 = vmatpush1.bf16.msra.mxu0 %v5448_v47  ;;  %v5622_v47 = vld [vmem:[#allocation3 + $0x860] sm:$0xff] }
 0x89f   :  { %6138 = vmatprep.subr.bf16.mxu0 %v5455_v58  ;;  %v5629_v58 = vld [vmem:[#allocation3 + $0x898] sm:$0xff] }
 0x8a1   :  { %6130 = vmatmul.mubr.bf16.vlgmr.msra.gmra.mrb[24].mxu0 %v9296_v59  ;;  %v5484_v59 = vld [vmem:[#allocation3 + $0x410] sm:$0xff] }
 0x8a2   :  { %6139 = vmatpush1.bf16.msra.mxu0 %v5454_v50  ;;  %6170 = vmatprep.mubr.bf16.mxu0 %v9301_v13  ;;  %v5490_v13 = vld [vmem:[#allocation3 + $0x440] sm:$0xff]  ;;  %v5628_v50 = vld [vmem:[#allocation3 + $0x890] sm:$0xff] }
 0x8a3   :  { %6140 = vmatprep.subr.bf16.mxu0 %v5461_v53  ;;  %v5635_v53 = vld [vmem:[#allocation3 + $0x8c8] sm:$0xff] }
 0x8a6   :  { %6141 = vmatpush1.bf16.msra.mxu0 %v5460_v57  ;;  %v5634_v57 = vld [vmem:[#allocation3 + $0x8c0] sm:$0xff] }
 0x8a7   :  { %6142 = vmatprep.subr.bf16.mxu0 %v5467_v1  ;;  %v5641_v1 = vld [vmem:[#allocation3 + $0x8f8] sm:$0xff] }
 0x8aa   :  { %6143 = vmatpush1.bf16.msra.mxu0 %v5466_v41  ;;  %v5640_v41 = vld [vmem:[#allocation3 + $0x8f0] sm:$0xff] }
 0x8ab   :  { %6144 = vmatprep.subr.bf16.mxu0 %v5473_v20  ;;  %v5647_v20 = vld [vmem:[#allocation3 + $0x928] sm:$0xff] }
 0x8ae   :  { %6145 = vmatpush1.bf16.msra.mxu0 %v5472_v11  ;;  %v5646_v11 = vld [vmem:[#allocation3 + $0x920] sm:$0xff] }
 0x8af   :  { %6146 = vmatprep.subr.bf16.mxu0 %v5479_v29  ;;  %v5653_v29 = vld [vmem:[#allocation3 + $0x958] sm:$0xff] }
 0x8b2   :  { %6147 = vmatpush1.bf16.msra.mxu0 %v5478_v24  ;;  %v5652_v24 = vld [vmem:[#allocation3 + $0x950] sm:$0xff] }
 0x8b3   :  { %6148 = vmatprep.subr.bf16.mxu0 %v5485_v44  ;;  %v5659_v44 = vld [vmem:[#allocation3 + $0x988] sm:$0xff] }
 0x8b6   :  { %6149 = vmatpush1.bf16.msra.mxu0 %v5484_v59  ;;  %v5658_v59 = vld [vmem:[#allocation3 + $0x980] sm:$0xff] }
 0x8b7   :  { %6150 = vmatprep.subr.bf16.mxu0 %v5491_v14  ;;  %v5665_v14 = vld [vmem:[#allocation3 + $0x9b8] sm:$0xff] }
 0x8ba   :  { %6151 = vmatpush1.bf16.msra.mxu0 %v5490_v13  ;;  %v5664_v13 = vld [vmem:[#allocation3 + $0x9b0] sm:$0xff] }
 0x8bb   :  { %6152 = vmatprep.subr.bf16.mxu0 %v5497_v25  ;;  %v5671_v25 = vld [vmem:[#allocation3 + $0x9e8] sm:$0xff] }
 0x8be   :  { %6153 = vmatpush1.bf16.msra.mxu0 %v5496_v31  ;;  %v5749_v31 = vsub.s32 2, %v7503_v2 }
 0x8bf   :  { %6154 = vmatprep.subr.bf16.mxu0 %v5503_v23  ;;  %v5753_v23 = vsub.s32 3, %v7503_v2 }
 0x8c2   :  { %6155 = vmatpush1.bf16.msra.mxu0 %v5502_v42  ;;  %v5677_v42 = vld [vmem:[#allocation3 + $0xa18] sm:$0xff] }
 0x8c3   :  { %6156 = vmatprep.subr.bf16.mxu0 %v5509_v33 }
 0x8c6   :  { %6157 = vmatpush1.bf16.msra.mxu0 %v5508_v60 }
 0x8c7   :  { %6158 = vmatprep.subr.bf16.mxu0 %v5515_v26 }
 0x8ca   :  { %6159 = vmatpush1.bf16.msra.mxu0 %v5514_v15 }
 0x8cb   :  { %6160 = vmatprep.subr.bf16.mxu0 %v5521_v56  ;;  %v5676_v56 = vld [vmem:[#allocation3 + $0xa10] sm:$0xff] }
 0x8ce   :  { %6161 = vmatpush1.bf16.msra.mxu0 %v5520_v32 }
 0x8cf   :  { %6162 = vmatprep.subr.bf16.mxu0 %v5527_v17 }
 0x8d2   :  { %6163 = vmatpush1.bf16.msra.mxu0 %v5526_v62  ;;  %v5683_v62 = vld [vmem:[#allocation3 + $0xa48] sm:$0xff] }
 0x8d3   :  { %6164 = vmatprep.subr.bf16.mxu0 %v5533_v9 }
 0x8d6   :  { %6165 = vmatpush1.bf16.msra.mxu0 %v5532_v7 }
 0x8d7   :  { %6166 = vmatprep.subr.bf16.mxu0 %v5539_v19 }
 0x8da   :  { %6167 = vmatpush1.bf16.msra.mxu0 %v5538_v37 }
 0x8db   :  { %6168 = vmatprep.subr.bf16.mxu0 %v5545_v63 }
 0x8de   :  { %6169 = vmatpush1.bf16.msra.mxu0 %v5544_v21 }
 0x8df   :  { %6179 = vmatprep.subr.bf16.mxu0 %v5551_v36 }
 0x8e1   :  { %6171 = vmatmul.mubr.bf16.vlgmr.msra.gmra.mrb[24].mxu0 %v9310_v6  ;;  %v5580_v6 = vld [vmem:[#allocation3 + $0x710] sm:$0xff] }
 0x8e2   :  { %6180 = vmatpush1.bf16.msra.mxu0 %v5550_v45  ;;  %6211 = vmatprep.mubr.bf16.mxu0 %v9315_v30  ;;  %v5586_v30 = vld [vmem:[#allocation3 + $0x740] sm:$0xff] }
 0x8e3   :  { %6181 = vmatprep.subr.bf16.mxu0 %v5557_v16 }
 0x8e6   :  { %6182 = vmatpush1.bf16.msra.mxu0 %v5556_v54  ;;  %v5689_v54 = vld [vmem:[#allocation3 + $0xa78] sm:$0xff] }
 0x8e7   :  { %6183 = vmatprep.subr.bf16.mxu0 %v5563_v48  ;;  %v7427_v48 = vmov 1983009808  }
 0x8ea   :  { %6184 = vmatpush1.bf16.msra.mxu0 %v5562_v34  ;;  %v6276_v34 = vunpack.c.l.s4 %v7427_v48 }
 0x8eb   :  { %6185 = vmatprep.subr.bf16.mxu0 %v5569_v51  ;;  %v5688_v51 = vld [vmem:[#allocation3 + $0xa70] sm:$0xff] }
 0x8ee   :  { %6186 = vmatpush1.bf16.msra.mxu0 %v5568_v4  ;;  %v5695_v4 = vld [vmem:[#allocation3 + $0xaa8] sm:$0xff] }
 0x8ef   :  { %6187 = vmatprep.subr.bf16.mxu0 %v5575_v12  ;;  %v6277_v12 = vunpack.c.0.s8 %v6276_v34 }
 0x8f2   :  { %6188 = vmatpush1.bf16.msra.mxu0 %v5574_v49  ;;  %v5694_v49 = vld [vmem:[#allocation3 + $0xaa0] sm:$0xff] }
 0x8f3   :  { %6189 = vmatprep.subr.bf16.mxu0 %v5581_v43  ;;  %v5701_v43 = vld [vmem:[#allocation3 + $0xad8] sm:$0xff] }
 0x8f6   :  { %6190 = vmatpush1.bf16.msra.mxu0 %v5580_v6 }
 0x8f7   :  { %6191 = vmatprep.subr.bf16.mxu0 %v5587_v18 }
 0x8fa   :  { %6192 = vmatpush1.bf16.msra.mxu0 %v5586_v30  ;;  %v6280_v30 = vsub.s32 %v6277_v12, %v7503_v2 }
 0x8fb   :  { %6193 = vmatprep.subr.bf16.mxu0 %v5593_v35 }
 0x8fe   :  { %6194 = vmatpush1.bf16.msra.mxu0 %v5592_v27  ;;  %v5700_v27 = vld [vmem:[#allocation3 + $0xad0] sm:$0xff] }
 0x8ff   :  { %6195 = vmatprep.subr.bf16.mxu0 %v5599_v10 }
 0x902   :  { %6196 = vmatpush1.bf16.msra.mxu0 %v5598_v40 }
 0x903   :  { %6197 = vmatprep.subr.bf16.mxu0 %v5605_v52  ;;  %v5707_v52 = vld [vmem:[#allocation3 + $0xb08] sm:$0xff] }
 0x906   :  { %6198 = vmatpush1.bf16.msra.mxu0 %v5604_v38 }
 0x907   :  { %6199 = vmatprep.subr.bf16.mxu0 %v5611_v8 }
 0x90a   :  { %6200 = vmatpush1.bf16.msra.mxu0 %v5610_v28 }
 0x90b   :  { %6201 = vmatprep.subr.bf16.mxu0 %v5617_v5  ;;  %v5706_v5 = vld [vmem:[#allocation3 + $0xb00] sm:$0xff] }
 0x90e   :  { %6202 = vmatpush1.bf16.msra.mxu0 %v5616_v0  ;;  %v5713_v0 = vld [vmem:[#allocation3 + $0xb38] sm:$0xff] }
 0x90f   :  { %6203 = vmatprep.subr.bf16.mxu0 %v5623_v61 }
 0x912   :  { %6204 = vmatpush1.bf16.msra.mxu0 %v5622_v47  ;;  %v5712_v47 = vld [vmem:[#allocation3 + $0xb30] sm:$0xff] }
 0x913   :  { %6205 = vmatprep.subr.bf16.mxu0 %v5629_v58  ;;  %v5719_v58 = vld [vmem:[#allocation3 + $0xb68] sm:$0xff] }
 0x916   :  { %6206 = vmatpush1.bf16.msra.mxu0 %v5628_v50  ;;  %v5718_v50 = vld [vmem:[#allocation3 + $0xb60] sm:$0xff] }
 0x917   :  { %6207 = vmatprep.subr.bf16.mxu0 %v5635_v53  ;;  %v5725_v53 = vld [vmem:[#allocation3 + $0xb98] sm:$0xff] }
 0x91a   :  { %6208 = vmatpush1.bf16.msra.mxu0 %v5634_v57  ;;  %v5724_v57 = vld [vmem:[#allocation3 + $0xb90] sm:$0xff] }
 0x91b   :  { %6209 = vmatprep.subr.bf16.mxu0 %v5641_v1  ;;  %v5731_v1 = vld [vmem:[#allocation3 + $0xbc8] sm:$0xff] }
 0x91e   :  { %6210 = vmatpush1.bf16.msra.mxu0 %v5640_v41  ;;  %v5730_v41 = vld [vmem:[#allocation3 + $0xbc0] sm:$0xff] }
 0x91f   :  { %6220 = vmatprep.subr.bf16.mxu0 %v5647_v20  ;;  %v5737_v20 = vld [vmem:[#allocation3 + $0xbf8] sm:$0xff] }
 0x921   :  { %6212 = vmatmul.mubr.bf16.vlgmr.msra.gmra.mrb[24].mxu0 %v9324_v22  ;;  %v5670_v22 = vld [vmem:[#allocation3 + $0x9e0] sm:$0xff] }
 0x922   :  { %6221 = vmatpush1.bf16.msra.mxu0 %v5646_v11  ;;  %6252 = vmatprep.mubr.bf16.mxu0 %v9329_v39  ;;  %v9786_v39 = vld [vmem:[#allocation32_spill] sm:$0xff]  ;;  %v5736_v11 = vld [vmem:[#allocation3 + $0xbf0] sm:$0xff] }
 0x923   :  { %6222 = vmatprep.subr.bf16.mxu0 %v5653_v29  ;;  %v5742_v33 = vrot.slane %v9786_v39, %v8202_v46  ;;  %v5750_v60 = vrot.slane %v9786_v39, %v5749_v31  ;;  %v5746_v26 = vrot.slane %v9786_v39, %v8207_v55  ;;  %v5754_v15 = vrot.slane %v9786_v39, %v5753_v23  ;;  %v5682_v55 = vld [vmem:[#allocation3 + $0xa40] sm:$0xff] }
 0x924   :  { %v5757_v29 = vsub.s32 4, %v7503_v2 }
 0x926   :  { %6223 = vmatpush1.bf16.msra.mxu0 %v5652_v24  ;;  %v5761_v24 = vsub.s32 5, %v7503_v2 }
 0x927   :  { %6224 = vmatprep.subr.bf16.mxu0 %v5659_v44  ;;  %v5758_v44 = vrot.slane %v9786_v39, %v5757_v29 }
 0x92a   :  { %6225 = vmatpush1.bf16.msra.mxu0 %v5658_v59  ;;  %v5762_v59 = vrot.slane %v9786_v39, %v5761_v24 }
 0x92b   :  { %6226 = vmatprep.subr.bf16.mxu0 %v5665_v14 }
 0x92e   :  { %6227 = vmatpush1.bf16.msra.mxu0 %v5664_v13 }
 0x92f   :  { %6228 = vmatprep.subr.bf16.mxu0 %v5671_v25 }
 0x932   :  { %6229 = vmatpush1.bf16.msra.mxu0 %v5670_v22 }
 0x933   :  { %6230 = vmatprep.subr.bf16.mxu0 %v5677_v42 }
 0x934   :  { %v5926_v32 = vpop.f32.mrb[20].mxu0  ;;  %v6090_v17 = vpop.f32.mrb[28].mxu1 }
 0x935   :  { %v7222_v9 = vadd.f32 %v5926_v32, %v5742_v33  ;;  %v7224_v7 = vadd.f32 %v6090_v17, %v5750_v60  ;;  %v5928_v19 = vpop.f32.mrb[21].mxu0  ;;  %v6092_v37 = vpop.f32.mrb[29].mxu1 }
 0x936   :  { %v7223_v63 = vadd.f32 %v5928_v19, %v5746_v26  ;;  %v7225_v21 = vadd.f32 %v6092_v37, %v5754_v15  ;;  %v5930_v46 = vpop.f32.mrb[22].mxu0  ;;  %6231 = vmatpush1.bf16.msra.mxu0 %v5676_v56  ;;  %v6094_v36 = vpop.f32.mrb[30].mxu1 }
 0x937   :  { %7316 = vtanh.f32 %v7222_v9  ;;  %v5931_v45 = vpop.f32.mrb[23].mxu0  ;;  %6232 = vmatprep.subr.bf16.mxu0 %v5683_v62  ;;  %v6095_v16 = vpop.f32.mrb[31].mxu1 }
 0x938   :  { %7318 = vtanh.f32 %v7224_v7 }
 0x939   :  { %7320 = vtanh.f32 %v7223_v63 }
 0x93a   :  { %7322 = vtanh.f32 %v7225_v21  ;;  %6233 = vmatpush1.bf16.msra.mxu0 %v5682_v55 }
 0x93b   :  { %6234 = vmatprep.subr.bf16.mxu0 %v5689_v54 }
 0x93e   :  { %6235 = vmatpush1.bf16.msra.mxu0 %v5688_v51 }
 0x93f   :  { %6236 = vmatprep.subr.bf16.mxu0 %v5695_v4 }
 0x941   :  { %v7317_v6 = vpop.eup %7316 }
 0x942   :  { %v7319_v18 = vpop.eup %7318  ;;  %6237 = vmatpush1.bf16.msra.mxu0 %v5694_v49 }
 0x943   :  { %v7321_v35 = vpop.eup %7320  ;;  %6238 = vmatprep.subr.bf16.mxu0 %v5701_v43 }
 0x944   :  { %v7323_v10 = vpop.eup %7322  ;;  %v6273_v40 = vcombine.low %v7317_v6, %v7321_v35 }
 0x945   :  { %v6274_v38 = vcombine.low %v7319_v18, %v7323_v10 }
 0x946   :  { %v6281_v8 = vrot.slane %v6273_v40, %v6280_v30  ;;  %6239 = vmatpush1.bf16.msra.mxu0 %v5700_v27 }
 0x947   :  { %v6288_v28 = vrot.slane %v6274_v38, %v6280_v30  ;;  %6240 = vmatprep.subr.bf16.mxu0 %v5707_v52 }
 0x949   :  { %v6289_v61 = vcombine.low %v6281_v8, %v6288_v28 }
 0x94a   :  { %6241 = vmatpush1.bf16.msra.mxu0 %v5706_v5 }
 0x94b   :  { %6300 = vst [vmem:[%s9374_s5] sm:$0xff] %v6289_v61  ;;  %6242 = vmatprep.subr.bf16.mxu0 %v5713_v0 }
 0x94e   :  { %6243 = vmatpush1.bf16.msra.mxu0 %v5712_v47 }
 0x94f   :  { %6244 = vmatprep.subr.bf16.mxu0 %v5719_v58 }
 0x952   :  { %6245 = vmatpush1.bf16.msra.mxu0 %v5718_v50 }
 0x953   :  { %6246 = vmatprep.subr.bf16.mxu0 %v5725_v53 }
 0x956   :  { %6247 = vmatpush1.bf16.msra.mxu0 %v5724_v57 }
 0x957   :  { %6248 = vmatprep.subr.bf16.mxu0 %v5731_v1 }
 0x95a   :  { %6249 = vmatpush1.bf16.msra.mxu0 %v5730_v41 }
 0x95b   :  { %6250 = vmatprep.subr.bf16.mxu0 %v5737_v20 }
 0x95e   :  { %6251 = vmatpush1.bf16.msra.mxu0 %v5736_v11 }
 0x961   :  { %6253 = vmatmul.mubr.bf16.vlgmr.msra.gmra.mrb[24].mxu0 %v9338_v3 }
 0xa34   :  { %v6254_v14 = vpop.f32.mrb[24].mxu0 }
 0xa35   :  { %v7226_v13 = vadd.f32 %v6254_v14, %v5758_v44  ;;  %v6256_v25 = vpop.f32.mrb[25].mxu0 }
 0xa36   :  { %v7227_v31 = vadd.f32 %v6256_v25, %v5762_v59  ;;  %v6258_v23 = vpop.f32.mrb[26].mxu0 }
 0xa37   :  { %7324 = vtanh.f32 %v7226_v13  ;;  %v6259_v22 = vpop.f32.mrb[27].mxu0 }
 0xa38   :  { %7326 = vtanh.f32 %v7227_v31 }
 0xa41   :  { %v7325_v42 = vpop.eup %7324 }
 0xa42   :  { %v7327_v33 = vpop.eup %7326 }
 0xa43   :  { %v6290_v60 = vcombine.low %v7325_v42, %v7327_v33 }
 0xa45   :  { %6785 = vst.sshfl [vmem:[%s9374_s5 + $0x8] sm:$0x33 pattern:$0x76325410] %v6290_v60 }
 0xa46   :  { %6306 = vsyncpa [#allocation6], 1 }
 0xa47   :  { %6307 = vsyncpa [#allocation8], 1 }
 0xa48   :  { %6308 = vsyncmov [#allocation4] }
 0xa4b   :  { %s6309_s28 = vpop.sfrf %6308 }
 0xa4c   :  { %p6786_p10 = scmp.ne.s32.totalorder %s6309_s28, 0 }
 0xa4e   :  { %6313 = shalt.err (%p6786_p10)  }
 0xa4f   :  { %6315 = vsyncmov [#allocation4 + $0x1] }
 0xa52   :  { %s6316_s29 = vpop.sfrf %6315 }
 0xa53   :  { %p6787_p11 = scmp.ne.s32.totalorder %s6316_s29, 0 }
 0xa55   :  { %6320 = shalt.err (%p6787_p11)  }

</bundles_post_ra>
